<compile_context>
chip_gen: v7x
topology: tpu7x:2x2x1
jax: 0.10.0
libtpu: 0.0.40
codegen_flags: <defaults>
</compile_context>

<pallas_src>
import functools

import jax
import jax.numpy as jnp
from jax import lax
from jax.experimental import pallas as pl
from jax.experimental.pallas import tpu as pltpu


def _lstm_net_kernel(x_ref,                 # (T*B, F)   bf16, time-major rows
                     wih0_ref,              # (F, 4H)    bf16
                     b0_ref,                # (1, 4H)    f32
                     wbig_ref,              # (2H, 8H)   bf16  [[whh0,wih1],[0,whh1]]
                     b1_ref,                # (1, 4H)    f32
                     wl_ref, bl_ref,        # (H, C) f32, (1, C) f32
                     out_ref,               # (B, C)     f32
                     gin_ref,               # scratch (T*B, 4H) f32
                     hcat,                  # scratch (B, 2H)  f32  = [h1 | h2]
                     c1, c2,                # scratch (B, H)   f32
                     *, hidden_dim, seq_len):
    H = hidden_dim
    T = seq_len
    B = hcat.shape[0]

    # zero initial hidden / cell states  (hcat[:, H:] == h2(0) == 0)
    hcat[...] = jnp.zeros_like(hcat)
    c1[...] = jnp.zeros_like(c1)
    c2[...] = jnp.zeros_like(c2)

    # ---- hoisted layer-0 input projection: one (T*B,F)@(F,4H) bf16 matmul ----
    gin_ref[...] = (jnp.dot(x_ref[...], wih0_ref[...],
                            preferred_element_type=jnp.float32)
                    + b0_ref[...])

    # hoisted bias broadcast for layer 1 (JAX does not CSE broadcast_in_dim)
    b1_b = jnp.broadcast_to(b1_ref[...], (B, 4 * H))

    def sigmoid(v):
        # single EUP push (tanh) instead of exp + reciprocal
        return 0.5 * jnp.tanh(0.5 * v) + 0.5

    def gates_to_hc(gates, c_prev):
        # gate column order in the stored weights is (i, f, o, g):
        # one contiguous sigmoid slab (B,3H) + one tanh slab (B,H).
        ifo = sigmoid(gates[:, :3 * H])
        g = jnp.tanh(gates[:, 3 * H:])
        i = ifo[:, 0 * H:1 * H]
        f = ifo[:, 1 * H:2 * H]
        o = ifo[:, 2 * H:3 * H]
        c_new = f * c_prev + i * g
        h_new = o * jnp.tanh(c_new)
        return h_new, c_new

    # ---- prologue: layer-0 of step 1 (h1(0)=c1(0)=0 => no recurrent term) ----
    h1n, c1n = gates_to_hc(gin_ref[0:B, :], c1[...])
    hcat[:, :H] = h1n
    c1[...] = c1n

    # ---- main loop: iteration k does layer-1 of step k and layer-0 of step k+1
    def step(k, carry):
        lhs = hcat[...].astype(jnp.bfloat16)              # [h1(k), h2(k-1)]
        gg = jnp.dot(lhs, wbig_ref[...],
                     preferred_element_type=jnp.float32)  # (B, 8H)

        # layer-1 gates of step k: g1(k) = h1(k)@wih1 + h2(k-1)@whh1 + b1
        h2n, c2n = gates_to_hc(gg[:, 4 * H:] + b1_b, c2[...])

        # layer-0 gates of step k+1: g0(k+1) = gin[k+1] + h1(k)@whh0
        base = pl.multiple_of(k * B, B)
        h1n, c1n = gates_to_hc(gin_ref[pl.ds(base, B), :] + gg[:, :4 * H],
                               c1[...])

        hcat[:, :H] = h1n
        hcat[:, H:] = h2n
        c1[...] = c1n
        c2[...] = c2n
        return carry

    # T is static and small -> fully unroll for cross-step scheduling.
    # (If a bundle dump ever shows vreg spills, drop to unroll=2..4.)
    lax.fori_loop(1, T, step, 0, unroll=True)

    # ---- epilogue: layer-1 of step T, then the head linear ----
    lhs = hcat[...].astype(jnp.bfloat16)                  # [h1(T), h2(T-1)]
    g1 = jnp.dot(lhs, wbig_ref[:, 4 * H:],                # just [wih1; whh1]
                 preferred_element_type=jnp.float32) + b1_b
    h2T, _ = gates_to_hc(g1, c2[...])

    # final linear kept in f32 (tiny, executed once)
    out_ref[...] = (jnp.dot(h2T, wl_ref[...],
                            preferred_element_type=jnp.float32) + bl_ref[...])


def _reorder_gates(w):
    """Permute gate columns from torch order (i,f,g,o) to kernel order (i,f,o,g)."""
    H = w.shape[-1] // 4
    i, f, g, o = (w[..., 0:H], w[..., H:2 * H], w[..., 2 * H:3 * H], w[..., 3 * H:])
    return jnp.concatenate([i, f, o, g], axis=-1)


def net_forward(x_btf, params, *, hidden_dim):
    """x_btf: (B, T, F) float32 (batch_first, like the PyTorch module)."""
    B, T, F = x_btf.shape
    H = hidden_dim
    C = params["w_lin"].shape[1]

    # One-time host-side layout prep (tiny): gate-column permutation, bf16
    # weight cast, and fusion of the two recurrent weight matrices into the
    # single block matrix  [[whh0, wih1], [0, whh1]]  of shape (2H, 8H).
    wih0 = _reorder_gates(params["w_ih0"]).astype(jnp.bfloat16)
    whh0 = _reorder_gates(params["w_hh0"])
    wih1 = _reorder_gates(params["w_ih1"])
    whh1 = _reorder_gates(params["w_hh1"])
    b0 = _reorder_gates(params["b0"])
    b1 = _reorder_gates(params["b1"])
    wbig = jnp.concatenate(
        [jnp.concatenate([whh0, wih1], axis=1),
         jnp.concatenate([jnp.zeros_like(whh1), whh1], axis=1)],
        axis=0).astype(jnp.bfloat16)                           # (2H, 8H)

    # time-major flattened input rows: row t*B + b  <->  x[b, t, :]
    x_flat = (jnp.transpose(x_btf, (1, 0, 2))
              .reshape(T * B, F).astype(jnp.bfloat16))

    vmem = pl.BlockSpec(memory_space=pltpu.MemorySpace.VMEM)
    out = pl.pallas_call(
        functools.partial(_lstm_net_kernel, hidden_dim=H, seq_len=T),
        out_shape=jax.ShapeDtypeStruct((B, C), jnp.float32),
        in_specs=[vmem] * 7,
        out_specs=vmem,
        scratch_shapes=[pltpu.VMEM((T * B, 4 * H), jnp.float32),  # gin
                        pltpu.VMEM((B, 2 * H), jnp.float32),      # hcat=[h1|h2]
                        pltpu.VMEM((B, H), jnp.float32),          # c1
                        pltpu.VMEM((B, H), jnp.float32)],         # c2
    )(x_flat, wih0, b0, wbig, b1, params["w_lin"], params["b_lin"])
    return jnp.squeeze(out)  # matches torch.squeeze


def init_params(key, in_features, hidden_dim, n_classes):
    """PyTorch-style init: U(-1/sqrt(H), 1/sqrt(H)); weights stored transposed
    (right-multiply form, torch gate order i,f,g,o)."""
    H = hidden_dim
    k = 1.0 / jnp.sqrt(jnp.float32(H))
    keys = jax.random.split(key, 10)

    def u(rk, shape):
        return jax.random.uniform(rk, shape, jnp.float32, -k, k)

    return {
        # layer 0: torch weight_ih_l0 is (4H, F) -> stored as (F, 4H)
        "w_ih0": u(keys[0], (in_features, 4 * H)),
        "w_hh0": u(keys[1], (H, 4 * H)),
        "b0": (u(keys[2], (1, 4 * H)) + u(keys[3], (1, 4 * H))),  # bias_ih + bias_hh
        # layer 1: torch weight_ih_l1 is (4H, H) -> stored as (H, 4H)
        "w_ih1": u(keys[4], (H, 4 * H)),
        "w_hh1": u(keys[5], (H, 4 * H)),
        "b1": (u(keys[6], (1, 4 * H)) + u(keys[7], (1, 4 * H))),
        # linear: torch (n_classes, H) -> stored as (H, n_classes)
        "w_lin": u(keys[8], (H, n_classes)),
        "b_lin": u(keys[9], (1, n_classes)),
    }


def net_forward_ref(x_btf, params, *, hidden_dim):
    """Pure-JAX f32 reference (lax.scan, torch gate order, jax.nn.sigmoid)."""
    H = hidden_dim
    B = x_btf.shape[0]

    def run_layer(seq_tbf, w_ih, w_hh, b):
        def step(carry, x_t):
            h, c = carry
            g = x_t @ w_ih + h @ w_hh + b
            i = jax.nn.sigmoid(g[:, 0 * H:1 * H])
            f = jax.nn.sigmoid(g[:, 1 * H:2 * H])
            gg = jnp.tanh(g[:, 2 * H:3 * H])
            o = jax.nn.sigmoid(g[:, 3 * H:4 * H])
            c = f * c + i * gg
            h = o * jnp.tanh(c)
            return (h, c), h

        init = (jnp.zeros((B, H), jnp.float32), jnp.zeros((B, H), jnp.float32))
        _, hs = lax.scan(step, init, seq_tbf)
        return hs

    x_tbf = jnp.transpose(x_btf, (1, 0, 2))
    h1_seq = run_layer(x_tbf, params["w_ih0"], params["w_hh0"], params["b0"])
    h2_seq = run_layer(h1_seq, params["w_ih1"], params["w_hh1"], params["b1"])
    last = h2_seq[-1]
    return jnp.squeeze(last @ params["w_lin"] + params["b_lin"])


if __name__ == "__main__":
    IN_FEATURES = 32
    HIDDEN = 128
    N_CLASSES = 1
    B, T = 8, 8

    key = jax.random.PRNGKey(0)
    k_x, k_p = jax.random.split(key)
    x = jax.random.normal(k_x, (B, T, IN_FEATURES), jnp.float32)
    params = init_params(k_p, IN_FEATURES, HIDDEN, N_CLASSES)

    out = net_forward(x, params, hidden_dim=HIDDEN)
    out = jax.block_until_ready(out)

    ref = net_forward_ref(x, params, hidden_dim=HIDDEN)
    assert out.shape == (B,), out.shape
    # bf16 matmul operands (f32 accumulation) + tanh-form sigmoid + the fused /
    # staggered recurrence reorder float math vs the pure-f32 reference, so the
    # tolerance is relaxed; genuine bugs would produce O(0.1+) errors.
    assert jnp.allclose(out, ref, atol=3e-2, rtol=3e-2), (out, ref)
    print("KERNEL_OK")
</pallas_src>

<mosaic_0001>
module attributes {stable_mosaic.version = 11 : i64} {
  func.func @_lstm_net_kernel(%arg0: memref<64x32xbf16, #tpu.memory_space<vmem>>, %arg1: memref<32x512xbf16, #tpu.memory_space<vmem>>, %arg2: memref<1x512xf32, #tpu.memory_space<vmem>>, %arg3: memref<256x1024xbf16, #tpu.memory_space<vmem>>, %arg4: memref<1x512xf32, #tpu.memory_space<vmem>>, %arg5: memref<128x1xf32, #tpu.memory_space<vmem>>, %arg6: memref<1x1xf32, #tpu.memory_space<vmem>>, %arg7: memref<8x1xf32, #tpu.memory_space<vmem>>, %arg8: memref<64x512xf32, #tpu.memory_space<vmem>>, %arg9: memref<8x256xf32, #tpu.memory_space<vmem>>, %arg10: memref<8x128xf32, #tpu.memory_space<vmem>>, %arg11: memref<8x128xf32, #tpu.memory_space<vmem>>) attributes {dimension_semantics = [], scalar_prefetch = 0 : i64, scratch_operands = 4 : i64, tpu.core_type = #tpu.core_type<tc>} {
    %cst = arith.constant 0.000000e+00 : f32
    %0 = vector.broadcast %cst : f32 to vector<8x256xf32>
    %c0 = arith.constant 0 : index
    %c0_0 = arith.constant 0 : index
    %1 = vector.load %arg9[%c0, %c0_0] : memref<8x256xf32, #tpu.memory_space<vmem>>, vector<8x256xf32>
    tpu.vector_store %arg9[%c0, %c0_0], %0 {strides = array<i32>} : memref<8x256xf32, #tpu.memory_space<vmem>>, vector<8x256xf32>,
    %cst_1 = arith.constant 0.000000e+00 : f32
    %2 = vector.broadcast %cst_1 : f32 to vector<8x128xf32>
    %c0_2 = arith.constant 0 : index
    %c0_3 = arith.constant 0 : index
    %3 = vector.load %arg10[%c0_2, %c0_3] : memref<8x128xf32, #tpu.memory_space<vmem>>, vector<8x128xf32>
    tpu.vector_store %arg10[%c0_2, %c0_3], %2 {strides = array<i32>} : memref<8x128xf32, #tpu.memory_space<vmem>>, vector<8x128xf32>,
    %cst_4 = arith.constant 0.000000e+00 : f32
    %4 = vector.broadcast %cst_4 : f32 to vector<8x128xf32>
    %c0_5 = arith.constant 0 : index
    %c0_6 = arith.constant 0 : index
    %5 = vector.load %arg11[%c0_5, %c0_6] : memref<8x128xf32, #tpu.memory_space<vmem>>, vector<8x128xf32>
    tpu.vector_store %arg11[%c0_5, %c0_6], %4 {strides = array<i32>} : memref<8x128xf32, #tpu.memory_space<vmem>>, vector<8x128xf32>,
    %c0_7 = arith.constant 0 : index
    %c0_8 = arith.constant 0 : index
    %6 = vector.load %arg0[%c0_7, %c0_8] : memref<64x32xbf16, #tpu.memory_space<vmem>>, vector<64x32xbf16>
    %c0_9 = arith.constant 0 : index
    %c0_10 = arith.constant 0 : index
    %7 = vector.load %arg1[%c0_9, %c0_10] : memref<32x512xbf16, #tpu.memory_space<vmem>>, vector<32x512xbf16>
    %cst_11 = arith.constant dense<0.000000e+00> : vector<64x512xf32>
    %8 = tpu.matmul %6, %7, %cst_11 {dimension_numbers = #tpu.dot_dimension_numbers<[1], [0], [0], [1], [0, 0, 1, 1], [], []>} : vector<64x32xbf16>, vector<32x512xbf16>, vector<64x512xf32> -> vector<64x512xf32>
    %c0_12 = arith.constant 0 : index
    %c0_13 = arith.constant 0 : index
    %9 = vector.load %arg2[%c0_12, %c0_13] : memref<1x512xf32, #tpu.memory_space<vmem>>, vector<1x512xf32>
    %10 = vector.broadcast %9 : vector<1x512xf32> to vector<64x512xf32>
    %11 = arith.addf %8, %10 : vector<64x512xf32>
    %c0_14 = arith.constant 0 : index
    %c0_15 = arith.constant 0 : index
    %12 = vector.load %arg8[%c0_14, %c0_15] : memref<64x512xf32, #tpu.memory_space<vmem>>, vector<64x512xf32>
    tpu.vector_store %arg8[%c0_14, %c0_15], %11 {strides = array<i32>} : memref<64x512xf32, #tpu.memory_space<vmem>>, vector<64x512xf32>,
    %c0_16 = arith.constant 0 : index
    %c0_17 = arith.constant 0 : index
    %13 = vector.load %arg4[%c0_16, %c0_17] : memref<1x512xf32, #tpu.memory_space<vmem>>, vector<1x512xf32>
    %14 = vector.shape_cast %13 : vector<1x512xf32> to vector<1x512xf32>
    %15 = vector.broadcast %14 : vector<1x512xf32> to vector<8x512xf32>
    %c0_18 = arith.constant 0 : index
    %c0_19 = arith.constant 0 : index
    %16 = vector.load %arg8[%c0_18, %c0_19] : memref<64x512xf32, #tpu.memory_space<vmem>>, vector<8x512xf32>
    %c0_20 = arith.constant 0 : index
    %c0_21 = arith.constant 0 : index
    %17 = vector.load %arg10[%c0_20, %c0_21] : memref<8x128xf32, #tpu.memory_space<vmem>>, vector<8x128xf32>
    %18 = vector.extract_strided_slice %16 {offsets = [0, 0], sizes = [8, 384], strides = [1, 1]} : vector<8x512xf32> to vector<8x384xf32>
    %cst_22 = arith.constant 5.000000e-01 : f32
    %19 = vector.broadcast %cst_22 : f32 to vector<8x384xf32>
    %20 = arith.mulf %19, %18 : vector<8x384xf32>
    %21 = math.tanh %20 : vector<8x384xf32>
    %cst_23 = arith.constant 5.000000e-01 : f32
    %22 = vector.broadcast %cst_23 : f32 to vector<8x384xf32>
    %23 = arith.mulf %22, %21 : vector<8x384xf32>
    %cst_24 = arith.constant 5.000000e-01 : f32
    %24 = vector.broadcast %cst_24 : f32 to vector<8x384xf32>
    %25 = arith.addf %23, %24 : vector<8x384xf32>
    %26 = vector.extract_strided_slice %16 {offsets = [0, 384], sizes = [8, 128], strides = [1, 1]} : vector<8x512xf32> to vector<8x128xf32>
    %27 = math.tanh %26 : vector<8x128xf32>
    %28 = vector.extract_strided_slice %25 {offsets = [0, 0], sizes = [8, 128], strides = [1, 1]} : vector<8x384xf32> to vector<8x128xf32>
    %29 = vector.extract_strided_slice %25 {offsets = [0, 128], sizes = [8, 128], strides = [1, 1]} : vector<8x384xf32> to vector<8x128xf32>
    %30 = vector.extract_strided_slice %25 {offsets = [0, 256], sizes = [8, 128], strides = [1, 1]} : vector<8x384xf32> to vector<8x128xf32>
    %31 = arith.mulf %29, %17 : vector<8x128xf32>
    %32 = arith.mulf %28, %27 : vector<8x128xf32>
    %33 = arith.addf %31, %32 : vector<8x128xf32>
    %34 = math.tanh %33 : vector<8x128xf32>
    %35 = arith.mulf %30, %34 : vector<8x128xf32>
    %c0_25 = arith.constant 0 : index
    %c0_26 = arith.constant 0 : index
    %36 = vector.load %arg9[%c0_25, %c0_26] : memref<8x256xf32, #tpu.memory_space<vmem>>, vector<8x128xf32>
    tpu.vector_store %arg9[%c0_25, %c0_26], %35 {strides = array<i32>} : memref<8x256xf32, #tpu.memory_space<vmem>>, vector<8x128xf32>,
    %c0_27 = arith.constant 0 : index
    %c0_28 = arith.constant 0 : index
    %37 = vector.load %arg10[%c0_27, %c0_28] : memref<8x128xf32, #tpu.memory_space<vmem>>, vector<8x128xf32>
    tpu.vector_store %arg10[%c0_27, %c0_28], %33 {strides = array<i32>} : memref<8x128xf32, #tpu.memory_space<vmem>>, vector<8x128xf32>,
    %c1_i32 = arith.constant 1 : i32
    %c0_29 = arith.constant 0 : index
    %c0_30 = arith.constant 0 : index
    %38 = vector.load %arg9[%c0_29, %c0_30] : memref<8x256xf32, #tpu.memory_space<vmem>>, vector<8x256xf32>
    %39 = arith.truncf %38 : vector<8x256xf32> to vector<8x256xbf16>
    %c0_31 = arith.constant 0 : index
    %c0_32 = arith.constant 0 : index
    %40 = vector.load %arg3[%c0_31, %c0_32] : memref<256x1024xbf16, #tpu.memory_space<vmem>>, vector<256x1024xbf16>
    %cst_33 = arith.constant dense<0.000000e+00> : vector<8x1024xf32>
    %41 = tpu.matmul %39, %40, %cst_33 {dimension_numbers = #tpu.dot_dimension_numbers<[1], [0], [0], [1], [0, 0, 1, 1], [], []>} : vector<8x256xbf16>, vector<256x1024xbf16>, vector<8x1024xf32> -> vector<8x1024xf32>
    %42 = vector.extract_strided_slice %41 {offsets = [0, 512], sizes = [8, 512], strides = [1, 1]} : vector<8x1024xf32> to vector<8x512xf32>
    %43 = arith.addf %42, %15 : vector<8x512xf32>
    %c0_34 = arith.constant 0 : index
    %c0_35 = arith.constant 0 : index
    %44 = vector.load %arg11[%c0_34, %c0_35] : memref<8x128xf32, #tpu.memory_space<vmem>>, vector<8x128xf32>
    %45 = vector.extract_strided_slice %43 {offsets = [0, 0], sizes = [8, 384], strides = [1, 1]} : vector<8x512xf32> to vector<8x384xf32>
    %cst_36 = arith.constant 5.000000e-01 : f32
    %46 = vector.broadcast %cst_36 : f32 to vector<8x384xf32>
    %47 = arith.mulf %46, %45 : vector<8x384xf32>
    %48 = math.tanh %47 : vector<8x384xf32>
    %cst_37 = arith.constant 5.000000e-01 : f32
    %49 = vector.broadcast %cst_37 : f32 to vector<8x384xf32>
    %50 = arith.mulf %49, %48 : vector<8x384xf32>
    %cst_38 = arith.constant 5.000000e-01 : f32
    %51 = vector.broadcast %cst_38 : f32 to vector<8x384xf32>
    %52 = arith.addf %50, %51 : vector<8x384xf32>
    %53 = vector.extract_strided_slice %43 {offsets = [0, 384], sizes = [8, 128], strides = [1, 1]} : vector<8x512xf32> to vector<8x128xf32>
    %54 = math.tanh %53 : vector<8x128xf32>
    %55 = vector.extract_strided_slice %52 {offsets = [0, 0], sizes = [8, 128], strides = [1, 1]} : vector<8x384xf32> to vector<8x128xf32>
    %56 = vector.extract_strided_slice %52 {offsets = [0, 128], sizes = [8, 128], strides = [1, 1]} : vector<8x384xf32> to vector<8x128xf32>
    %57 = vector.extract_strided_slice %52 {offsets = [0, 256], sizes = [8, 128], strides = [1, 1]} : vector<8x384xf32> to vector<8x128xf32>
    %58 = arith.mulf %56, %44 : vector<8x128xf32>
    %59 = arith.mulf %55, %54 : vector<8x128xf32>
    %60 = arith.addf %58, %59 : vector<8x128xf32>
    %61 = math.tanh %60 : vector<8x128xf32>
    %62 = arith.mulf %57, %61 : vector<8x128xf32>
    %c8_i32 = arith.constant 8 : i32
    %63 = arith.muli %c1_i32, %c8_i32 : i32
    %64 = tpu.assume_multiple %63, 8 : i32
    %65 = arith.index_cast %64 : i32 to index
    %c0_39 = arith.constant 0 : index
    %66 = vector.load %arg8[%65, %c0_39] : memref<64x512xf32, #tpu.memory_space<vmem>>, vector<8x512xf32>
    %67 = vector.extract_strided_slice %41 {offsets = [0, 0], sizes = [8, 512], strides = [1, 1]} : vector<8x1024xf32> to vector<8x512xf32>
    %68 = arith.addf %66, %67 : vector<8x512xf32>
    %c0_40 = arith.constant 0 : index
    %c0_41 = arith.constant 0 : index
    %69 = vector.load %arg10[%c0_40, %c0_41] : memref<8x128xf32, #tpu.memory_space<vmem>>, vector<8x128xf32>
    %70 = vector.extract_strided_slice %68 {offsets = [0, 0], sizes = [8, 384], strides = [1, 1]} : vector<8x512xf32> to vector<8x384xf32>
    %cst_42 = arith.constant 5.000000e-01 : f32
    %71 = vector.broadcast %cst_42 : f32 to vector<8x384xf32>
    %72 = arith.mulf %71, %70 : vector<8x384xf32>
    %73 = math.tanh %72 : vector<8x384xf32>
    %cst_43 = arith.constant 5.000000e-01 : f32
    %74 = vector.broadcast %cst_43 : f32 to vector<8x384xf32>
    %75 = arith.mulf %74, %73 : vector<8x384xf32>
    %cst_44 = arith.constant 5.000000e-01 : f32
    %76 = vector.broadcast %cst_44 : f32 to vector<8x384xf32>
    %77 = arith.addf %75, %76 : vector<8x384xf32>
    %78 = vector.extract_strided_slice %68 {offsets = [0, 384], sizes = [8, 128], strides = [1, 1]} : vector<8x512xf32> to vector<8x128xf32>
    %79 = math.tanh %78 : vector<8x128xf32>
    %80 = vector.extract_strided_slice %77 {offsets = [0, 0], sizes = [8, 128], strides = [1, 1]} : vector<8x384xf32> to vector<8x128xf32>
    %81 = vector.extract_strided_slice %77 {offsets = [0, 128], sizes = [8, 128], strides = [1, 1]} : vector<8x384xf32> to vector<8x128xf32>
    %82 = vector.extract_strided_slice %77 {offsets = [0, 256], sizes = [8, 128], strides = [1, 1]} : vector<8x384xf32> to vector<8x128xf32>
    %83 = arith.mulf %81, %69 : vector<8x128xf32>
    %84 = arith.mulf %80, %79 : vector<8x128xf32>
    %85 = arith.addf %83, %84 : vector<8x128xf32>
    %86 = math.tanh %85 : vector<8x128xf32>
    %87 = arith.mulf %82, %86 : vector<8x128xf32>
    %c0_45 = arith.constant 0 : index
    %c0_46 = arith.constant 0 : index
    %88 = vector.load %arg9[%c0_45, %c0_46] : memref<8x256xf32, #tpu.memory_space<vmem>>, vector<8x128xf32>
    tpu.vector_store %arg9[%c0_45, %c0_46], %87 {strides = array<i32>} : memref<8x256xf32, #tpu.memory_space<vmem>>, vector<8x128xf32>,
    %c0_47 = arith.constant 0 : index
    %c128 = arith.constant 128 : index
    %89 = vector.load %arg9[%c0_47, %c128] : memref<8x256xf32, #tpu.memory_space<vmem>>, vector<8x128xf32>
    tpu.vector_store %arg9[%c0_47, %c128], %62 {strides = array<i32>} : memref<8x256xf32, #tpu.memory_space<vmem>>, vector<8x128xf32>,
    %c0_48 = arith.constant 0 : index
    %c0_49 = arith.constant 0 : index
    %90 = vector.load %arg10[%c0_48, %c0_49] : memref<8x128xf32, #tpu.memory_space<vmem>>, vector<8x128xf32>
    tpu.vector_store %arg10[%c0_48, %c0_49], %85 {strides = array<i32>} : memref<8x128xf32, #tpu.memory_space<vmem>>, vector<8x128xf32>,
    %c0_50 = arith.constant 0 : index
    %c0_51 = arith.constant 0 : index
    %91 = vector.load %arg11[%c0_50, %c0_51] : memref<8x128xf32, #tpu.memory_space<vmem>>, vector<8x128xf32>
    tpu.vector_store %arg11[%c0_50, %c0_51], %60 {strides = array<i32>} : memref<8x128xf32, #tpu.memory_space<vmem>>, vector<8x128xf32>,
    %c2_i32 = arith.constant 2 : i32
    %c0_52 = arith.constant 0 : index
    %c0_53 = arith.constant 0 : index
    %92 = vector.load %arg9[%c0_52, %c0_53] : memref<8x256xf32, #tpu.memory_space<vmem>>, vector<8x256xf32>
    %93 = arith.truncf %92 : vector<8x256xf32> to vector<8x256xbf16>
    %c0_54 = arith.constant 0 : index
    %c0_55 = arith.constant 0 : index
    %94 = vector.load %arg3[%c0_54, %c0_55] : memref<256x1024xbf16, #tpu.memory_space<vmem>>, vector<256x1024xbf16>
    %cst_56 = arith.constant dense<0.000000e+00> : vector<8x1024xf32>
    %95 = tpu.matmul %93, %94, %cst_56 {dimension_numbers = #tpu.dot_dimension_numbers<[1], [0], [0], [1], [0, 0, 1, 1], [], []>} : vector<8x256xbf16>, vector<256x1024xbf16>, vector<8x1024xf32> -> vector<8x1024xf32>
    %96 = vector.extract_strided_slice %95 {offsets = [0, 512], sizes = [8, 512], strides = [1, 1]} : vector<8x1024xf32> to vector<8x512xf32>
    %97 = arith.addf %96, %15 : vector<8x512xf32>
    %c0_57 = arith.constant 0 : index
    %c0_58 = arith.constant 0 : index
    %98 = vector.load %arg11[%c0_57, %c0_58] : memref<8x128xf32, #tpu.memory_space<vmem>>, vector<8x128xf32>
    %99 = vector.extract_strided_slice %97 {offsets = [0, 0], sizes = [8, 384], strides = [1, 1]} : vector<8x512xf32> to vector<8x384xf32>
    %cst_59 = arith.constant 5.000000e-01 : f32
    %100 = vector.broadcast %cst_59 : f32 to vector<8x384xf32>
    %101 = arith.mulf %100, %99 : vector<8x384xf32>
    %102 = math.tanh %101 : vector<8x384xf32>
    %cst_60 = arith.constant 5.000000e-01 : f32
    %103 = vector.broadcast %cst_60 : f32 to vector<8x384xf32>
    %104 = arith.mulf %103, %102 : vector<8x384xf32>
    %cst_61 = arith.constant 5.000000e-01 : f32
    %105 = vector.broadcast %cst_61 : f32 to vector<8x384xf32>
    %106 = arith.addf %104, %105 : vector<8x384xf32>
    %107 = vector.extract_strided_slice %97 {offsets = [0, 384], sizes = [8, 128], strides = [1, 1]} : vector<8x512xf32> to vector<8x128xf32>
    %108 = math.tanh %107 : vector<8x128xf32>
    %109 = vector.extract_strided_slice %106 {offsets = [0, 0], sizes = [8, 128], strides = [1, 1]} : vector<8x384xf32> to vector<8x128xf32>
    %110 = vector.extract_strided_slice %106 {offsets = [0, 128], sizes = [8, 128], strides = [1, 1]} : vector<8x384xf32> to vector<8x128xf32>
    %111 = vector.extract_strided_slice %106 {offsets = [0, 256], sizes = [8, 128], strides = [1, 1]} : vector<8x384xf32> to vector<8x128xf32>
    %112 = arith.mulf %110, %98 : vector<8x128xf32>
    %113 = arith.mulf %109, %108 : vector<8x128xf32>
    %114 = arith.addf %112, %113 : vector<8x128xf32>
    %115 = math.tanh %114 : vector<8x128xf32>
    %116 = arith.mulf %111, %115 : vector<8x128xf32>
    %c8_i32_62 = arith.constant 8 : i32
    %117 = arith.muli %c2_i32, %c8_i32_62 : i32
    %118 = tpu.assume_multiple %117, 8 : i32
    %119 = arith.index_cast %118 : i32 to index
    %c0_63 = arith.constant 0 : index
    %120 = vector.load %arg8[%119, %c0_63] : memref<64x512xf32, #tpu.memory_space<vmem>>, vector<8x512xf32>
    %121 = vector.extract_strided_slice %95 {offsets = [0, 0], sizes = [8, 512], strides = [1, 1]} : vector<8x1024xf32> to vector<8x512xf32>
    %122 = arith.addf %120, %121 : vector<8x512xf32>
    %c0_64 = arith.constant 0 : index
    %c0_65 = arith.constant 0 : index
    %123 = vector.load %arg10[%c0_64, %c0_65] : memref<8x128xf32, #tpu.memory_space<vmem>>, vector<8x128xf32>
    %124 = vector.extract_strided_slice %122 {offsets = [0, 0], sizes = [8, 384], strides = [1, 1]} : vector<8x512xf32> to vector<8x384xf32>
    %cst_66 = arith.constant 5.000000e-01 : f32
    %125 = vector.broadcast %cst_66 : f32 to vector<8x384xf32>
    %126 = arith.mulf %125, %124 : vector<8x384xf32>
    %127 = math.tanh %126 : vector<8x384xf32>
    %cst_67 = arith.constant 5.000000e-01 : f32
    %128 = vector.broadcast %cst_67 : f32 to vector<8x384xf32>
    %129 = arith.mulf %128, %127 : vector<8x384xf32>
    %cst_68 = arith.constant 5.000000e-01 : f32
    %130 = vector.broadcast %cst_68 : f32 to vector<8x384xf32>
    %131 = arith.addf %129, %130 : vector<8x384xf32>
    %132 = vector.extract_strided_slice %122 {offsets = [0, 384], sizes = [8, 128], strides = [1, 1]} : vector<8x512xf32> to vector<8x128xf32>
    %133 = math.tanh %132 : vector<8x128xf32>
    %134 = vector.extract_strided_slice %131 {offsets = [0, 0], sizes = [8, 128], strides = [1, 1]} : vector<8x384xf32> to vector<8x128xf32>
    %135 = vector.extract_strided_slice %131 {offsets = [0, 128], sizes = [8, 128], strides = [1, 1]} : vector<8x384xf32> to vector<8x128xf32>
    %136 = vector.extract_strided_slice %131 {offsets = [0, 256], sizes = [8, 128], strides = [1, 1]} : vector<8x384xf32> to vector<8x128xf32>
    %137 = arith.mulf %135, %123 : vector<8x128xf32>
    %138 = arith.mulf %134, %133 : vector<8x128xf32>
    %139 = arith.addf %137, %138 : vector<8x128xf32>
    %140 = math.tanh %139 : vector<8x128xf32>
    %141 = arith.mulf %136, %140 : vector<8x128xf32>
    %c0_69 = arith.constant 0 : index
    %c0_70 = arith.constant 0 : index
    %142 = vector.load %arg9[%c0_69, %c0_70] : memref<8x256xf32, #tpu.memory_space<vmem>>, vector<8x128xf32>
    tpu.vector_store %arg9[%c0_69, %c0_70], %141 {strides = array<i32>} : memref<8x256xf32, #tpu.memory_space<vmem>>, vector<8x128xf32>,
    %c0_71 = arith.constant 0 : index
    %c128_72 = arith.constant 128 : index
    %143 = vector.load %arg9[%c0_71, %c128_72] : memref<8x256xf32, #tpu.memory_space<vmem>>, vector<8x128xf32>
    tpu.vector_store %arg9[%c0_71, %c128_72], %116 {strides = array<i32>} : memref<8x256xf32, #tpu.memory_space<vmem>>, vector<8x128xf32>,
    %c0_73 = arith.constant 0 : index
    %c0_74 = arith.constant 0 : index
    %144 = vector.load %arg10[%c0_73, %c0_74] : memref<8x128xf32, #tpu.memory_space<vmem>>, vector<8x128xf32>
    tpu.vector_store %arg10[%c0_73, %c0_74], %139 {strides = array<i32>} : memref<8x128xf32, #tpu.memory_space<vmem>>, vector<8x128xf32>,
    %c0_75 = arith.constant 0 : index
    %c0_76 = arith.constant 0 : index
    %145 = vector.load %arg11[%c0_75, %c0_76] : memref<8x128xf32, #tpu.memory_space<vmem>>, vector<8x128xf32>
    tpu.vector_store %arg11[%c0_75, %c0_76], %114 {strides = array<i32>} : memref<8x128xf32, #tpu.memory_space<vmem>>, vector<8x128xf32>,
    %c3_i32 = arith.constant 3 : i32
    %c0_77 = arith.constant 0 : index
    %c0_78 = arith.constant 0 : index
    %146 = vector.load %arg9[%c0_77, %c0_78] : memref<8x256xf32, #tpu.memory_space<vmem>>, vector<8x256xf32>
    %147 = arith.truncf %146 : vector<8x256xf32> to vector<8x256xbf16>
    %c0_79 = arith.constant 0 : index
    %c0_80 = arith.constant 0 : index
    %148 = vector.load %arg3[%c0_79, %c0_80] : memref<256x1024xbf16, #tpu.memory_space<vmem>>, vector<256x1024xbf16>
    %cst_81 = arith.constant dense<0.000000e+00> : vector<8x1024xf32>
    %149 = tpu.matmul %147, %148, %cst_81 {dimension_numbers = #tpu.dot_dimension_numbers<[1], [0], [0], [1], [0, 0, 1, 1], [], []>} : vector<8x256xbf16>, vector<256x1024xbf16>, vector<8x1024xf32> -> vector<8x1024xf32>
    %150 = vector.extract_strided_slice %149 {offsets = [0, 512], sizes = [8, 512], strides = [1, 1]} : vector<8x1024xf32> to vector<8x512xf32>
    %151 = arith.addf %150, %15 : vector<8x512xf32>
    %c0_82 = arith.constant 0 : index
    %c0_83 = arith.constant 0 : index
    %152 = vector.load %arg11[%c0_82, %c0_83] : memref<8x128xf32, #tpu.memory_space<vmem>>, vector<8x128xf32>
    %153 = vector.extract_strided_slice %151 {offsets = [0, 0], sizes = [8, 384], strides = [1, 1]} : vector<8x512xf32> to vector<8x384xf32>
    %cst_84 = arith.constant 5.000000e-01 : f32
    %154 = vector.broadcast %cst_84 : f32 to vector<8x384xf32>
    %155 = arith.mulf %154, %153 : vector<8x384xf32>
    %156 = math.tanh %155 : vector<8x384xf32>
    %cst_85 = arith.constant 5.000000e-01 : f32
    %157 = vector.broadcast %cst_85 : f32 to vector<8x384xf32>
    %158 = arith.mulf %157, %156 : vector<8x384xf32>
    %cst_86 = arith.constant 5.000000e-01 : f32
    %159 = vector.broadcast %cst_86 : f32 to vector<8x384xf32>
    %160 = arith.addf %158, %159 : vector<8x384xf32>
    %161 = vector.extract_strided_slice %151 {offsets = [0, 384], sizes = [8, 128], strides = [1, 1]} : vector<8x512xf32> to vector<8x128xf32>
    %162 = math.tanh %161 : vector<8x128xf32>
    %163 = vector.extract_strided_slice %160 {offsets = [0, 0], sizes = [8, 128], strides = [1, 1]} : vector<8x384xf32> to vector<8x128xf32>
    %164 = vector.extract_strided_slice %160 {offsets = [0, 128], sizes = [8, 128], strides = [1, 1]} : vector<8x384xf32> to vector<8x128xf32>
    %165 = vector.extract_strided_slice %160 {offsets = [0, 256], sizes = [8, 128], strides = [1, 1]} : vector<8x384xf32> to vector<8x128xf32>
    %166 = arith.mulf %164, %152 : vector<8x128xf32>
    %167 = arith.mulf %163, %162 : vector<8x128xf32>
    %168 = arith.addf %166, %167 : vector<8x128xf32>
    %169 = math.tanh %168 : vector<8x128xf32>
    %170 = arith.mulf %165, %169 : vector<8x128xf32>
    %c8_i32_87 = arith.constant 8 : i32
    %171 = arith.muli %c3_i32, %c8_i32_87 : i32
    %172 = tpu.assume_multiple %171, 8 : i32
    %173 = arith.index_cast %172 : i32 to index
    %c0_88 = arith.constant 0 : index
    %174 = vector.load %arg8[%173, %c0_88] : memref<64x512xf32, #tpu.memory_space<vmem>>, vector<8x512xf32>
    %175 = vector.extract_strided_slice %149 {offsets = [0, 0], sizes = [8, 512], strides = [1, 1]} : vector<8x1024xf32> to vector<8x512xf32>
    %176 = arith.addf %174, %175 : vector<8x512xf32>
    %c0_89 = arith.constant 0 : index
    %c0_90 = arith.constant 0 : index
    %177 = vector.load %arg10[%c0_89, %c0_90] : memref<8x128xf32, #tpu.memory_space<vmem>>, vector<8x128xf32>
    %178 = vector.extract_strided_slice %176 {offsets = [0, 0], sizes = [8, 384], strides = [1, 1]} : vector<8x512xf32> to vector<8x384xf32>
    %cst_91 = arith.constant 5.000000e-01 : f32
    %179 = vector.broadcast %cst_91 : f32 to vector<8x384xf32>
    %180 = arith.mulf %179, %178 : vector<8x384xf32>
    %181 = math.tanh %180 : vector<8x384xf32>
    %cst_92 = arith.constant 5.000000e-01 : f32
    %182 = vector.broadcast %cst_92 : f32 to vector<8x384xf32>
    %183 = arith.mulf %182, %181 : vector<8x384xf32>
    %cst_93 = arith.constant 5.000000e-01 : f32
    %184 = vector.broadcast %cst_93 : f32 to vector<8x384xf32>
    %185 = arith.addf %183, %184 : vector<8x384xf32>
    %186 = vector.extract_strided_slice %176 {offsets = [0, 384], sizes = [8, 128], strides = [1, 1]} : vector<8x512xf32> to vector<8x128xf32>
    %187 = math.tanh %186 : vector<8x128xf32>
    %188 = vector.extract_strided_slice %185 {offsets = [0, 0], sizes = [8, 128], strides = [1, 1]} : vector<8x384xf32> to vector<8x128xf32>
    %189 = vector.extract_strided_slice %185 {offsets = [0, 128], sizes = [8, 128], strides = [1, 1]} : vector<8x384xf32> to vector<8x128xf32>
    %190 = vector.extract_strided_slice %185 {offsets = [0, 256], sizes = [8, 128], strides = [1, 1]} : vector<8x384xf32> to vector<8x128xf32>
    %191 = arith.mulf %189, %177 : vector<8x128xf32>
    %192 = arith.mulf %188, %187 : vector<8x128xf32>
    %193 = arith.addf %191, %192 : vector<8x128xf32>
    %194 = math.tanh %193 : vector<8x128xf32>
    %195 = arith.mulf %190, %194 : vector<8x128xf32>
    %c0_94 = arith.constant 0 : index
    %c0_95 = arith.constant 0 : index
    %196 = vector.load %arg9[%c0_94, %c0_95] : memref<8x256xf32, #tpu.memory_space<vmem>>, vector<8x128xf32>
    tpu.vector_store %arg9[%c0_94, %c0_95], %195 {strides = array<i32>} : memref<8x256xf32, #tpu.memory_space<vmem>>, vector<8x128xf32>,
    %c0_96 = arith.constant 0 : index
    %c128_97 = arith.constant 128 : index
    %197 = vector.load %arg9[%c0_96, %c128_97] : memref<8x256xf32, #tpu.memory_space<vmem>>, vector<8x128xf32>
    tpu.vector_store %arg9[%c0_96, %c128_97], %170 {strides = array<i32>} : memref<8x256xf32, #tpu.memory_space<vmem>>, vector<8x128xf32>,
    %c0_98 = arith.constant 0 : index
    %c0_99 = arith.constant 0 : index
    %198 = vector.load %arg10[%c0_98, %c0_99] : memref<8x128xf32, #tpu.memory_space<vmem>>, vector<8x128xf32>
    tpu.vector_store %arg10[%c0_98, %c0_99], %193 {strides = array<i32>} : memref<8x128xf32, #tpu.memory_space<vmem>>, vector<8x128xf32>,
    %c0_100 = arith.constant 0 : index
    %c0_101 = arith.constant 0 : index
    %199 = vector.load %arg11[%c0_100, %c0_101] : memref<8x128xf32, #tpu.memory_space<vmem>>, vector<8x128xf32>
    tpu.vector_store %arg11[%c0_100, %c0_101], %168 {strides = array<i32>} : memref<8x128xf32, #tpu.memory_space<vmem>>, vector<8x128xf32>,
    %c4_i32 = arith.constant 4 : i32
    %c0_102 = arith.constant 0 : index
    %c0_103 = arith.constant 0 : index
    %200 = vector.load %arg9[%c0_102, %c0_103] : memref<8x256xf32, #tpu.memory_space<vmem>>, vector<8x256xf32>
    %201 = arith.truncf %200 : vector<8x256xf32> to vector<8x256xbf16>
    %c0_104 = arith.constant 0 : index
    %c0_105 = arith.constant 0 : index
    %202 = vector.load %arg3[%c0_104, %c0_105] : memref<256x1024xbf16, #tpu.memory_space<vmem>>, vector<256x1024xbf16>
    %cst_106 = arith.constant dense<0.000000e+00> : vector<8x1024xf32>
    %203 = tpu.matmul %201, %202, %cst_106 {dimension_numbers = #tpu.dot_dimension_numbers<[1], [0], [0], [1], [0, 0, 1, 1], [], []>} : vector<8x256xbf16>, vector<256x1024xbf16>, vector<8x1024xf32> -> vector<8x1024xf32>
    %204 = vector.extract_strided_slice %203 {offsets = [0, 512], sizes = [8, 512], strides = [1, 1]} : vector<8x1024xf32> to vector<8x512xf32>
    %205 = arith.addf %204, %15 : vector<8x512xf32>
    %c0_107 = arith.constant 0 : index
    %c0_108 = arith.constant 0 : index
    %206 = vector.load %arg11[%c0_107, %c0_108] : memref<8x128xf32, #tpu.memory_space<vmem>>, vector<8x128xf32>
    %207 = vector.extract_strided_slice %205 {offsets = [0, 0], sizes = [8, 384], strides = [1, 1]} : vector<8x512xf32> to vector<8x384xf32>
    %cst_109 = arith.constant 5.000000e-01 : f32
    %208 = vector.broadcast %cst_109 : f32 to vector<8x384xf32>
    %209 = arith.mulf %208, %207 : vector<8x384xf32>
    %210 = math.tanh %209 : vector<8x384xf32>
    %cst_110 = arith.constant 5.000000e-01 : f32
    %211 = vector.broadcast %cst_110 : f32 to vector<8x384xf32>
    %212 = arith.mulf %211, %210 : vector<8x384xf32>
    %cst_111 = arith.constant 5.000000e-01 : f32
    %213 = vector.broadcast %cst_111 : f32 to vector<8x384xf32>
    %214 = arith.addf %212, %213 : vector<8x384xf32>
    %215 = vector.extract_strided_slice %205 {offsets = [0, 384], sizes = [8, 128], strides = [1, 1]} : vector<8x512xf32> to vector<8x128xf32>
    %216 = math.tanh %215 : vector<8x128xf32>
    %217 = vector.extract_strided_slice %214 {offsets = [0, 0], sizes = [8, 128], strides = [1, 1]} : vector<8x384xf32> to vector<8x128xf32>
    %218 = vector.extract_strided_slice %214 {offsets = [0, 128], sizes = [8, 128], strides = [1, 1]} : vector<8x384xf32> to vector<8x128xf32>
    %219 = vector.extract_strided_slice %214 {offsets = [0, 256], sizes = [8, 128], strides = [1, 1]} : vector<8x384xf32> to vector<8x128xf32>
    %220 = arith.mulf %218, %206 : vector<8x128xf32>
    %221 = arith.mulf %217, %216 : vector<8x128xf32>
    %222 = arith.addf %220, %221 : vector<8x128xf32>
    %223 = math.tanh %222 : vector<8x128xf32>
    %224 = arith.mulf %219, %223 : vector<8x128xf32>
    %c8_i32_112 = arith.constant 8 : i32
    %225 = arith.muli %c4_i32, %c8_i32_112 : i32
    %226 = tpu.assume_multiple %225, 8 : i32
    %227 = arith.index_cast %226 : i32 to index
    %c0_113 = arith.constant 0 : index
    %228 = vector.load %arg8[%227, %c0_113] : memref<64x512xf32, #tpu.memory_space<vmem>>, vector<8x512xf32>
    %229 = vector.extract_strided_slice %203 {offsets = [0, 0], sizes = [8, 512], strides = [1, 1]} : vector<8x1024xf32> to vector<8x512xf32>
    %230 = arith.addf %228, %229 : vector<8x512xf32>
    %c0_114 = arith.constant 0 : index
    %c0_115 = arith.constant 0 : index
    %231 = vector.load %arg10[%c0_114, %c0_115] : memref<8x128xf32, #tpu.memory_space<vmem>>, vector<8x128xf32>
    %232 = vector.extract_strided_slice %230 {offsets = [0, 0], sizes = [8, 384], strides = [1, 1]} : vector<8x512xf32> to vector<8x384xf32>
    %cst_116 = arith.constant 5.000000e-01 : f32
    %233 = vector.broadcast %cst_116 : f32 to vector<8x384xf32>
    %234 = arith.mulf %233, %232 : vector<8x384xf32>
    %235 = math.tanh %234 : vector<8x384xf32>
    %cst_117 = arith.constant 5.000000e-01 : f32
    %236 = vector.broadcast %cst_117 : f32 to vector<8x384xf32>
    %237 = arith.mulf %236, %235 : vector<8x384xf32>
    %cst_118 = arith.constant 5.000000e-01 : f32
    %238 = vector.broadcast %cst_118 : f32 to vector<8x384xf32>
    %239 = arith.addf %237, %238 : vector<8x384xf32>
    %240 = vector.extract_strided_slice %230 {offsets = [0, 384], sizes = [8, 128], strides = [1, 1]} : vector<8x512xf32> to vector<8x128xf32>
    %241 = math.tanh %240 : vector<8x128xf32>
    %242 = vector.extract_strided_slice %239 {offsets = [0, 0], sizes = [8, 128], strides = [1, 1]} : vector<8x384xf32> to vector<8x128xf32>
    %243 = vector.extract_strided_slice %239 {offsets = [0, 128], sizes = [8, 128], strides = [1, 1]} : vector<8x384xf32> to vector<8x128xf32>
    %244 = vector.extract_strided_slice %239 {offsets = [0, 256], sizes = [8, 128], strides = [1, 1]} : vector<8x384xf32> to vector<8x128xf32>
    %245 = arith.mulf %243, %231 : vector<8x128xf32>
    %246 = arith.mulf %242, %241 : vector<8x128xf32>
    %247 = arith.addf %245, %246 : vector<8x128xf32>
    %248 = math.tanh %247 : vector<8x128xf32>
    %249 = arith.mulf %244, %248 : vector<8x128xf32>
    %c0_119 = arith.constant 0 : index
    %c0_120 = arith.constant 0 : index
    %250 = vector.load %arg9[%c0_119, %c0_120] : memref<8x256xf32, #tpu.memory_space<vmem>>, vector<8x128xf32>
    tpu.vector_store %arg9[%c0_119, %c0_120], %249 {strides = array<i32>} : memref<8x256xf32, #tpu.memory_space<vmem>>, vector<8x128xf32>,
    %c0_121 = arith.constant 0 : index
    %c128_122 = arith.constant 128 : index
    %251 = vector.load %arg9[%c0_121, %c128_122] : memref<8x256xf32, #tpu.memory_space<vmem>>, vector<8x128xf32>
    tpu.vector_store %arg9[%c0_121, %c128_122], %224 {strides = array<i32>} : memref<8x256xf32, #tpu.memory_space<vmem>>, vector<8x128xf32>,
    %c0_123 = arith.constant 0 : index
    %c0_124 = arith.constant 0 : index
    %252 = vector.load %arg10[%c0_123, %c0_124] : memref<8x128xf32, #tpu.memory_space<vmem>>, vector<8x128xf32>
    tpu.vector_store %arg10[%c0_123, %c0_124], %247 {strides = array<i32>} : memref<8x128xf32, #tpu.memory_space<vmem>>, vector<8x128xf32>,
    %c0_125 = arith.constant 0 : index
    %c0_126 = arith.constant 0 : index
    %253 = vector.load %arg11[%c0_125, %c0_126] : memref<8x128xf32, #tpu.memory_space<vmem>>, vector<8x128xf32>
    tpu.vector_store %arg11[%c0_125, %c0_126], %222 {strides = array<i32>} : memref<8x128xf32, #tpu.memory_space<vmem>>, vector<8x128xf32>,
    %c5_i32 = arith.constant 5 : i32
    %c0_127 = arith.constant 0 : index
    %c0_128 = arith.constant 0 : index
    %254 = vector.load %arg9[%c0_127, %c0_128] : memref<8x256xf32, #tpu.memory_space<vmem>>, vector<8x256xf32>
    %255 = arith.truncf %254 : vector<8x256xf32> to vector<8x256xbf16>
    %c0_129 = arith.constant 0 : index
    %c0_130 = arith.constant 0 : index
    %256 = vector.load %arg3[%c0_129, %c0_130] : memref<256x1024xbf16, #tpu.memory_space<vmem>>, vector<256x1024xbf16>
    %cst_131 = arith.constant dense<0.000000e+00> : vector<8x1024xf32>
    %257 = tpu.matmul %255, %256, %cst_131 {dimension_numbers = #tpu.dot_dimension_numbers<[1], [0], [0], [1], [0, 0, 1, 1], [], []>} : vector<8x256xbf16>, vector<256x1024xbf16>, vector<8x1024xf32> -> vector<8x1024xf32>
    %258 = vector.extract_strided_slice %257 {offsets = [0, 512], sizes = [8, 512], strides = [1, 1]} : vector<8x1024xf32> to vector<8x512xf32>
    %259 = arith.addf %258, %15 : vector<8x512xf32>
    %c0_132 = arith.constant 0 : index
    %c0_133 = arith.constant 0 : index
    %260 = vector.load %arg11[%c0_132, %c0_133] : memref<8x128xf32, #tpu.memory_space<vmem>>, vector<8x128xf32>
    %261 = vector.extract_strided_slice %259 {offsets = [0, 0], sizes = [8, 384], strides = [1, 1]} : vector<8x512xf32> to vector<8x384xf32>
    %cst_134 = arith.constant 5.000000e-01 : f32
    %262 = vector.broadcast %cst_134 : f32 to vector<8x384xf32>
    %263 = arith.mulf %262, %261 : vector<8x384xf32>
    %264 = math.tanh %263 : vector<8x384xf32>
    %cst_135 = arith.constant 5.000000e-01 : f32
    %265 = vector.broadcast %cst_135 : f32 to vector<8x384xf32>
    %266 = arith.mulf %265, %264 : vector<8x384xf32>
    %cst_136 = arith.constant 5.000000e-01 : f32
    %267 = vector.broadcast %cst_136 : f32 to vector<8x384xf32>
    %268 = arith.addf %266, %267 : vector<8x384xf32>
    %269 = vector.extract_strided_slice %259 {offsets = [0, 384], sizes = [8, 128], strides = [1, 1]} : vector<8x512xf32> to vector<8x128xf32>
    %270 = math.tanh %269 : vector<8x128xf32>
    %271 = vector.extract_strided_slice %268 {offsets = [0, 0], sizes = [8, 128], strides = [1, 1]} : vector<8x384xf32> to vector<8x128xf32>
    %272 = vector.extract_strided_slice %268 {offsets = [0, 128], sizes = [8, 128], strides = [1, 1]} : vector<8x384xf32> to vector<8x128xf32>
    %273 = vector.extract_strided_slice %268 {offsets = [0, 256], sizes = [8, 128], strides = [1, 1]} : vector<8x384xf32> to vector<8x128xf32>
    %274 = arith.mulf %272, %260 : vector<8x128xf32>
    %275 = arith.mulf %271, %270 : vector<8x128xf32>
    %276 = arith.addf %274, %275 : vector<8x128xf32>
    %277 = math.tanh %276 : vector<8x128xf32>
    %278 = arith.mulf %273, %277 : vector<8x128xf32>
    %c8_i32_137 = arith.constant 8 : i32
    %279 = arith.muli %c5_i32, %c8_i32_137 : i32
    %280 = tpu.assume_multiple %279, 8 : i32
    %281 = arith.index_cast %280 : i32 to index
    %c0_138 = arith.constant 0 : index
    %282 = vector.load %arg8[%281, %c0_138] : memref<64x512xf32, #tpu.memory_space<vmem>>, vector<8x512xf32>
    %283 = vector.extract_strided_slice %257 {offsets = [0, 0], sizes = [8, 512], strides = [1, 1]} : vector<8x1024xf32> to vector<8x512xf32>
    %284 = arith.addf %282, %283 : vector<8x512xf32>
    %c0_139 = arith.constant 0 : index
    %c0_140 = arith.constant 0 : index
    %285 = vector.load %arg10[%c0_139, %c0_140] : memref<8x128xf32, #tpu.memory_space<vmem>>, vector<8x128xf32>
    %286 = vector.extract_strided_slice %284 {offsets = [0, 0], sizes = [8, 384], strides = [1, 1]} : vector<8x512xf32> to vector<8x384xf32>
    %cst_141 = arith.constant 5.000000e-01 : f32
    %287 = vector.broadcast %cst_141 : f32 to vector<8x384xf32>
    %288 = arith.mulf %287, %286 : vector<8x384xf32>
    %289 = math.tanh %288 : vector<8x384xf32>
    %cst_142 = arith.constant 5.000000e-01 : f32
    %290 = vector.broadcast %cst_142 : f32 to vector<8x384xf32>
    %291 = arith.mulf %290, %289 : vector<8x384xf32>
    %cst_143 = arith.constant 5.000000e-01 : f32
    %292 = vector.broadcast %cst_143 : f32 to vector<8x384xf32>
    %293 = arith.addf %291, %292 : vector<8x384xf32>
    %294 = vector.extract_strided_slice %284 {offsets = [0, 384], sizes = [8, 128], strides = [1, 1]} : vector<8x512xf32> to vector<8x128xf32>
    %295 = math.tanh %294 : vector<8x128xf32>
    %296 = vector.extract_strided_slice %293 {offsets = [0, 0], sizes = [8, 128], strides = [1, 1]} : vector<8x384xf32> to vector<8x128xf32>
    %297 = vector.extract_strided_slice %293 {offsets = [0, 128], sizes = [8, 128], strides = [1, 1]} : vector<8x384xf32> to vector<8x128xf32>
    %298 = vector.extract_strided_slice %293 {offsets = [0, 256], sizes = [8, 128], strides = [1, 1]} : vector<8x384xf32> to vector<8x128xf32>
    %299 = arith.mulf %297, %285 : vector<8x128xf32>
    %300 = arith.mulf %296, %295 : vector<8x128xf32>
    %301 = arith.addf %299, %300 : vector<8x128xf32>
    %302 = math.tanh %301 : vector<8x128xf32>
    %303 = arith.mulf %298, %302 : vector<8x128xf32>
    %c0_144 = arith.constant 0 : index
    %c0_145 = arith.constant 0 : index
    %304 = vector.load %arg9[%c0_144, %c0_145] : memref<8x256xf32, #tpu.memory_space<vmem>>, vector<8x128xf32>
    tpu.vector_store %arg9[%c0_144, %c0_145], %303 {strides = array<i32>} : memref<8x256xf32, #tpu.memory_space<vmem>>, vector<8x128xf32>,
    %c0_146 = arith.constant 0 : index
    %c128_147 = arith.constant 128 : index
    %305 = vector.load %arg9[%c0_146, %c128_147] : memref<8x256xf32, #tpu.memory_space<vmem>>, vector<8x128xf32>
    tpu.vector_store %arg9[%c0_146, %c128_147], %278 {strides = array<i32>} : memref<8x256xf32, #tpu.memory_space<vmem>>, vector<8x128xf32>,
    %c0_148 = arith.constant 0 : index
    %c0_149 = arith.constant 0 : index
    %306 = vector.load %arg10[%c0_148, %c0_149] : memref<8x128xf32, #tpu.memory_space<vmem>>, vector<8x128xf32>
    tpu.vector_store %arg10[%c0_148, %c0_149], %301 {strides = array<i32>} : memref<8x128xf32, #tpu.memory_space<vmem>>, vector<8x128xf32>,
    %c0_150 = arith.constant 0 : index
    %c0_151 = arith.constant 0 : index
    %307 = vector.load %arg11[%c0_150, %c0_151] : memref<8x128xf32, #tpu.memory_space<vmem>>, vector<8x128xf32>
    tpu.vector_store %arg11[%c0_150, %c0_151], %276 {strides = array<i32>} : memref<8x128xf32, #tpu.memory_space<vmem>>, vector<8x128xf32>,
    %c6_i32 = arith.constant 6 : i32
    %c0_152 = arith.constant 0 : index
    %c0_153 = arith.constant 0 : index
    %308 = vector.load %arg9[%c0_152, %c0_153] : memref<8x256xf32, #tpu.memory_space<vmem>>, vector<8x256xf32>
    %309 = arith.truncf %308 : vector<8x256xf32> to vector<8x256xbf16>
    %c0_154 = arith.constant 0 : index
    %c0_155 = arith.constant 0 : index
    %310 = vector.load %arg3[%c0_154, %c0_155] : memref<256x1024xbf16, #tpu.memory_space<vmem>>, vector<256x1024xbf16>
    %cst_156 = arith.constant dense<0.000000e+00> : vector<8x1024xf32>
    %311 = tpu.matmul %309, %310, %cst_156 {dimension_numbers = #tpu.dot_dimension_numbers<[1], [0], [0], [1], [0, 0, 1, 1], [], []>} : vector<8x256xbf16>, vector<256x1024xbf16>, vector<8x1024xf32> -> vector<8x1024xf32>
    %312 = vector.extract_strided_slice %311 {offsets = [0, 512], sizes = [8, 512], strides = [1, 1]} : vector<8x1024xf32> to vector<8x512xf32>
    %313 = arith.addf %312, %15 : vector<8x512xf32>
    %c0_157 = arith.constant 0 : index
    %c0_158 = arith.constant 0 : index
    %314 = vector.load %arg11[%c0_157, %c0_158] : memref<8x128xf32, #tpu.memory_space<vmem>>, vector<8x128xf32>
    %315 = vector.extract_strided_slice %313 {offsets = [0, 0], sizes = [8, 384], strides = [1, 1]} : vector<8x512xf32> to vector<8x384xf32>
    %cst_159 = arith.constant 5.000000e-01 : f32
    %316 = vector.broadcast %cst_159 : f32 to vector<8x384xf32>
    %317 = arith.mulf %316, %315 : vector<8x384xf32>
    %318 = math.tanh %317 : vector<8x384xf32>
    %cst_160 = arith.constant 5.000000e-01 : f32
    %319 = vector.broadcast %cst_160 : f32 to vector<8x384xf32>
    %320 = arith.mulf %319, %318 : vector<8x384xf32>
    %cst_161 = arith.constant 5.000000e-01 : f32
    %321 = vector.broadcast %cst_161 : f32 to vector<8x384xf32>
    %322 = arith.addf %320, %321 : vector<8x384xf32>
    %323 = vector.extract_strided_slice %313 {offsets = [0, 384], sizes = [8, 128], strides = [1, 1]} : vector<8x512xf32> to vector<8x128xf32>
    %324 = math.tanh %323 : vector<8x128xf32>
    %325 = vector.extract_strided_slice %322 {offsets = [0, 0], sizes = [8, 128], strides = [1, 1]} : vector<8x384xf32> to vector<8x128xf32>
    %326 = vector.extract_strided_slice %322 {offsets = [0, 128], sizes = [8, 128], strides = [1, 1]} : vector<8x384xf32> to vector<8x128xf32>
    %327 = vector.extract_strided_slice %322 {offsets = [0, 256], sizes = [8, 128], strides = [1, 1]} : vector<8x384xf32> to vector<8x128xf32>
    %328 = arith.mulf %326, %314 : vector<8x128xf32>
    %329 = arith.mulf %325, %324 : vector<8x128xf32>
    %330 = arith.addf %328, %329 : vector<8x128xf32>
    %331 = math.tanh %330 : vector<8x128xf32>
    %332 = arith.mulf %327, %331 : vector<8x128xf32>
    %c8_i32_162 = arith.constant 8 : i32
    %333 = arith.muli %c6_i32, %c8_i32_162 : i32
    %334 = tpu.assume_multiple %333, 8 : i32
    %335 = arith.index_cast %334 : i32 to index
    %c0_163 = arith.constant 0 : index
    %336 = vector.load %arg8[%335, %c0_163] : memref<64x512xf32, #tpu.memory_space<vmem>>, vector<8x512xf32>
    %337 = vector.extract_strided_slice %311 {offsets = [0, 0], sizes = [8, 512], strides = [1, 1]} : vector<8x1024xf32> to vector<8x512xf32>
    %338 = arith.addf %336, %337 : vector<8x512xf32>
    %c0_164 = arith.constant 0 : index
    %c0_165 = arith.constant 0 : index
    %339 = vector.load %arg10[%c0_164, %c0_165] : memref<8x128xf32, #tpu.memory_space<vmem>>, vector<8x128xf32>
    %340 = vector.extract_strided_slice %338 {offsets = [0, 0], sizes = [8, 384], strides = [1, 1]} : vector<8x512xf32> to vector<8x384xf32>
    %cst_166 = arith.constant 5.000000e-01 : f32
    %341 = vector.broadcast %cst_166 : f32 to vector<8x384xf32>
    %342 = arith.mulf %341, %340 : vector<8x384xf32>
    %343 = math.tanh %342 : vector<8x384xf32>
    %cst_167 = arith.constant 5.000000e-01 : f32
    %344 = vector.broadcast %cst_167 : f32 to vector<8x384xf32>
    %345 = arith.mulf %344, %343 : vector<8x384xf32>
    %cst_168 = arith.constant 5.000000e-01 : f32
    %346 = vector.broadcast %cst_168 : f32 to vector<8x384xf32>
    %347 = arith.addf %345, %346 : vector<8x384xf32>
    %348 = vector.extract_strided_slice %338 {offsets = [0, 384], sizes = [8, 128], strides = [1, 1]} : vector<8x512xf32> to vector<8x128xf32>
    %349 = math.tanh %348 : vector<8x128xf32>
    %350 = vector.extract_strided_slice %347 {offsets = [0, 0], sizes = [8, 128], strides = [1, 1]} : vector<8x384xf32> to vector<8x128xf32>
    %351 = vector.extract_strided_slice %347 {offsets = [0, 128], sizes = [8, 128], strides = [1, 1]} : vector<8x384xf32> to vector<8x128xf32>
    %352 = vector.extract_strided_slice %347 {offsets = [0, 256], sizes = [8, 128], strides = [1, 1]} : vector<8x384xf32> to vector<8x128xf32>
    %353 = arith.mulf %351, %339 : vector<8x128xf32>
    %354 = arith.mulf %350, %349 : vector<8x128xf32>
    %355 = arith.addf %353, %354 : vector<8x128xf32>
    %356 = math.tanh %355 : vector<8x128xf32>
    %357 = arith.mulf %352, %356 : vector<8x128xf32>
    %c0_169 = arith.constant 0 : index
    %c0_170 = arith.constant 0 : index
    %358 = vector.load %arg9[%c0_169, %c0_170] : memref<8x256xf32, #tpu.memory_space<vmem>>, vector<8x128xf32>
    tpu.vector_store %arg9[%c0_169, %c0_170], %357 {strides = array<i32>} : memref<8x256xf32, #tpu.memory_space<vmem>>, vector<8x128xf32>,
    %c0_171 = arith.constant 0 : index
    %c128_172 = arith.constant 128 : index
    %359 = vector.load %arg9[%c0_171, %c128_172] : memref<8x256xf32, #tpu.memory_space<vmem>>, vector<8x128xf32>
    tpu.vector_store %arg9[%c0_171, %c128_172], %332 {strides = array<i32>} : memref<8x256xf32, #tpu.memory_space<vmem>>, vector<8x128xf32>,
    %c0_173 = arith.constant 0 : index
    %c0_174 = arith.constant 0 : index
    %360 = vector.load %arg10[%c0_173, %c0_174] : memref<8x128xf32, #tpu.memory_space<vmem>>, vector<8x128xf32>
    tpu.vector_store %arg10[%c0_173, %c0_174], %355 {strides = array<i32>} : memref<8x128xf32, #tpu.memory_space<vmem>>, vector<8x128xf32>,
    %c0_175 = arith.constant 0 : index
    %c0_176 = arith.constant 0 : index
    %361 = vector.load %arg11[%c0_175, %c0_176] : memref<8x128xf32, #tpu.memory_space<vmem>>, vector<8x128xf32>
    tpu.vector_store %arg11[%c0_175, %c0_176], %330 {strides = array<i32>} : memref<8x128xf32, #tpu.memory_space<vmem>>, vector<8x128xf32>,
    %c7_i32 = arith.constant 7 : i32
    %c0_177 = arith.constant 0 : index
    %c0_178 = arith.constant 0 : index
    %362 = vector.load %arg9[%c0_177, %c0_178] : memref<8x256xf32, #tpu.memory_space<vmem>>, vector<8x256xf32>
    %363 = arith.truncf %362 : vector<8x256xf32> to vector<8x256xbf16>
    %c0_179 = arith.constant 0 : index
    %c0_180 = arith.constant 0 : index
    %364 = vector.load %arg3[%c0_179, %c0_180] : memref<256x1024xbf16, #tpu.memory_space<vmem>>, vector<256x1024xbf16>
    %cst_181 = arith.constant dense<0.000000e+00> : vector<8x1024xf32>
    %365 = tpu.matmul %363, %364, %cst_181 {dimension_numbers = #tpu.dot_dimension_numbers<[1], [0], [0], [1], [0, 0, 1, 1], [], []>} : vector<8x256xbf16>, vector<256x1024xbf16>, vector<8x1024xf32> -> vector<8x1024xf32>
    %366 = vector.extract_strided_slice %365 {offsets = [0, 512], sizes = [8, 512], strides = [1, 1]} : vector<8x1024xf32> to vector<8x512xf32>
    %367 = arith.addf %366, %15 : vector<8x512xf32>
    %c0_182 = arith.constant 0 : index
    %c0_183 = arith.constant 0 : index
    %368 = vector.load %arg11[%c0_182, %c0_183] : memref<8x128xf32, #tpu.memory_space<vmem>>, vector<8x128xf32>
    %369 = vector.extract_strided_slice %367 {offsets = [0, 0], sizes = [8, 384], strides = [1, 1]} : vector<8x512xf32> to vector<8x384xf32>
    %cst_184 = arith.constant 5.000000e-01 : f32
    %370 = vector.broadcast %cst_184 : f32 to vector<8x384xf32>
    %371 = arith.mulf %370, %369 : vector<8x384xf32>
    %372 = math.tanh %371 : vector<8x384xf32>
    %cst_185 = arith.constant 5.000000e-01 : f32
    %373 = vector.broadcast %cst_185 : f32 to vector<8x384xf32>
    %374 = arith.mulf %373, %372 : vector<8x384xf32>
    %cst_186 = arith.constant 5.000000e-01 : f32
    %375 = vector.broadcast %cst_186 : f32 to vector<8x384xf32>
    %376 = arith.addf %374, %375 : vector<8x384xf32>
    %377 = vector.extract_strided_slice %367 {offsets = [0, 384], sizes = [8, 128], strides = [1, 1]} : vector<8x512xf32> to vector<8x128xf32>
    %378 = math.tanh %377 : vector<8x128xf32>
    %379 = vector.extract_strided_slice %376 {offsets = [0, 0], sizes = [8, 128], strides = [1, 1]} : vector<8x384xf32> to vector<8x128xf32>
    %380 = vector.extract_strided_slice %376 {offsets = [0, 128], sizes = [8, 128], strides = [1, 1]} : vector<8x384xf32> to vector<8x128xf32>
    %381 = vector.extract_strided_slice %376 {offsets = [0, 256], sizes = [8, 128], strides = [1, 1]} : vector<8x384xf32> to vector<8x128xf32>
    %382 = arith.mulf %380, %368 : vector<8x128xf32>
    %383 = arith.mulf %379, %378 : vector<8x128xf32>
    %384 = arith.addf %382, %383 : vector<8x128xf32>
    %385 = math.tanh %384 : vector<8x128xf32>
    %386 = arith.mulf %381, %385 : vector<8x128xf32>
    %c8_i32_187 = arith.constant 8 : i32
    %387 = arith.muli %c7_i32, %c8_i32_187 : i32
    %388 = tpu.assume_multiple %387, 8 : i32
    %389 = arith.index_cast %388 : i32 to index
    %c0_188 = arith.constant 0 : index
    %390 = vector.load %arg8[%389, %c0_188] : memref<64x512xf32, #tpu.memory_space<vmem>>, vector<8x512xf32>
    %391 = vector.extract_strided_slice %365 {offsets = [0, 0], sizes = [8, 512], strides = [1, 1]} : vector<8x1024xf32> to vector<8x512xf32>
    %392 = arith.addf %390, %391 : vector<8x512xf32>
    %c0_189 = arith.constant 0 : index
    %c0_190 = arith.constant 0 : index
    %393 = vector.load %arg10[%c0_189, %c0_190] : memref<8x128xf32, #tpu.memory_space<vmem>>, vector<8x128xf32>
    %394 = vector.extract_strided_slice %392 {offsets = [0, 0], sizes = [8, 384], strides = [1, 1]} : vector<8x512xf32> to vector<8x384xf32>
    %cst_191 = arith.constant 5.000000e-01 : f32
    %395 = vector.broadcast %cst_191 : f32 to vector<8x384xf32>
    %396 = arith.mulf %395, %394 : vector<8x384xf32>
    %397 = math.tanh %396 : vector<8x384xf32>
    %cst_192 = arith.constant 5.000000e-01 : f32
    %398 = vector.broadcast %cst_192 : f32 to vector<8x384xf32>
    %399 = arith.mulf %398, %397 : vector<8x384xf32>
    %cst_193 = arith.constant 5.000000e-01 : f32
    %400 = vector.broadcast %cst_193 : f32 to vector<8x384xf32>
    %401 = arith.addf %399, %400 : vector<8x384xf32>
    %402 = vector.extract_strided_slice %392 {offsets = [0, 384], sizes = [8, 128], strides = [1, 1]} : vector<8x512xf32> to vector<8x128xf32>
    %403 = math.tanh %402 : vector<8x128xf32>
    %404 = vector.extract_strided_slice %401 {offsets = [0, 0], sizes = [8, 128], strides = [1, 1]} : vector<8x384xf32> to vector<8x128xf32>
    %405 = vector.extract_strided_slice %401 {offsets = [0, 128], sizes = [8, 128], strides = [1, 1]} : vector<8x384xf32> to vector<8x128xf32>
    %406 = vector.extract_strided_slice %401 {offsets = [0, 256], sizes = [8, 128], strides = [1, 1]} : vector<8x384xf32> to vector<8x128xf32>
    %407 = arith.mulf %405, %393 : vector<8x128xf32>
    %408 = arith.mulf %404, %403 : vector<8x128xf32>
    %409 = arith.addf %407, %408 : vector<8x128xf32>
    %410 = math.tanh %409 : vector<8x128xf32>
    %411 = arith.mulf %406, %410 : vector<8x128xf32>
    %c0_194 = arith.constant 0 : index
    %c0_195 = arith.constant 0 : index
    %412 = vector.load %arg9[%c0_194, %c0_195] : memref<8x256xf32, #tpu.memory_space<vmem>>, vector<8x128xf32>
    tpu.vector_store %arg9[%c0_194, %c0_195], %411 {strides = array<i32>} : memref<8x256xf32, #tpu.memory_space<vmem>>, vector<8x128xf32>,
    %c0_196 = arith.constant 0 : index
    %c128_197 = arith.constant 128 : index
    %413 = vector.load %arg9[%c0_196, %c128_197] : memref<8x256xf32, #tpu.memory_space<vmem>>, vector<8x128xf32>
    tpu.vector_store %arg9[%c0_196, %c128_197], %386 {strides = array<i32>} : memref<8x256xf32, #tpu.memory_space<vmem>>, vector<8x128xf32>,
    %c0_198 = arith.constant 0 : index
    %c0_199 = arith.constant 0 : index
    %414 = vector.load %arg10[%c0_198, %c0_199] : memref<8x128xf32, #tpu.memory_space<vmem>>, vector<8x128xf32>
    tpu.vector_store %arg10[%c0_198, %c0_199], %409 {strides = array<i32>} : memref<8x128xf32, #tpu.memory_space<vmem>>, vector<8x128xf32>,
    %c0_200 = arith.constant 0 : index
    %c0_201 = arith.constant 0 : index
    %415 = vector.load %arg11[%c0_200, %c0_201] : memref<8x128xf32, #tpu.memory_space<vmem>>, vector<8x128xf32>
    tpu.vector_store %arg11[%c0_200, %c0_201], %384 {strides = array<i32>} : memref<8x128xf32, #tpu.memory_space<vmem>>, vector<8x128xf32>,
    %c7_i32_202 = arith.constant 7 : i32
    %c0_203 = arith.constant 0 : index
    %c0_204 = arith.constant 0 : index
    %416 = vector.load %arg9[%c0_203, %c0_204] : memref<8x256xf32, #tpu.memory_space<vmem>>, vector<8x256xf32>
    %417 = arith.truncf %416 : vector<8x256xf32> to vector<8x256xbf16>
    %c0_205 = arith.constant 0 : index
    %c512 = arith.constant 512 : index
    %418 = vector.load %arg3[%c0_205, %c512] : memref<256x1024xbf16, #tpu.memory_space<vmem>>, vector<256x512xbf16>
    %cst_206 = arith.constant dense<0.000000e+00> : vector<8x512xf32>
    %419 = tpu.matmul %417, %418, %cst_206 {dimension_numbers = #tpu.dot_dimension_numbers<[1], [0], [0], [1], [0, 0, 1, 1], [], []>} : vector<8x256xbf16>, vector<256x512xbf16>, vector<8x512xf32> -> vector<8x512xf32>
    %420 = arith.addf %419, %15 : vector<8x512xf32>
    %c0_207 = arith.constant 0 : index
    %c0_208 = arith.constant 0 : index
    %421 = vector.load %arg11[%c0_207, %c0_208] : memref<8x128xf32, #tpu.memory_space<vmem>>, vector<8x128xf32>
    %422 = vector.extract_strided_slice %420 {offsets = [0, 0], sizes = [8, 384], strides = [1, 1]} : vector<8x512xf32> to vector<8x384xf32>
    %cst_209 = arith.constant 5.000000e-01 : f32
    %423 = vector.broadcast %cst_209 : f32 to vector<8x384xf32>
    %424 = arith.mulf %423, %422 : vector<8x384xf32>
    %425 = math.tanh %424 : vector<8x384xf32>
    %cst_210 = arith.constant 5.000000e-01 : f32
    %426 = vector.broadcast %cst_210 : f32 to vector<8x384xf32>
    %427 = arith.mulf %426, %425 : vector<8x384xf32>
    %cst_211 = arith.constant 5.000000e-01 : f32
    %428 = vector.broadcast %cst_211 : f32 to vector<8x384xf32>
    %429 = arith.addf %427, %428 : vector<8x384xf32>
    %430 = vector.extract_strided_slice %420 {offsets = [0, 384], sizes = [8, 128], strides = [1, 1]} : vector<8x512xf32> to vector<8x128xf32>
    %431 = math.tanh %430 : vector<8x128xf32>
    %432 = vector.extract_strided_slice %429 {offsets = [0, 0], sizes = [8, 128], strides = [1, 1]} : vector<8x384xf32> to vector<8x128xf32>
    %433 = vector.extract_strided_slice %429 {offsets = [0, 128], sizes = [8, 128], strides = [1, 1]} : vector<8x384xf32> to vector<8x128xf32>
    %434 = vector.extract_strided_slice %429 {offsets = [0, 256], sizes = [8, 128], strides = [1, 1]} : vector<8x384xf32> to vector<8x128xf32>
    %435 = arith.mulf %433, %421 : vector<8x128xf32>
    %436 = arith.mulf %432, %431 : vector<8x128xf32>
    %437 = arith.addf %435, %436 : vector<8x128xf32>
    %438 = math.tanh %437 : vector<8x128xf32>
    %439 = arith.mulf %434, %438 : vector<8x128xf32>
    %c0_212 = arith.constant 0 : index
    %c0_213 = arith.constant 0 : index
    %440 = vector.load %arg5[%c0_212, %c0_213] : memref<128x1xf32, #tpu.memory_space<vmem>>, vector<128x1xf32>
    %cst_214 = arith.constant dense<0.000000e+00> : vector<8x1xf32>
    %441 = tpu.matmul %439, %440, %cst_214 {dimension_numbers = #tpu.dot_dimension_numbers<[1], [0], [0], [1], [0, 0, 1, 1], [], []>} : vector<8x128xf32>, vector<128x1xf32>, vector<8x1xf32> -> vector<8x1xf32>
    %c0_215 = arith.constant 0 : index
    %c0_216 = arith.constant 0 : index
    %442 = vector.load %arg6[%c0_215, %c0_216] : memref<1x1xf32, #tpu.memory_space<vmem>>, vector<1x1xf32>
    %443 = vector.broadcast %442 : vector<1x1xf32> to vector<8x1xf32>
    %444 = arith.addf %441, %443 : vector<8x1xf32>
    %c0_217 = arith.constant 0 : index
    %c0_218 = arith.constant 0 : index
    %445 = vector.load %arg7[%c0_217, %c0_218] : memref<8x1xf32, #tpu.memory_space<vmem>>, vector<8x1xf32>
    tpu.vector_store %arg7[%c0_217, %c0_218], %444 {strides = array<i32>} : memref<8x1xf32, #tpu.memory_space<vmem>>, vector<8x1xf32>,
    return
  }
}

</mosaic_0001>

<bundles_post_ra>
// kernel: tpu_custom_call.1
= control target key start
LH: loop header
LB: loop body
LE: loop exit
PB: predicated region body
PF: predicated region fallthrough
CT: control target
= control target key end

     0   :  { %s11453_s0 = inlined_call_operand.vmem [shape: bf16[64,32], index: 0, kind: input, shape index: {}]   ;;  %s11454_s1 = inlined_call_operand.vmem [shape: bf16[32,512], index: 1, kind: input, shape index: {}]   ;;  %s11455_s2 = inlined_call_operand.vmem [shape: f32[1,512], index: 2, kind: input, shape index: {}]   ;;  %s11456_s3 = inlined_call_operand.hbm [shape: bf16[256,1024], index: 3, kind: input, shape index: {}]   ;;  %s11457_s4 = inlined_call_operand.vmem [shape: f32[1,512], index: 4, kind: input, shape index: {}]   ;;  %s11458_s5 = inlined_call_operand.vmem [shape: f32[128,1], index: 5, kind: input, shape index: {}]   ;;  %s11459_s6 = inlined_call_operand.<no memory space> [shape: f32[1,1], index: 6, kind: input, shape index: {}]   ;;  %s11460_s7 = inlined_call_operand.vmem [shape: f32[8,1], index: 7, kind: output, shape index: {}]  }
   0x1   :  { %v12_v0 = vstv %s11459_s6 }
   0x2   :  { %13 = vst [vmem:[#allocation6] sm:$0x1] %v12_v0 }
   0x3   :  { %14 = vsyncpa [#allocation8], 0  ;;  %s9194_s26 = smov [#allocation7]   ;;  %s9170_s30 = scalar_lea.hbm %s11456_s3, 16384 }
   0x4   :  { %s26_s27 = sshll.u32 %s9194_s26, 4  ;;  %p9171_p0 = scmp.ne.s32.totalorder %s11456_s3, %s9170_s30  ;;  %s27_s27 = int_to_ptr.vmem [resolvable:$true] %s26_s27 }
   0x5   :  { %p9174_p1 = scmp.lt.u32.totalorder %s9170_s30, %s11456_s3 }
   0x7   :  { %p9176_p2 = pnand %p9174_p1, %p9171_p0 }
   0x9   :  { %9179 = shalt.err (!%p9176_p2)
}
   0xa   :  { %s9180_s6 = scalar_lea.vmem %s27_s27, 16384  ;;  %p9185_p4 = scmp.lt.s32.totalorder %s27_s27, %s27_s27 }
   0xb   :  { %p9181_p3 = scmp.ne.s32.totalorder %s27_s27, %s9180_s6  ;;  %p9186_p5 = scmp.lt.s32.totalorder %s9180_s6, %s9180_s6 }
   0xd   :  { %p9187_p6 = por %p9186_p5, %p9185_p4 }
   0xf   :  { %p9188_p7 = pnand %p9187_p6, %p9181_p3 }
  0x11   :  { %9191 = shalt.err (!%p9188_p7)
}
  0x12   :  { %s9195_s12 = smov 512   ;;  %s9196_s13 = smov 32  }
  0x13   :  { %32 = dma.hbm_to_vmem [thread:$0]  %s11456_s3, 16384, %s27_s27, [#allocation8], %s9195_s12, %s9195_s12, %s9196_s13  }
  0x14   :  { %9192 = dma.done.wait [#allocation8], 16384  }
  0x15   :  { %9193 = vsyncadd [#allocation8], 4294950912  ;;  %v9197_v1 = vmov 0   ;;  %v8994_v2 = vld [vmem:[%s11454_s1 + $0x4] ss:$16 sps:$4 sm:$0xff]   ;;  %vm145_vm0 = vcmask 261120  }
  0x16   :  { %190 = vmatprep.mubr.bf16.mxu0 %v9197_v1  ;;  %263 = vmatprep.mubr.bf16.mxu1 %v9197_v1  ;;  %v8996_v3 = vld [vmem:[%s11454_s1] ss:$16 sps:$4 sm:$0xff]   ;;  %v8997_v4 = vld [vmem:[%s11454_s1 + $0xc] ss:$16 sps:$4 sm:$0xff]   ;;  %v8999_v5 = vld [vmem:[%s11454_s1 + $0x24] ss:$16 sps:$4 sm:$0xff]  }
  0x17   :  { %158 = vmatprep.subr.bf16.mxu0 %v8994_v2  ;;  %v9001_v6 = vld [vmem:[%s11454_s1 + $0x8] ss:$16 sps:$4 sm:$0xff]   ;;  %v9002_v7 = vld [vmem:[%s11454_s1 + $0x20] ss:$16 sps:$4 sm:$0xff]   ;;  %231 = vmatprep.subr.bf16.mxu1 %v8997_v4  ;;  %v9003_v8 = vld [vmem:[%s11454_s1 + $0x2c] ss:$16 sps:$4 sm:$0xff]  }
  0x18   :  { %159 = vmatpush1.bf16.msra.mxu0 %v8996_v3  ;;  %232 = vmatpush1.bf16.msra.mxu1 %v9001_v6  ;;  %v9005_v9 = vld [vmem:[%s11453_s0] sm:$0xff]   ;;  %v9006_v10 = vld [vmem:[%s11454_s1 + $0x28] ss:$16 sps:$4 sm:$0xff]   ;;  %vm9199_vm1 = vmmov 0   ;;  %vm7916_vm2 = vcmask 7168  }
  0x19   :  { %160 = vmatprep.subr.bf16.mxu0 %v8999_v5  ;;  %233 = vmatprep.subr.bf16.mxu1 %v9003_v8  ;;  %v387_v11 = vld [vmem:[#allocation7] sm:$0xff]  ;;  %v388_v15 = vld [vmem:[#allocation7 + $0x8] sm:$0xff] }
  0x1a   :  { %v391_v12 = vld [vmem:[#allocation7 + $0x20] sm:$0xff]  ;;  %v392_v16 = vld [vmem:[#allocation7 + $0x28] sm:$0xff] }
  0x1b   :  { %v7950_v13 = vcombine.low %v387_v11, %v391_v12  ;;  %v7951_v14 = vcombine.high %v387_v11, %v391_v12  ;;  %v395_v17 = vld [vmem:[#allocation7 + $0x40] sm:$0xff]  ;;  %v7953_v18 = vcombine.high %v388_v15, %v392_v16  ;;  %v396_v20 = vld [vmem:[#allocation7 + $0x48] sm:$0xff]  ;;  %v7952_v22 = vcombine.low %v388_v15, %v392_v16 }
  0x1c   :  { %161 = vmatpush1.bf16.msra.mxu0 %v9002_v7  ;;  %v399_v19 = vld [vmem:[#allocation7 + $0x60] sm:$0xff]  ;;  %v400_v21 = vld [vmem:[#allocation7 + $0x68] sm:$0xff]  ;;  %234 = vmatpush1.bf16.msra.mxu1 %v9006_v10 }
  0x1d   :  { %1155 = vmatprep.subr.bf16.mxu0 %v7951_v14  ;;  %v7959_v23 = vcombine.high %v395_v17, %v399_v19  ;;  %v403_v24 = vld [vmem:[#allocation7 + $0x80] sm:$0xff]  ;;  %1196 = vmatprep.subr.bf16.mxu1 %v7953_v18  ;;  %v7961_v26 = vcombine.high %v396_v20, %v400_v21  ;;  %v7958_v27 = vcombine.low %v395_v17, %v399_v19  ;;  %v404_v28 = vld [vmem:[#allocation7 + $0x88] sm:$0xff] }
  0x1e   :  { %v407_v25 = vld [vmem:[#allocation7 + $0xa0] sm:$0xff]  ;;  %v408_v29 = vld [vmem:[#allocation7 + $0xa8] sm:$0xff]  ;;  %v7960_v31 = vcombine.low %v396_v20, %v400_v21 }
  0x1f   :  { %7942 = vmatmul.mubr.msk.bf16.vlgmr.msra.gmra.mrb[0].mxu0 %vm145_vm0, %v9005_v9  ;;  %7946 = vmatmul.mubr.msk.bf16.vlgmr.msra.gmra.mrb[0].mxu1 %vm145_vm0, %v9005_v9  ;;  %v7967_v30 = vcombine.high %v403_v24, %v407_v25  ;;  %v411_v32 = vld [vmem:[#allocation7 + $0xc0] sm:$0xff]  ;;  %v7969_v34 = vcombine.high %v404_v28, %v408_v29  ;;  %v412_v35 = vld [vmem:[#allocation7 + $0xc8] sm:$0xff]  ;;  %v7966_v36 = vcombine.low %v403_v24, %v407_v25 }
  0x20   :  { %1156 = vmatpush1.bf16.msra.mxu0 %v7950_v13  ;;  %1197 = vmatpush1.bf16.msra.mxu1 %v7952_v22  ;;  %v415_v33 = vld [vmem:[#allocation7 + $0xe0] sm:$0xff]  ;;  %v416_v37 = vld [vmem:[#allocation7 + $0xe8] sm:$0xff]  ;;  %v7968_v41 = vcombine.low %v404_v28, %v408_v29 }
  0x21   :  { %1157 = vmatprep.subr.bf16.mxu0 %v7959_v23  ;;  %1198 = vmatprep.subr.bf16.mxu1 %v7961_v26  ;;  %v419_v38 = vld [vmem:[#allocation7 + $0x100] sm:$0xff]  ;;  %v7975_v40 = vcombine.high %v411_v32, %v415_v33  ;;  %v7977_v42 = vcombine.high %v412_v35, %v416_v37  ;;  %v7974_v43 = vcombine.low %v411_v32, %v415_v33  ;;  %v420_v44 = vld [vmem:[#allocation7 + $0x108] sm:$0xff] }
  0x22   :  { %200 = vmatprep.mubr.bf16.mxu0 %v9197_v1  ;;  %v423_v39 = vld [vmem:[#allocation7 + $0x120] sm:$0xff]  ;;  %273 = vmatprep.mubr.bf16.mxu1 %v9197_v1  ;;  %v424_v45 = vld [vmem:[#allocation7 + $0x128] sm:$0xff]  ;;  %v7976_v47 = vcombine.low %v412_v35, %v416_v37 }
  0x23   :  { %v7983_v46 = vcombine.high %v419_v38, %v423_v39  ;;  %v427_v48 = vld [vmem:[#allocation7 + $0x140] sm:$0xff]  ;;  %v7985_v50 = vcombine.high %v420_v44, %v424_v45  ;;  %v7982_v51 = vcombine.low %v419_v38, %v423_v39  ;;  %v428_v52 = vld [vmem:[#allocation7 + $0x148] sm:$0xff]  ;;  %v7984_v55 = vcombine.low %v420_v44, %v424_v45 }
  0x24   :  { %1158 = vmatpush1.bf16.msra.mxu0 %v7958_v27  ;;  %1199 = vmatpush1.bf16.msra.mxu1 %v7960_v31  ;;  %v431_v49 = vld [vmem:[#allocation7 + $0x160] sm:$0xff]  ;;  %v432_v53 = vld [vmem:[#allocation7 + $0x168] sm:$0xff] }
  0x25   :  { %1159 = vmatprep.subr.bf16.mxu0 %v7967_v30  ;;  %1200 = vmatprep.subr.bf16.mxu1 %v7969_v34  ;;  %v7991_v54 = vcombine.high %v427_v48, %v431_v49  ;;  %v435_v56 = vld [vmem:[#allocation7 + $0x180] sm:$0xff]  ;;  %v7993_v58 = vcombine.high %v428_v52, %v432_v53  ;;  %v7990_v59 = vcombine.low %v427_v48, %v431_v49  ;;  %v436_v60 = vld [vmem:[#allocation7 + $0x188] sm:$0xff] }
  0x26   :  { %v439_v57 = vld [vmem:[#allocation7 + $0x1a0] sm:$0xff]  ;;  %v440_v61 = vld [vmem:[#allocation7 + $0x1a8] sm:$0xff]  ;;  %v7992_v63 = vcombine.low %v428_v52, %v432_v53 }
  0x27   :  { %v7999_v62 = vcombine.high %v435_v56, %v439_v57  ;;  %v8001_v0 = vcombine.high %v436_v60, %v440_v61  ;;  %v7998_v2 = vcombine.low %v435_v56, %v439_v57  ;;  %v8000_v3 = vcombine.low %v436_v60, %v440_v61  ;;  %v443_v4 = vld [vmem:[#allocation7 + $0x1c0] sm:$0xff]  ;;  %v444_v6 = vld [vmem:[#allocation7 + $0x1c8] sm:$0xff]  ;;  %v9009_v60 = vld [vmem:[%s11453_s0 + $0x18] sm:$0xff]  }
  0x28   :  { %1160 = vmatpush1.bf16.msra.mxu0 %v7966_v36  ;;  %1201 = vmatpush1.bf16.msra.mxu1 %v7968_v41  ;;  %v447_v5 = vld [vmem:[#allocation7 + $0x1e0] sm:$0xff]  ;;  %v448_v8 = vld [vmem:[#allocation7 + $0x1e8] sm:$0xff] }
  0x29   :  { %1161 = vmatprep.subr.bf16.mxu0 %v7975_v40  ;;  %1202 = vmatprep.subr.bf16.mxu1 %v7977_v42  ;;  %v8007_v7 = vcombine.high %v443_v4, %v447_v5  ;;  %v8006_v9 = vcombine.low %v443_v4, %v447_v5  ;;  %v8008_v10 = vcombine.low %v444_v6, %v448_v8  ;;  %v451_v12 = vld [vmem:[#allocation7 + $0x200] sm:$0xff]  ;;  %v452_v14 = vld [vmem:[#allocation7 + $0x208] sm:$0xff] }
  0x2a   :  { %v8009_v11 = vcombine.high %v444_v6, %v448_v8  ;;  %v455_v13 = vld [vmem:[#allocation7 + $0x220] sm:$0xff]  ;;  %v456_v16 = vld [vmem:[#allocation7 + $0x228] sm:$0xff] }
  0x2b   :  { %v8015_v15 = vcombine.high %v451_v12, %v455_v13  ;;  %v8014_v17 = vcombine.low %v451_v12, %v455_v13  ;;  %v8016_v18 = vcombine.low %v452_v14, %v456_v16  ;;  %v8017_v19 = vcombine.high %v452_v14, %v456_v16  ;;  %v459_v20 = vld [vmem:[#allocation7 + $0x240] sm:$0xff]  ;;  %v460_v22 = vld [vmem:[#allocation7 + $0x248] sm:$0xff]  ;;  %v394_v16 = vld [vmem:[#allocation7 + $0x38] sm:$0xff] }
  0x2c   :  { %1162 = vmatpush1.bf16.msra.mxu0 %v7974_v43  ;;  %1203 = vmatpush1.bf16.msra.mxu1 %v7976_v47  ;;  %v463_v21 = vld [vmem:[#allocation7 + $0x260] sm:$0xff]  ;;  %v464_v24 = vld [vmem:[#allocation7 + $0x268] sm:$0xff] }
  0x2d   :  { %1163 = vmatprep.subr.bf16.mxu0 %v7983_v46  ;;  %1204 = vmatprep.subr.bf16.mxu1 %v7985_v50  ;;  %v8023_v23 = vcombine.high %v459_v20, %v463_v21  ;;  %v8022_v25 = vcombine.low %v459_v20, %v463_v21  ;;  %v8024_v26 = vcombine.low %v460_v22, %v464_v24  ;;  %v9007_v28 = vld [vmem:[%s11453_s0 + $0x8] sm:$0xff]   ;;  %v9008_v45 = vld [vmem:[%s11453_s0 + $0x10] sm:$0xff]  }
  0x2e   :  { %v8025_v27 = vcombine.high %v460_v22, %v464_v24  ;;  %v467_v29 = vld [vmem:[#allocation7 + $0x280] sm:$0xff]  ;;  %v468_v31 = vld [vmem:[#allocation7 + $0x288] sm:$0xff]  ;;  %7943 = vmatmul.mubr.msk.bf16.gmra.mrb[4].mxu0 %vm145_vm0, %v9007_v28  ;;  %7947 = vmatmul.mubr.msk.bf16.gmra.mrb[4].mxu1 %vm145_vm0, %v9007_v28  ;;  %v65_v24 = vlaneseq }
  0x2f   :  { %v471_v30 = vld [vmem:[#allocation7 + $0x2a0] sm:$0xff]  ;;  %v472_v33 = vld [vmem:[#allocation7 + $0x2a8] sm:$0xff]  ;;  %210 = vmatprep.mubr.bf16.mxu0 %v9197_v1  ;;  %283 = vmatprep.mubr.bf16.mxu1 %v9197_v1 }
  0x30   :  { %1164 = vmatpush1.bf16.msra.mxu0 %v7982_v51  ;;  %1205 = vmatpush1.bf16.msra.mxu1 %v7984_v55  ;;  %v8031_v32 = vcombine.high %v467_v29, %v471_v30  ;;  %v8030_v34 = vcombine.low %v467_v29, %v471_v30  ;;  %v8032_v35 = vcombine.low %v468_v31, %v472_v33  ;;  %v475_v37 = vld [vmem:[#allocation7 + $0x2c0] sm:$0xff]  ;;  %v476_v39 = vld [vmem:[#allocation7 + $0x2c8] sm:$0xff] }
  0x31   :  { %1165 = vmatprep.subr.bf16.mxu0 %v7991_v54  ;;  %1206 = vmatprep.subr.bf16.mxu1 %v7993_v58  ;;  %v8033_v36 = vcombine.high %v468_v31, %v472_v33  ;;  %v479_v38 = vld [vmem:[#allocation7 + $0x2e0] sm:$0xff]  ;;  %v480_v41 = vld [vmem:[#allocation7 + $0x2e8] sm:$0xff] }
  0x32   :  { %v8039_v40 = vcombine.high %v475_v37, %v479_v38  ;;  %v8038_v42 = vcombine.low %v475_v37, %v479_v38  ;;  %v8040_v43 = vcombine.low %v476_v39, %v480_v41  ;;  %v8041_v44 = vcombine.high %v476_v39, %v480_v41  ;;  %v483_v46 = vld [vmem:[#allocation7 + $0x300] sm:$0xff]  ;;  %v484_v48 = vld [vmem:[#allocation7 + $0x308] sm:$0xff] }
  0x33   :  { %v487_v47 = vld [vmem:[#allocation7 + $0x320] sm:$0xff]  ;;  %v488_v50 = vld [vmem:[#allocation7 + $0x328] sm:$0xff] }
  0x34   :  { %1166 = vmatpush1.bf16.msra.mxu0 %v7990_v59  ;;  %1207 = vmatpush1.bf16.msra.mxu1 %v7992_v63  ;;  %v8047_v49 = vcombine.high %v483_v46, %v487_v47  ;;  %v8046_v51 = vcombine.low %v483_v46, %v487_v47  ;;  %v8048_v52 = vcombine.low %v484_v48, %v488_v50  ;;  %v491_v54 = vld [vmem:[#allocation7 + $0x340] sm:$0xff]  ;;  %v492_v56 = vld [vmem:[#allocation7 + $0x348] sm:$0xff] }
  0x35   :  { %1167 = vmatprep.subr.bf16.mxu0 %v7999_v62  ;;  %1208 = vmatprep.subr.bf16.mxu1 %v8001_v0  ;;  %v8049_v53 = vcombine.high %v484_v48, %v488_v50  ;;  %v495_v55 = vld [vmem:[#allocation7 + $0x360] sm:$0xff]  ;;  %v496_v59 = vld [vmem:[#allocation7 + $0x368] sm:$0xff] }
  0x36   :  { %7944 = vmatmul.mubr.msk.bf16.gmra.mrb[8].mxu0 %vm145_vm0, %v9008_v45  ;;  %7948 = vmatmul.mubr.msk.bf16.gmra.mrb[8].mxu1 %vm145_vm0, %v9008_v45  ;;  %v8054_v57 = vcombine.low %v491_v54, %v495_v55  ;;  %v8055_v58 = vcombine.high %v491_v54, %v495_v55  ;;  %v499_v61 = vld [vmem:[#allocation7 + $0x380] sm:$0xff]  ;;  %v8056_v62 = vcombine.low %v492_v56, %v496_v59 }
  0x37   :  { %220 = vmatprep.mubr.bf16.mxu0 %v9197_v1  ;;  %293 = vmatprep.mubr.bf16.mxu1 %v9197_v1  ;;  %v8057_v63 = vcombine.high %v492_v56, %v496_v59  ;;  %v503_v0 = vld [vmem:[#allocation7 + $0x3a0] sm:$0xff] }
  0x38   :  { %1168 = vmatpush1.bf16.msra.mxu0 %v7998_v2  ;;  %1209 = vmatpush1.bf16.msra.mxu1 %v8000_v3  ;;  %v500_v2 = vld [vmem:[#allocation7 + $0x388] sm:$0xff]  ;;  %v9306_v1 = vcombine.high %v499_v61, %v503_v0  ;;  %v507_v5 = vld [vmem:[#allocation7 + $0x3c0] sm:$0xff]  ;;  %v9310_v8 = vcombine.low %v499_v61, %v503_v0 }
  0x39   :  { %1169 = vmatprep.subr.bf16.mxu0 %v8007_v7  ;;  %1210 = vmatprep.subr.bf16.mxu1 %v8009_v11  ;;  %v504_v3 = vld [vmem:[#allocation7 + $0x3a8] sm:$0xff]  ;;  %v511_v6 = vld [vmem:[#allocation7 + $0x3e0] sm:$0xff]  ;;  %v393_v11 = vld [vmem:[#allocation7 + $0x30] sm:$0xff] }
  0x3a   :  { %v9308_v4 = vcombine.high %v500_v2, %v504_v3  ;;  %v508_v7 = vld [vmem:[#allocation7 + $0x3c8] sm:$0xff]  ;;  %v9313_v12 = vcombine.low %v500_v2, %v504_v3  ;;  %v9315_v13 = vcombine.high %v507_v5, %v511_v6  ;;  %v9328_v20 = vcombine.low %v507_v5, %v511_v6  ;;  %v401_v2 = vld [vmem:[#allocation7 + $0x70] sm:$0xff]  ;;  %v398_v3 = vld [vmem:[#allocation7 + $0x58] sm:$0xff] }
  0x3b   :  { %v402_v5 = vld [vmem:[#allocation7 + $0x78] sm:$0xff] }
  0x3c   :  { %1170 = vmatpush1.bf16.msra.mxu0 %v8006_v9  ;;  %1211 = vmatpush1.bf16.msra.mxu1 %v8008_v10  ;;  %v512_v9 = vld [vmem:[#allocation7 + $0x3e8] sm:$0xff]  ;;  %v389_v10 = vld [vmem:[#allocation7 + $0x10] sm:$0xff] }
  0x3d   :  { %1171 = vmatprep.subr.bf16.mxu0 %v8015_v15  ;;  %1212 = vmatprep.subr.bf16.mxu1 %v8017_v19  ;;  %v9317_v14 = vcombine.low %v389_v10, %v393_v11  ;;  %v390_v15 = vld [vmem:[#allocation7 + $0x18] sm:$0xff]  ;;  %v11461_v19 = vmov 0.0|0.0   ;;  %v9333_v21 = vcombine.low %v508_v7, %v512_v9  ;;  %v9335_v22 = vcombine.high %v389_v10, %v393_v11  ;;  %v405_v11 = vld [vmem:[#allocation7 + $0x90] sm:$0xff] }
  0x3e   :  { %7945 = vmatmul.mubr.msk.bf16.gmra.mrb[12].mxu0 %vm145_vm0, %v9009_v60  ;;  %7949 = vmatmul.mubr.msk.bf16.gmra.mrb[12].mxu1 %vm145_vm0, %v9009_v60  ;;  %v9388_v10 = vcombine.high %v398_v3, %v402_v5 }
  0x3f   :  { %1187 = vmatprep.mubr.bf16.mxu0 %v11461_v19  ;;  %1228 = vmatprep.mubr.bf16.mxu1 %v11461_v19 }
  0x40   :  { %1172 = vmatpush1.bf16.msra.mxu0 %v8014_v17  ;;  %1213 = vmatpush1.bf16.msra.mxu1 %v8016_v18  ;;  %v9321_v17 = vcombine.high %v508_v7, %v512_v9  ;;  %v9323_v18 = vcombine.low %v390_v15, %v394_v16 }
  0x41   :  { %1173 = vmatprep.subr.bf16.mxu0 %v8023_v23  ;;  %1214 = vmatprep.subr.bf16.mxu1 %v8025_v27  ;;  %v9338_v23 = vcombine.high %v390_v15, %v394_v16  ;;  %v63_v27 = vld [vmem:[%s11455_s2] sm:$0xf]  ;;  %v409_v15 = vld [vmem:[#allocation7 + $0xb0] sm:$0xff] }
  0x42   :  { %v406_v16 = vld [vmem:[#allocation7 + $0x98] sm:$0xff] }
  0x44   :  { %1174 = vmatpush1.bf16.msra.mxu0 %v8022_v25  ;;  %1215 = vmatpush1.bf16.msra.mxu1 %v8024_v26  ;;  %v9344_v25 = vshrl.u32 %v65_v24, 7  ;;  %v410_v24 = vld [vmem:[#allocation7 + $0xb8] sm:$0xff] }
  0x45   :  { %1175 = vmatprep.subr.bf16.mxu0 %v8031_v32  ;;  %1216 = vmatprep.subr.bf16.mxu1 %v8033_v36 }
  0x46   :  { %v11466_v26 = vsub.s32 0, %v9344_v25  ;;  %v11465_v28 = vsub.s32 1, %v9344_v25  ;;  %v11464_v29 = vsub.s32 3, %v9344_v25  ;;  %v11463_v36 = vsub.s32 2, %v9344_v25 }
  0x48   :  { %1176 = vmatpush1.bf16.msra.mxu0 %v8030_v34  ;;  %1217 = vmatpush1.bf16.msra.mxu1 %v8032_v35  ;;  %v9354_v30 = vrot.slane %v63_v27, %v11466_v26  ;;  %v9358_v31 = vrot.slane %v63_v27, %v11465_v28  ;;  %v9362_v33 = vrot.slane %v63_v27, %v11464_v29  ;;  %v461_v29 = vld [vmem:[#allocation7 + $0x250] sm:$0xff]  ;;  %v462_v26 = vld [vmem:[#allocation7 + $0x258] sm:$0xff] }
  0x49   :  { %1177 = vmatprep.subr.bf16.mxu0 %v8039_v40  ;;  %1218 = vmatprep.subr.bf16.mxu1 %v8041_v44  ;;  %v9376_v46 = vrot.slane %v63_v27, %v11463_v36  ;;  %v458_v36 = vld [vmem:[#allocation7 + $0x238] sm:$0xff]  ;;  %v465_v28 = vld [vmem:[#allocation7 + $0x270] sm:$0xff] }
  0x4a   :  { %11747 = vst [vmem:[#allocation10_spill] sm:$0xff] %v9354_v30  ;;  %11748 = vst [vmem:[#allocation11_spill] sm:$0xff] %v9358_v31 }
  0x4b   :  { %11749 = vst [vmem:[#allocation12_spill] sm:$0xff] %v9362_v33  ;;  %11750 = vst [vmem:[#allocation13_spill] sm:$0xff] %v9376_v46 }
  0x4c   :  { %1178 = vmatpush1.bf16.msra.mxu0 %v8038_v42  ;;  %1219 = vmatpush1.bf16.msra.mxu1 %v8040_v43 }
  0x4d   :  { %1179 = vmatprep.subr.bf16.mxu0 %v8047_v49  ;;  %1220 = vmatprep.subr.bf16.mxu1 %v8049_v53 }
  0x50   :  { %1180 = vmatpush1.bf16.msra.mxu0 %v8046_v51  ;;  %1221 = vmatpush1.bf16.msra.mxu1 %v8048_v52 }
  0x51   :  { %1181 = vmatprep.subr.bf16.mxu0 %v8055_v58  ;;  %1222 = vmatprep.subr.bf16.mxu1 %v8057_v63  ;;  %v397_v63 = vld [vmem:[#allocation7 + $0x50] sm:$0xff] }
  0x52   :  { %v9386_v9 = vcombine.high %v397_v63, %v401_v2  ;;  %v9394_v27 = vcombine.low %v397_v63, %v401_v2 }
  0x54   :  { %1182 = vmatpush1.bf16.msra.mxu0 %v8054_v57  ;;  %1223 = vmatpush1.bf16.msra.mxu1 %v8056_v62 }
  0x55   :  { %1183 = vmatprep.subr.bf16.mxu0 %v9306_v1  ;;  %1224 = vmatprep.subr.bf16.mxu1 %v9308_v4 }
  0x58   :  { %1184 = vmatpush1.bf16.msra.mxu0 %v9310_v8  ;;  %1225 = vmatpush1.bf16.msra.mxu1 %v9313_v12 }
  0x59   :  { %1185 = vmatprep.subr.bf16.mxu0 %v9315_v13  ;;  %1226 = vmatprep.subr.bf16.mxu1 %v9321_v17 }
  0x5c   :  { %1186 = vmatpush1.bf16.msra.mxu0 %v9328_v20  ;;  %1227 = vmatpush1.bf16.msra.mxu1 %v9333_v21 }
  0x5d   :  { %1237 = vmatprep.subr.bf16.mxu0 %v9335_v22  ;;  %1278 = vmatprep.subr.bf16.mxu1 %v9338_v23 }
  0xf2   :  { %v192_v32 = vpop.f32.mrb[0].mxu0  ;;  %v265_v39 = vpop.f32.mrb[0].mxu1 }
  0xf3   :  { %v193_v34 = vadd.f32 %v192_v32, %v9354_v30  ;;  %v194_v35 = vpop.f32.mrb[1].mxu0  ;;  %v267_v42 = vpop.f32.mrb[1].mxu1  ;;  %v266_v48 = vadd.f32 %v265_v39, %v9376_v46  ;;  %v9396_v32 = vcombine.low %v398_v3, %v402_v5  ;;  %v417_v39 = vld [vmem:[#allocation7 + $0xf0] sm:$0xff] }
  0xf4   :  { %v195_v37 = vadd.f32 %v194_v35, %v9358_v31  ;;  %v9367_v38 = vpop.f32.mrb[2].mxu0  ;;  %v268_v44 = vadd.f32 %v267_v42, %v9362_v33  ;;  %v9372_v45 = vpop.f32.mrb[2].mxu1  ;;  %v9402_v35 = vcombine.high %v406_v16, %v410_v24  ;;  %v418_v42 = vld [vmem:[#allocation7 + $0xf8] sm:$0xff]  ;;  %v437_v5 = vld [vmem:[#allocation7 + $0x190] sm:$0xff] }
  0xf5   :  { %v363_v40 = vmul.f32 0.5, %v193_v34  ;;  %v9369_v41 = vpop.f32.mrb[3].mxu0  ;;  %v9378_v47 = vpop.f32.mrb[3].mxu1  ;;  %v365_v49 = vmul.f32 0.5, %v266_v48  ;;  %v9400_v34 = vcombine.high %v405_v11, %v409_v15 }
  0xf6   :  { %v364_v43 = vmul.f32 0.5, %v195_v37  ;;  %v413_v37 = vld [vmem:[#allocation7 + $0xd0] sm:$0xff] }
  0xf7   :  { %9010 = vtanh.f32 %v363_v40  ;;  %v414_v40 = vld [vmem:[#allocation7 + $0xd8] sm:$0xff]  ;;  %v9414_v48 = vcombine.high %v413_v37, %v417_v39 }
  0xf8   :  { %9012 = vtanh.f32 %v364_v43  ;;  %v9408_v43 = vcombine.low %v405_v11, %v409_v15  ;;  %v438_v11 = vld [vmem:[#allocation7 + $0x198] sm:$0xff] }
  0xf9   :  { %9014 = vtanh.f32 %v268_v44  ;;  %v9410_v44 = vcombine.low %v406_v16, %v410_v24  ;;  %v442_v15 = vld [vmem:[#allocation7 + $0x1b8] sm:$0xff] }
  0xfa   :  { %9016 = vtanh.f32 %v365_v49  ;;  %v9416_v49 = vcombine.high %v414_v40, %v418_v42 }
 0x101   :  { %v9011_v50 = vpop.eup %9010 }
 0x102   :  { %v9013_v51 = vpop.eup %9012  ;;  %v369_v52 = vmul.f32 0.5, %v9011_v50  ;;  %v421_v50 = vld [vmem:[#allocation7 + $0x110] sm:$0xff] }
 0x103   :  { %v370_v53 = vmul.f32 0.5, %v9013_v51  ;;  %v9015_v54 = vpop.eup %9014  ;;  %v425_v51 = vld [vmem:[#allocation7 + $0x130] sm:$0xff] }
 0x104   :  { %v372_v55 = vadd.f32 0.5, %v369_v52  ;;  %v9017_v60 = vpop.eup %9016  ;;  %v422_v52 = vld [vmem:[#allocation7 + $0x118] sm:$0xff]  ;;  %v9432_v63 = vcombine.low %v421_v50, %v425_v51 }
 0x105   :  { %v373_v56 = vadd.f32 0.5, %v370_v53  ;;  %v371_v61 = vmul.f32 0.5, %v9017_v60  ;;  %v426_v53 = vld [vmem:[#allocation7 + $0x138] sm:$0xff]  ;;  %v433_v60 = vld [vmem:[#allocation7 + $0x170] sm:$0xff] }
 0x106   :  { %v377_v57 = vmul.f32 %v9015_v54, %v372_v55  ;;  %v9420_v54 = vcombine.low %v413_v37, %v417_v39  ;;  %v9422_v55 = vcombine.low %v414_v40, %v418_v42  ;;  %v9452_v39 = vcombine.high %v438_v11, %v442_v15  ;;  %v445_v40 = vld [vmem:[#allocation7 + $0x1d0] sm:$0xff] }
 0x107   :  { %v376_v58 = vmul.f32 0.0, %v373_v56  ;;  %v374_v62 = vadd.f32 0.5, %v371_v61  ;;  %v9426_v56 = vcombine.high %v421_v50, %v425_v51  ;;  %v430_v61 = vld [vmem:[#allocation7 + $0x158] sm:$0xff]  ;;  %v449_v42 = vld [vmem:[#allocation7 + $0x1f0] sm:$0xff] }
 0x108   :  { %11751 = vst [vmem:[#allocation14_spill] sm:$0xff] %v9452_v39  ;;  %v446_v50 = vld [vmem:[#allocation7 + $0x1d8] sm:$0xff] }
 0x109   :  { %v9381_v59 = vadd.f32 %v377_v57, %v376_v58  ;;  %v9428_v57 = vcombine.high %v422_v52, %v426_v53  ;;  %v429_v58 = vld [vmem:[#allocation7 + $0x150] sm:$0xff]  ;;  %v450_v51 = vld [vmem:[#allocation7 + $0x1f8] sm:$0xff] }
 0x10a   :  { %v9438_v2 = vcombine.high %v429_v58, %v433_v60  ;;  %v9444_v16 = vcombine.low %v429_v58, %v433_v60  ;;  %v9462_v58 = vcombine.high %v445_v40, %v449_v42  ;;  %v9464_v60 = vcombine.high %v446_v50, %v450_v51 }
 0x10b   :  { %9018 = vtanh.f32 %v9381_v59 }
 0x10c   :  { %11754 = vst [vmem:[#allocation17_spill] sm:$0xff] %v9462_v58  ;;  %11755 = vst [vmem:[#allocation18_spill] sm:$0xff] %v9464_v60 }
 0x115   :  { %v9019_v0 = vpop.eup %9018 }
 0x116   :  { %v380_v6 = vmul.f32 %v9019_v0, %v374_v62  ;;  %v434_v62 = vld [vmem:[#allocation7 + $0x178] sm:$0xff]  ;;  %v9434_v0 = vcombine.low %v422_v52, %v426_v53  ;;  %v9458_v53 = vcombine.low %v438_v11, %v442_v15 }
 0x117   :  { %v9440_v3 = vcombine.high %v430_v61, %v434_v62  ;;  %v9446_v24 = vcombine.low %v430_v61, %v434_v62  ;;  %v453_v61 = vld [vmem:[#allocation7 + $0x210] sm:$0xff] }
 0x118   :  { %v9384_v7 = vpack.c.bf16 %v380_v6, %v380_v6  ;;  %v441_v6 = vld [vmem:[#allocation7 + $0x1b0] sm:$0xff]  ;;  %11753 = vst [vmem:[#allocation16_spill] sm:$0xff] %v9458_v53 }
 0x119   :  { %v9450_v37 = vcombine.high %v437_v5, %v441_v6  ;;  %v9456_v52 = vcombine.low %v437_v5, %v441_v6  ;;  %v457_v62 = vld [vmem:[#allocation7 + $0x230] sm:$0xff]  ;;  %v9468_v5 = vcombine.low %v445_v40, %v449_v42  ;;  %v9470_v6 = vcombine.low %v446_v50, %v450_v51 }
 0x11a   :  { %1188 = vmatmul.mubr.bf16.vlgmr.msra.gmra.mrb[16].mxu0 %v9384_v7  ;;  %1229 = vmatmul.mubr.bf16.vlgmr.msra.gmra.mrb[16].mxu1 %v9384_v7  ;;  %v9474_v11 = vcombine.high %v453_v61, %v457_v62  ;;  %v9480_v40 = vcombine.low %v453_v61, %v457_v62  ;;  %v9486_v50 = vcombine.high %v461_v29, %v465_v28 }
 0x11b   :  { %1238 = vmatpush1.bf16.msra.mxu0 %v9317_v14  ;;  %1279 = vmatpush1.bf16.msra.mxu1 %v9323_v18  ;;  %11752 = vst [vmem:[#allocation15_spill] sm:$0xff] %v9456_v52  ;;  %11756 = vst [vmem:[#allocation19_spill] sm:$0xff] %v9468_v5  ;;  %v9492_v61 = vcombine.low %v461_v29, %v465_v28 }
 0x11c   :  { %1239 = vmatprep.subr.bf16.mxu0 %v9386_v9  ;;  %1280 = vmatprep.subr.bf16.mxu1 %v9388_v10  ;;  %11757 = vst [vmem:[#allocation20_spill] sm:$0xff] %v9470_v6  ;;  %11758 = vst [vmem:[#allocation21_spill] sm:$0xff] %v9474_v11 }
 0x11d   :  { %1269 = vmatprep.mubr.bf16.mxu0 %v11461_v19  ;;  %1310 = vmatprep.mubr.bf16.mxu1 %v11461_v19  ;;  %v454_v19 = vld [vmem:[#allocation7 + $0x218] sm:$0xff]  ;;  %11760 = vst [vmem:[#allocation23_spill] sm:$0xff] %v9480_v40  ;;  %11762 = vst [vmem:[#allocation25_spill] sm:$0xff] %v9486_v50 }
 0x11e   :  { %v9476_v15 = vcombine.high %v454_v19, %v458_v36  ;;  %v9482_v42 = vcombine.low %v454_v19, %v458_v36  ;;  %11764 = vst [vmem:[#allocation27_spill] sm:$0xff] %v9492_v61 }
 0x11f   :  { %1240 = vmatpush1.bf16.msra.mxu0 %v9394_v27  ;;  %1281 = vmatpush1.bf16.msra.mxu1 %v9396_v32 }
 0x120   :  { %1241 = vmatprep.subr.bf16.mxu0 %v9400_v34  ;;  %1282 = vmatprep.subr.bf16.mxu1 %v9402_v35  ;;  %11759 = vst [vmem:[#allocation22_spill] sm:$0xff] %v9476_v15  ;;  %11761 = vst [vmem:[#allocation24_spill] sm:$0xff] %v9482_v42 }
 0x123   :  { %1242 = vmatpush1.bf16.msra.mxu0 %v9408_v43  ;;  %1283 = vmatpush1.bf16.msra.mxu1 %v9410_v44 }
 0x124   :  { %1243 = vmatprep.subr.bf16.mxu0 %v9414_v48  ;;  %1284 = vmatprep.subr.bf16.mxu1 %v9416_v49 }
 0x127   :  { %1244 = vmatpush1.bf16.msra.mxu0 %v9420_v54  ;;  %1285 = vmatpush1.bf16.msra.mxu1 %v9422_v55 }
 0x128   :  { %1245 = vmatprep.subr.bf16.mxu0 %v9426_v56  ;;  %1286 = vmatprep.subr.bf16.mxu1 %v9428_v57 }
 0x12b   :  { %1246 = vmatpush1.bf16.msra.mxu0 %v9432_v63  ;;  %1287 = vmatpush1.bf16.msra.mxu1 %v9434_v0 }
 0x12c   :  { %1247 = vmatprep.subr.bf16.mxu0 %v9438_v2  ;;  %1288 = vmatprep.subr.bf16.mxu1 %v9440_v3 }
 0x12f   :  { %1248 = vmatpush1.bf16.msra.mxu0 %v9444_v16  ;;  %1289 = vmatpush1.bf16.msra.mxu1 %v9446_v24 }
 0x130   :  { %1249 = vmatprep.subr.bf16.mxu0 %v9450_v37  ;;  %1290 = vmatprep.subr.bf16.mxu1 %v9452_v39  ;;  %v466_v39 = vld [vmem:[#allocation7 + $0x278] sm:$0xff] }
 0x131   :  { %v9488_v51 = vcombine.high %v462_v26, %v466_v39  ;;  %v9494_v19 = vcombine.low %v462_v26, %v466_v39 }
 0x133   :  { %1250 = vmatpush1.bf16.msra.mxu0 %v9456_v52  ;;  %1291 = vmatpush1.bf16.msra.mxu1 %v9458_v53  ;;  %11763 = vst [vmem:[#allocation26_spill] sm:$0xff] %v9488_v51  ;;  %v470_v53 = vld [vmem:[#allocation7 + $0x298] sm:$0xff]  ;;  %11765 = vst [vmem:[#allocation28_spill] sm:$0xff] %v9494_v19 }
 0x134   :  { %1251 = vmatprep.subr.bf16.mxu0 %v9462_v58  ;;  %1292 = vmatprep.subr.bf16.mxu1 %v9464_v60  ;;  %v469_v60 = vld [vmem:[#allocation7 + $0x290] sm:$0xff]  ;;  %v474_v52 = vld [vmem:[#allocation7 + $0x2b8] sm:$0xff] }
 0x135   :  { %v473_v58 = vld [vmem:[#allocation7 + $0x2b0] sm:$0xff]  ;;  %v9500_v62 = vcombine.high %v470_v53, %v474_v52  ;;  %v9506_v26 = vcombine.low %v470_v53, %v474_v52 }
 0x136   :  { %v9498_v36 = vcombine.high %v469_v60, %v473_v58  ;;  %v9504_v28 = vcombine.low %v469_v60, %v473_v58 }
 0x137   :  { %1252 = vmatpush1.bf16.msra.mxu0 %v9468_v5  ;;  %1293 = vmatpush1.bf16.msra.mxu1 %v9470_v6  ;;  %11767 = vst [vmem:[#allocation30_spill] sm:$0xff] %v9500_v62  ;;  %v478_v6 = vld [vmem:[#allocation7 + $0x2d8] sm:$0xff]  ;;  %11769 = vst [vmem:[#allocation32_spill] sm:$0xff] %v9506_v26 }
 0x138   :  { %1253 = vmatprep.subr.bf16.mxu0 %v9474_v11  ;;  %1294 = vmatprep.subr.bf16.mxu1 %v9476_v15  ;;  %11766 = vst [vmem:[#allocation29_spill] sm:$0xff] %v9498_v36  ;;  %v477_v15 = vld [vmem:[#allocation7 + $0x2d0] sm:$0xff]  ;;  %v482_v5 = vld [vmem:[#allocation7 + $0x2f8] sm:$0xff]  ;;  %11768 = vst [vmem:[#allocation31_spill] sm:$0xff] %v9504_v28 }
 0x139   :  { %v481_v11 = vld [vmem:[#allocation7 + $0x2f0] sm:$0xff]  ;;  %v9512_v39 = vcombine.high %v478_v6, %v482_v5  ;;  %v9518_v52 = vcombine.low %v478_v6, %v482_v5 }
 0x13a   :  { %v9510_v29 = vcombine.high %v477_v15, %v481_v11  ;;  %v9516_v58 = vcombine.low %v477_v15, %v481_v11 }
 0x13b   :  { %1254 = vmatpush1.bf16.msra.mxu0 %v9480_v40  ;;  %1295 = vmatpush1.bf16.msra.mxu1 %v9482_v42  ;;  %11771 = vst [vmem:[#allocation34_spill] sm:$0xff] %v9512_v39  ;;  %v486_v42 = vld [vmem:[#allocation7 + $0x318] sm:$0xff]  ;;  %11773 = vst [vmem:[#allocation36_spill] sm:$0xff] %v9518_v52 }
 0x13c   :  { %1255 = vmatprep.subr.bf16.mxu0 %v9486_v50  ;;  %1296 = vmatprep.subr.bf16.mxu1 %v9488_v51  ;;  %11770 = vst [vmem:[#allocation33_spill] sm:$0xff] %v9510_v29  ;;  %v485_v51 = vld [vmem:[#allocation7 + $0x310] sm:$0xff]  ;;  %v490_v40 = vld [vmem:[#allocation7 + $0x338] sm:$0xff]  ;;  %11772 = vst [vmem:[#allocation35_spill] sm:$0xff] %v9516_v58 }
 0x13d   :  { %v489_v50 = vld [vmem:[#allocation7 + $0x330] sm:$0xff]  ;;  %v9524_v60 = vcombine.high %v486_v42, %v490_v40  ;;  %v9530_v5 = vcombine.low %v486_v42, %v490_v40 }
 0x13e   :  { %v9522_v53 = vcombine.high %v485_v51, %v489_v50  ;;  %v9528_v11 = vcombine.low %v485_v51, %v489_v50 }
 0x13f   :  { %1256 = vmatpush1.bf16.msra.mxu0 %v9492_v61  ;;  %1297 = vmatpush1.bf16.msra.mxu1 %v9494_v19  ;;  %11775 = vst [vmem:[#allocation38_spill] sm:$0xff] %v9524_v60  ;;  %v494_v19 = vld [vmem:[#allocation7 + $0x358] sm:$0xff]  ;;  %11776 = vst [vmem:[#allocation39_spill] sm:$0xff] %v9530_v5 }
 0x140   :  { %1257 = vmatprep.subr.bf16.mxu0 %v9498_v36  ;;  %1298 = vmatprep.subr.bf16.mxu1 %v9500_v62  ;;  %11774 = vst [vmem:[#allocation37_spill] sm:$0xff] %v9522_v53  ;;  %v493_v62 = vld [vmem:[#allocation7 + $0x350] sm:$0xff]  ;;  %v498_v61 = vld [vmem:[#allocation7 + $0x378] sm:$0xff] }
 0x141   :  { %v497_v36 = vld [vmem:[#allocation7 + $0x370] sm:$0xff]  ;;  %v9536_v15 = vcombine.high %v494_v19, %v498_v61  ;;  %v9542_v40 = vcombine.low %v494_v19, %v498_v61 }
 0x142   :  { %v9534_v6 = vcombine.high %v493_v62, %v497_v36  ;;  %v9540_v50 = vcombine.low %v493_v62, %v497_v36 }
 0x143   :  { %1258 = vmatpush1.bf16.msra.mxu0 %v9504_v28  ;;  %1299 = vmatpush1.bf16.msra.mxu1 %v9506_v26  ;;  %11778 = vst [vmem:[#allocation41_spill] sm:$0xff] %v9536_v15  ;;  %v502_v26 = vld [vmem:[#allocation7 + $0x398] sm:$0xff]  ;;  %11780 = vst [vmem:[#allocation43_spill] sm:$0xff] %v9542_v40 }
 0x144   :  { %1259 = vmatprep.subr.bf16.mxu0 %v9510_v29  ;;  %1300 = vmatprep.subr.bf16.mxu1 %v9512_v39  ;;  %11777 = vst [vmem:[#allocation40_spill] sm:$0xff] %v9534_v6  ;;  %v501_v39 = vld [vmem:[#allocation7 + $0x390] sm:$0xff]  ;;  %v506_v28 = vld [vmem:[#allocation7 + $0x3b8] sm:$0xff]  ;;  %11779 = vst [vmem:[#allocation42_spill] sm:$0xff] %v9540_v50 }
 0x145   :  { %v505_v29 = vld [vmem:[#allocation7 + $0x3b0] sm:$0xff]  ;;  %v9548_v51 = vcombine.high %v502_v26, %v506_v28  ;;  %v9554_v61 = vcombine.low %v502_v26, %v506_v28  ;;  %v9572_v26 = vpop.f32.mrb[4].mxu1 }
 0x146   :  { %v9546_v42 = vcombine.high %v501_v39, %v505_v29  ;;  %v9552_v36 = vcombine.low %v501_v39, %v505_v29  ;;  %11791 = vst [vmem:[#allocation54_spill] sm:$0xff] %v9572_v26 }
 0x147   :  { %1260 = vmatpush1.bf16.msra.mxu0 %v9516_v58  ;;  %1301 = vmatpush1.bf16.msra.mxu1 %v9518_v52  ;;  %11782 = vst [vmem:[#allocation45_spill] sm:$0xff] %v9548_v51  ;;  %v510_v52 = vld [vmem:[#allocation7 + $0x3d8] sm:$0xff]  ;;  %11784 = vst [vmem:[#allocation47_spill] sm:$0xff] %v9554_v61 }
 0x148   :  { %1261 = vmatprep.subr.bf16.mxu0 %v9522_v53  ;;  %1302 = vmatprep.subr.bf16.mxu1 %v9524_v60  ;;  %11781 = vst [vmem:[#allocation44_spill] sm:$0xff] %v9546_v42  ;;  %v509_v60 = vld [vmem:[#allocation7 + $0x3d0] sm:$0xff]  ;;  %v514_v58 = vld [vmem:[#allocation7 + $0x3f8] sm:$0xff]  ;;  %11783 = vst [vmem:[#allocation46_spill] sm:$0xff] %v9552_v36 }
 0x149   :  { %v513_v53 = vld [vmem:[#allocation7 + $0x3f0] sm:$0xff]  ;;  %v9560_v62 = vcombine.high %v510_v52, %v514_v58  ;;  %v9568_v29 = vcombine.low %v510_v52, %v514_v58 }
 0x14a   :  { %v9558_v19 = vcombine.high %v509_v60, %v513_v53 }
 0x14b   :  { %1262 = vmatpush1.bf16.msra.mxu0 %v9528_v11  ;;  %1303 = vmatpush1.bf16.msra.mxu1 %v9530_v5  ;;  %11786 = vst [vmem:[#allocation49_spill] sm:$0xff] %v9560_v62  ;;  %11789 = vst [vmem:[#allocation52_spill] sm:$0xff] %v9568_v29  ;;  %v1405_v5 = vld [vmem:[#allocation7 + $0xc8] sm:$0xff] }
 0x14c   :  { %1263 = vmatprep.subr.bf16.mxu0 %v9534_v6  ;;  %1304 = vmatprep.subr.bf16.mxu1 %v9536_v15  ;;  %11785 = vst [vmem:[#allocation48_spill] sm:$0xff] %v9558_v19  ;;  %v9562_v15 = vpop.f32.mrb[4].mxu0  ;;  %v1408_v6 = vld [vmem:[#allocation7 + $0xe0] sm:$0xff] }
 0x14d   :  { %11787 = vst [vmem:[#allocation50_spill] sm:$0xff] %v9562_v15  ;;  %v9570_v28 = vpop.f32.mrb[5].mxu0 }
 0x14e   :  { %11790 = vst [vmem:[#allocation53_spill] sm:$0xff] %v9570_v28  ;;  %v9576_v39 = vpop.f32.mrb[6].mxu0 }
 0x14f   :  { %1264 = vmatpush1.bf16.msra.mxu0 %v9540_v50  ;;  %1305 = vmatpush1.bf16.msra.mxu1 %v9542_v40  ;;  %v9566_v50 = vcombine.low %v509_v60, %v513_v53  ;;  %11792 = vst [vmem:[#allocation55_spill] sm:$0xff] %v9576_v39  ;;  %v9580_v15 = vpop.f32.mrb[7].mxu0  ;;  %v1404_v40 = vld [vmem:[#allocation7 + $0xc0] sm:$0xff] }
 0x150   :  { %1265 = vmatprep.subr.bf16.mxu0 %v9546_v42  ;;  %1306 = vmatprep.subr.bf16.mxu1 %v9548_v51  ;;  %v9578_v51 = vpop.f32.mrb[5].mxu1  ;;  %11794 = vst [vmem:[#allocation57_spill] sm:$0xff] %v9580_v15  ;;  %v9590_v58 = vpop.f32.mrb[8].mxu0  ;;  %v1397_v42 = vld [vmem:[#allocation7 + $0x88] sm:$0xff] }
 0x151   :  { %11788 = vst [vmem:[#allocation51_spill] sm:$0xff] %v9566_v50  ;;  %11793 = vst [vmem:[#allocation56_spill] sm:$0xff] %v9578_v51  ;;  %v9592_v52 = vpop.f32.mrb[9].mxu0 }
 0x152   :  { %11797 = vst [vmem:[#allocation60_spill] sm:$0xff] %v9590_v58  ;;  %11798 = vst [vmem:[#allocation61_spill] sm:$0xff] %v9592_v52  ;;  %v9596_v39 = vpop.f32.mrb[10].mxu0 }
 0x153   :  { %1266 = vmatpush1.bf16.msra.mxu0 %v9552_v36  ;;  %1307 = vmatpush1.bf16.msra.mxu1 %v9554_v61  ;;  %v9582_v36 = vpop.f32.mrb[6].mxu1  ;;  %11800 = vst [vmem:[#allocation63_spill] sm:$0xff] %v9596_v39  ;;  %v1400_v61 = vld [vmem:[#allocation7 + $0xa0] sm:$0xff] }
 0x154   :  { %1267 = vmatprep.subr.bf16.mxu0 %v9558_v19  ;;  %1308 = vmatprep.subr.bf16.mxu1 %v9560_v62  ;;  %11795 = vst [vmem:[#allocation58_spill] sm:$0xff] %v9582_v36  ;;  %v9584_v53 = vpop.f32.mrb[7].mxu1  ;;  %v9600_v36 = vpop.f32.mrb[11].mxu0  ;;  %v1396_v19 = vld [vmem:[#allocation7 + $0x80] sm:$0xff] }
 0x155   :  { %11796 = vst [vmem:[#allocation59_spill] sm:$0xff] %v9584_v53  ;;  %v9594_v60 = vpop.f32.mrb[8].mxu1  ;;  %11802 = vst [vmem:[#allocation65_spill] sm:$0xff] %v9600_v36  ;;  %v9606_v28 = vpop.f32.mrb[12].mxu0  ;;  %v1380_v36 = vld [vmem:[#allocation7] sm:$0xff] }
 0x156   :  { %11799 = vst [vmem:[#allocation62_spill] sm:$0xff] %v9594_v60  ;;  %v9598_v15 = vpop.f32.mrb[9].mxu1  ;;  %11805 = vst [vmem:[#allocation68_spill] sm:$0xff] %v9606_v28  ;;  %v9608_v26 = vpop.f32.mrb[13].mxu0 }
 0x157   :  { %1268 = vmatpush1.bf16.msra.mxu0 %v9566_v50  ;;  %1309 = vmatpush1.bf16.msra.mxu1 %v9568_v29  ;;  %11801 = vst [vmem:[#allocation64_spill] sm:$0xff] %v9598_v15  ;;  %v9602_v53 = vpop.f32.mrb[10].mxu1  ;;  %11806 = vst [vmem:[#allocation69_spill] sm:$0xff] %v9608_v26  ;;  %v1381_v29 = vld [vmem:[#allocation7 + $0x8] sm:$0xff]  ;;  %v1388_v50 = vld [vmem:[#allocation7 + $0x40] sm:$0xff] }
 0x158   :  { %11803 = vst [vmem:[#allocation66_spill] sm:$0xff] %v9602_v53  ;;  %v9604_v51 = vpop.f32.mrb[11].mxu1  ;;  %v1384_v53 = vld [vmem:[#allocation7 + $0x20] sm:$0xff]  ;;  %v1385_v26 = vld [vmem:[#allocation7 + $0x28] sm:$0xff] }
 0x159   :  { %11804 = vst [vmem:[#allocation67_spill] sm:$0xff] %v9604_v51  ;;  %v9612_v58 = vpop.f32.mrb[12].mxu1  ;;  %v9622_v51 = vcombine.low %v1380_v36, %v1384_v53  ;;  %v9624_v28 = vcombine.high %v1380_v36, %v1384_v53  ;;  %v9626_v62 = vcombine.low %v1381_v29, %v1385_v26  ;;  %v1401_v36 = vld [vmem:[#allocation7 + $0xa8] sm:$0xff] }
 0x15a   :  { %1270 = vmatmul.mubr.bf16.vlgmr.msra.gmra.mrb[20].mxu0 %v9384_v7  ;;  %1311 = vmatmul.mubr.bf16.vlgmr.msra.gmra.mrb[20].mxu1 %v9384_v7  ;;  %v9610_v7 = vpop.f32.mrb[14].mxu0  ;;  %11808 = vst [vmem:[#allocation71_spill] sm:$0xff] %v9612_v58  ;;  %v9616_v60 = vpop.f32.mrb[13].mxu1  ;;  %v9628_v58 = vcombine.high %v1381_v29, %v1385_v26  ;;  %v9643_v26 = vcombine.high %v1396_v19, %v1400_v61 }
 0x15b   :  { %11807 = vst [vmem:[#allocation70_spill] sm:$0xff] %v9610_v7  ;;  %v9614_v52 = vpop.f32.mrb[15].mxu0  ;;  %11810 = vst [vmem:[#allocation73_spill] sm:$0xff] %v9616_v60  ;;  %v9618_v39 = vpop.f32.mrb[14].mxu1  ;;  %v1392_v7 = vld [vmem:[#allocation7 + $0x60] sm:$0xff]  ;;  %v1389_v60 = vld [vmem:[#allocation7 + $0x48] sm:$0xff]  ;;  %2148 = vmatprep.subr.bf16.mxu0 %v9624_v28 }
 0x15c   :  { %11809 = vst [vmem:[#allocation72_spill] sm:$0xff] %v9614_v52  ;;  %11811 = vst [vmem:[#allocation74_spill] sm:$0xff] %v9618_v39  ;;  %v9620_v15 = vpop.f32.mrb[15].mxu1  ;;  %v9630_v52 = vcombine.high %v1388_v50, %v1392_v7  ;;  %v1393_v39 = vld [vmem:[#allocation7 + $0x68] sm:$0xff]  ;;  %2189 = vmatprep.subr.bf16.mxu1 %v9628_v58  ;;  %2149 = vmatpush1.bf16.msra.mxu0 %v9622_v51  ;;  %v9637_v53 = vcombine.low %v1388_v50, %v1392_v7 }
 0x15d   :  { %11812 = vst [vmem:[#allocation75_spill] sm:$0xff] %v9620_v15  ;;  %11813 = vst [vmem:[#allocation76_spill] sm:$0xff] %v9622_v51  ;;  %v9633_v15 = vcombine.high %v1389_v60, %v1393_v39  ;;  %2190 = vmatpush1.bf16.msra.mxu1 %v9626_v62  ;;  %v9641_v29 = vcombine.low %v1389_v60, %v1393_v39  ;;  %v9649_v50 = vcombine.low %v1396_v19, %v1400_v61  ;;  %v1417_v51 = vld [vmem:[#allocation7 + $0x128] sm:$0xff] }
 0x15e   :  { %11814 = vst [vmem:[#allocation77_spill] sm:$0xff] %v9624_v28  ;;  %11815 = vst [vmem:[#allocation78_spill] sm:$0xff] %v9626_v62  ;;  %2150 = vmatprep.subr.bf16.mxu0 %v9630_v52  ;;  %v9646_v28 = vcombine.high %v1397_v42, %v1401_v36  ;;  %v9653_v39 = vcombine.low %v1397_v42, %v1401_v36  ;;  %v9655_v60 = vcombine.high %v1404_v40, %v1408_v6  ;;  %v1413_v62 = vld [vmem:[#allocation7 + $0x108] sm:$0xff] }
 0x15f   :  { %11816 = vst [vmem:[#allocation79_spill] sm:$0xff] %v9628_v58  ;;  %11817 = vst [vmem:[#allocation80_spill] sm:$0xff] %v9630_v52  ;;  %2191 = vmatprep.subr.bf16.mxu1 %v9633_v15  ;;  %v1409_v58 = vld [vmem:[#allocation7 + $0xe8] sm:$0xff]  ;;  %v1416_v52 = vld [vmem:[#allocation7 + $0x120] sm:$0xff]  ;;  %v9661_v61 = vcombine.low %v1404_v40, %v1408_v6  ;;  %v9670_v36 = vcombine.high %v1413_v62, %v1417_v51 }
 0x160   :  { %11818 = vst [vmem:[#allocation81_spill] sm:$0xff] %v9633_v15  ;;  %11819 = vst [vmem:[#allocation82_spill] sm:$0xff] %v9637_v53  ;;  %2151 = vmatpush1.bf16.msra.mxu0 %v9637_v53  ;;  %v9658_v7 = vcombine.high %v1405_v5, %v1409_v58  ;;  %v1412_v15 = vld [vmem:[#allocation7 + $0x100] sm:$0xff]  ;;  %v9665_v42 = vcombine.low %v1405_v5, %v1409_v58  ;;  %v1425_v53 = vld [vmem:[#allocation7 + $0x168] sm:$0xff]  ;;  %v9677_v5 = vcombine.low %v1413_v62, %v1417_v51 }
 0x161   :  { %11820 = vst [vmem:[#allocation83_spill] sm:$0xff] %v9641_v29  ;;  %11821 = vst [vmem:[#allocation84_spill] sm:$0xff] %v9643_v26  ;;  %2192 = vmatpush1.bf16.msra.mxu1 %v9641_v29  ;;  %2152 = vmatprep.subr.bf16.mxu0 %v9643_v26  ;;  %v9667_v19 = vcombine.high %v1412_v15, %v1416_v52  ;;  %v1424_v26 = vld [vmem:[#allocation7 + $0x160] sm:$0xff]  ;;  %v1421_v29 = vld [vmem:[#allocation7 + $0x148] sm:$0xff]  ;;  %v9673_v6 = vcombine.low %v1412_v15, %v1416_v52 }
 0x162   :  { %11822 = vst [vmem:[#allocation85_spill] sm:$0xff] %v9646_v28  ;;  %2193 = vmatprep.subr.bf16.mxu1 %v9646_v28  ;;  %11823 = vst [vmem:[#allocation86_spill] sm:$0xff] %v9658_v7  ;;  %v1420_v28 = vld [vmem:[#allocation7 + $0x140] sm:$0xff]  ;;  %v9682_v58 = vcombine.high %v1421_v29, %v1425_v53  ;;  %v9689_v15 = vcombine.low %v1421_v29, %v1425_v53  ;;  %v1429_v52 = vld [vmem:[#allocation7 + $0x188] sm:$0xff] }
 0x163   :  { %11824 = vst [vmem:[#allocation87_spill] sm:$0xff] %v9670_v36  ;;  %11825 = vst [vmem:[#allocation88_spill] sm:$0xff] %v9673_v6  ;;  %v9679_v40 = vcombine.high %v1420_v28, %v1424_v26  ;;  %v1428_v51 = vld [vmem:[#allocation7 + $0x180] sm:$0xff] }
 0x164   :  { %2153 = vmatpush1.bf16.msra.mxu0 %v9649_v50  ;;  %11826 = vst [vmem:[#allocation89_spill] sm:$0xff] %v9677_v5  ;;  %11827 = vst [vmem:[#allocation90_spill] sm:$0xff] %v9682_v58  ;;  %v1432_v62 = vld [vmem:[#allocation7 + $0x1a0] sm:$0xff] }
 0x165   :  { %2194 = vmatpush1.bf16.msra.mxu1 %v9653_v39  ;;  %2154 = vmatprep.subr.bf16.mxu0 %v9655_v60  ;;  %11829 = vst [vmem:[#allocation92_spill] sm:$0xff] %v9689_v15  ;;  %v1436_v53 = vld [vmem:[#allocation7 + $0x1c0] sm:$0xff] }
 0x166   :  { %2195 = vmatprep.subr.bf16.mxu1 %v9658_v7  ;;  %v9685_v7 = vcombine.low %v1420_v28, %v1424_v26  ;;  %v9696_v28 = vcombine.low %v1428_v51, %v1432_v62  ;;  %v1440_v29 = vld [vmem:[#allocation7 + $0x1e0] sm:$0xff] }
 0x168   :  { %2155 = vmatpush1.bf16.msra.mxu0 %v9661_v61  ;;  %11828 = vst [vmem:[#allocation91_spill] sm:$0xff] %v9685_v7  ;;  %11831 = vst [vmem:[#allocation94_spill] sm:$0xff] %v9696_v28 }
 0x169   :  { %2196 = vmatpush1.bf16.msra.mxu1 %v9665_v42  ;;  %2156 = vmatprep.subr.bf16.mxu0 %v9667_v19 }
 0x16a   :  { %2197 = vmatprep.subr.bf16.mxu1 %v9670_v36  ;;  %v9694_v36 = vcombine.high %v1428_v51, %v1432_v62  ;;  %v9708_v51 = vcombine.low %v1436_v53, %v1440_v29 }
 0x16c   :  { %2157 = vmatpush1.bf16.msra.mxu0 %v9673_v6  ;;  %11830 = vst [vmem:[#allocation93_spill] sm:$0xff] %v9694_v36  ;;  %v1433_v6 = vld [vmem:[#allocation7 + $0x1a8] sm:$0xff]  ;;  %11835 = vst [vmem:[#allocation98_spill] sm:$0xff] %v9708_v51 }
 0x16d   :  { %2198 = vmatpush1.bf16.msra.mxu1 %v9677_v5  ;;  %2158 = vmatprep.subr.bf16.mxu0 %v9679_v40  ;;  %v9698_v26 = vcombine.low %v1429_v52, %v1433_v6  ;;  %v9700_v5 = vcombine.high %v1429_v52, %v1433_v6  ;;  %v1444_v52 = vld [vmem:[#allocation7 + $0x200] sm:$0xff] }
 0x16e   :  { %2199 = vmatprep.subr.bf16.mxu1 %v9682_v58  ;;  %v1441_v58 = vld [vmem:[#allocation7 + $0x1e8] sm:$0xff] }
 0x16f   :  { %11832 = vst [vmem:[#allocation95_spill] sm:$0xff] %v9698_v26  ;;  %11833 = vst [vmem:[#allocation96_spill] sm:$0xff] %v9700_v5 }
 0x170   :  { %2159 = vmatpush1.bf16.msra.mxu0 %v9685_v7  ;;  %v9706_v7 = vcombine.high %v1436_v53, %v1440_v29 }
 0x171   :  { %2200 = vmatpush1.bf16.msra.mxu1 %v9689_v15  ;;  %2160 = vmatprep.subr.bf16.mxu0 %v9694_v36  ;;  %v1437_v15 = vld [vmem:[#allocation7 + $0x1c8] sm:$0xff] }
 0x172   :  { %2201 = vmatprep.subr.bf16.mxu1 %v9700_v5  ;;  %11834 = vst [vmem:[#allocation97_spill] sm:$0xff] %v9706_v7  ;;  %v9710_v62 = vcombine.low %v1437_v15, %v1441_v58  ;;  %v9712_v6 = vcombine.high %v1437_v15, %v1441_v58  ;;  %v1445_v5 = vld [vmem:[#allocation7 + $0x208] sm:$0xff]  ;;  %v1452_v15 = vld [vmem:[#allocation7 + $0x240] sm:$0xff] }
 0x173   :  { %v1449_v36 = vld [vmem:[#allocation7 + $0x228] sm:$0xff] }
 0x174   :  { %2161 = vmatpush1.bf16.msra.mxu0 %v9696_v28  ;;  %11836 = vst [vmem:[#allocation99_spill] sm:$0xff] %v9710_v62  ;;  %11837 = vst [vmem:[#allocation100_spill] sm:$0xff] %v9712_v6  ;;  %v1448_v28 = vld [vmem:[#allocation7 + $0x220] sm:$0xff]  ;;  %v9722_v29 = vcombine.low %v1445_v5, %v1449_v36  ;;  %v9724_v58 = vcombine.high %v1445_v5, %v1449_v36 }
 0x175   :  { %2202 = vmatpush1.bf16.msra.mxu1 %v9698_v26  ;;  %2162 = vmatprep.subr.bf16.mxu0 %v9706_v7  ;;  %v9718_v26 = vcombine.high %v1444_v52, %v1448_v28  ;;  %v9720_v53 = vcombine.low %v1444_v52, %v1448_v28  ;;  %v1457_v7 = vld [vmem:[#allocation7 + $0x268] sm:$0xff]  ;;  %v1460_v5 = vld [vmem:[#allocation7 + $0x280] sm:$0xff] }
 0x176   :  { %2203 = vmatprep.subr.bf16.mxu1 %v9712_v6  ;;  %11840 = vst [vmem:[#allocation103_spill] sm:$0xff] %v9722_v29  ;;  %11841 = vst [vmem:[#allocation104_spill] sm:$0xff] %v9724_v58  ;;  %v1453_v6 = vld [vmem:[#allocation7 + $0x248] sm:$0xff] }
 0x177   :  { %11838 = vst [vmem:[#allocation101_spill] sm:$0xff] %v9718_v26  ;;  %11839 = vst [vmem:[#allocation102_spill] sm:$0xff] %v9720_v53  ;;  %v9734_v52 = vcombine.low %v1453_v6, %v1457_v7  ;;  %v9736_v36 = vcombine.high %v1453_v6, %v1457_v7  ;;  %v1468_v6 = vld [vmem:[#allocation7 + $0x2c0] sm:$0xff] }
 0x178   :  { %2163 = vmatpush1.bf16.msra.mxu0 %v9708_v51  ;;  %v1456_v51 = vld [vmem:[#allocation7 + $0x260] sm:$0xff] }
 0x179   :  { %2204 = vmatpush1.bf16.msra.mxu1 %v9710_v62  ;;  %2164 = vmatprep.subr.bf16.mxu0 %v9718_v26  ;;  %v9730_v62 = vcombine.high %v1452_v15, %v1456_v51  ;;  %v9732_v28 = vcombine.low %v1452_v15, %v1456_v51  ;;  %11844 = vst [vmem:[#allocation107_spill] sm:$0xff] %v9734_v52  ;;  %11845 = vst [vmem:[#allocation108_spill] sm:$0xff] %v9736_v36  ;;  %v1465_v26 = vld [vmem:[#allocation7 + $0x2a8] sm:$0xff] }
 0x17a   :  { %2205 = vmatprep.subr.bf16.mxu1 %v9724_v58  ;;  %v1461_v58 = vld [vmem:[#allocation7 + $0x288] sm:$0xff] }
 0x17b   :  { %11842 = vst [vmem:[#allocation105_spill] sm:$0xff] %v9730_v62  ;;  %11843 = vst [vmem:[#allocation106_spill] sm:$0xff] %v9732_v28  ;;  %v9746_v15 = vcombine.low %v1461_v58, %v1465_v26  ;;  %v9748_v7 = vcombine.high %v1461_v58, %v1465_v26  ;;  %v1476_v58 = vld [vmem:[#allocation7 + $0x300] sm:$0xff] }
 0x17c   :  { %2165 = vmatpush1.bf16.msra.mxu0 %v9720_v53  ;;  %v1464_v53 = vld [vmem:[#allocation7 + $0x2a0] sm:$0xff] }
 0x17d   :  { %2206 = vmatpush1.bf16.msra.mxu1 %v9722_v29  ;;  %2166 = vmatprep.subr.bf16.mxu0 %v9730_v62  ;;  %v9742_v29 = vcombine.high %v1460_v5, %v1464_v53  ;;  %v9744_v51 = vcombine.low %v1460_v5, %v1464_v53  ;;  %11848 = vst [vmem:[#allocation111_spill] sm:$0xff] %v9746_v15  ;;  %11849 = vst [vmem:[#allocation112_spill] sm:$0xff] %v9748_v7  ;;  %v1473_v62 = vld [vmem:[#allocation7 + $0x2e8] sm:$0xff] }
 0x17e   :  { %2207 = vmatprep.subr.bf16.mxu1 %v9736_v36  ;;  %v1469_v36 = vld [vmem:[#allocation7 + $0x2c8] sm:$0xff] }
 0x17f   :  { %11846 = vst [vmem:[#allocation109_spill] sm:$0xff] %v9742_v29  ;;  %11847 = vst [vmem:[#allocation110_spill] sm:$0xff] %v9744_v51  ;;  %v9758_v5 = vcombine.low %v1469_v36, %v1473_v62  ;;  %v9760_v26 = vcombine.high %v1469_v36, %v1473_v62  ;;  %v1484_v36 = vld [vmem:[#allocation7 + $0x340] sm:$0xff] }
 0x180   :  { %2167 = vmatpush1.bf16.msra.mxu0 %v9732_v28  ;;  %v1472_v28 = vld [vmem:[#allocation7 + $0x2e0] sm:$0xff] }
 0x181   :  { %2208 = vmatpush1.bf16.msra.mxu1 %v9734_v52  ;;  %2168 = vmatprep.subr.bf16.mxu0 %v9742_v29  ;;  %v9754_v52 = vcombine.high %v1468_v6, %v1472_v28  ;;  %v9756_v53 = vcombine.low %v1468_v6, %v1472_v28  ;;  %11852 = vst [vmem:[#allocation115_spill] sm:$0xff] %v9758_v5  ;;  %11853 = vst [vmem:[#allocation116_spill] sm:$0xff] %v9760_v26  ;;  %v1481_v29 = vld [vmem:[#allocation7 + $0x328] sm:$0xff] }
 0x182   :  { %2209 = vmatprep.subr.bf16.mxu1 %v9748_v7  ;;  %v1477_v7 = vld [vmem:[#allocation7 + $0x308] sm:$0xff] }
 0x183   :  { %11850 = vst [vmem:[#allocation113_spill] sm:$0xff] %v9754_v52  ;;  %11851 = vst [vmem:[#allocation114_spill] sm:$0xff] %v9756_v53  ;;  %v9770_v6 = vcombine.low %v1477_v7, %v1481_v29  ;;  %v9772_v62 = vcombine.high %v1477_v7, %v1481_v29 }
 0x184   :  { %2169 = vmatpush1.bf16.msra.mxu0 %v9744_v51  ;;  %v1480_v51 = vld [vmem:[#allocation7 + $0x320] sm:$0xff] }
 0x185   :  { %2210 = vmatpush1.bf16.msra.mxu1 %v9746_v15  ;;  %2170 = vmatprep.subr.bf16.mxu0 %v9754_v52  ;;  %v9766_v15 = vcombine.high %v1476_v58, %v1480_v51  ;;  %v9768_v28 = vcombine.low %v1476_v58, %v1480_v51  ;;  %v1489_v51 = vld [vmem:[#allocation7 + $0x368] sm:$0xff] }
 0x186   :  { %2211 = vmatprep.subr.bf16.mxu1 %v9760_v26  ;;  %v1485_v26 = vld [vmem:[#allocation7 + $0x348] sm:$0xff] }
 0x187   :  { %v9782_v58 = vcombine.low %v1485_v26, %v1489_v51  ;;  %v9784_v29 = vcombine.high %v1485_v26, %v1489_v51 }
 0x188   :  { %2171 = vmatpush1.bf16.msra.mxu0 %v9756_v53  ;;  %v1488_v53 = vld [vmem:[#allocation7 + $0x360] sm:$0xff] }
 0x189   :  { %2212 = vmatpush1.bf16.msra.mxu1 %v9758_v5  ;;  %2172 = vmatprep.subr.bf16.mxu0 %v9766_v15  ;;  %v9778_v5 = vcombine.low %v1484_v36, %v1488_v53  ;;  %v9780_v52 = vcombine.high %v1484_v36, %v1488_v53 }
 0x18a   :  { %2213 = vmatprep.subr.bf16.mxu1 %v9772_v62 }
 0x18c   :  { %2173 = vmatpush1.bf16.msra.mxu0 %v9768_v28 }
 0x18d   :  { %2214 = vmatpush1.bf16.msra.mxu1 %v9770_v6  ;;  %2174 = vmatprep.subr.bf16.mxu0 %v9780_v52 }
 0x18e   :  { %2215 = vmatprep.subr.bf16.mxu1 %v9784_v29 }
 0x190   :  { %2175 = vmatpush1.bf16.msra.mxu0 %v9778_v5 }
 0x191   :  { %2216 = vmatpush1.bf16.msra.mxu1 %v9782_v58  ;;  %2176 = vmatprep.subr.bf16.mxu0 %v9306_v1  ;;  %v197_v1 = vadd.f32 %v9367_v38, %v9354_v30 }
 0x192   :  { %2217 = vmatprep.subr.bf16.mxu1 %v9308_v4  ;;  %v270_v4 = vadd.f32 %v9372_v45, %v9376_v46 }
 0x194   :  { %2177 = vmatpush1.bf16.msra.mxu0 %v9310_v8  ;;  %v199_v8 = vadd.f32 %v9369_v41, %v9358_v31 }
 0x195   :  { %2218 = vmatpush1.bf16.msra.mxu1 %v9313_v12  ;;  %2178 = vmatprep.subr.bf16.mxu0 %v9315_v13  ;;  %v272_v12 = vadd.f32 %v9378_v47, %v9362_v33 }
 0x196   :  { %2219 = vmatprep.subr.bf16.mxu1 %v9321_v17 }
 0x198   :  { %2179 = vmatpush1.bf16.msra.mxu0 %v9328_v20 }
 0x199   :  { %2220 = vmatpush1.bf16.msra.mxu1 %v9333_v21  ;;  %2230 = vmatprep.subr.bf16.mxu0 %v9335_v22 }
 0x19a   :  { %2271 = vmatprep.subr.bf16.mxu1 %v9338_v23 }
 0x1ed   :  { %v1189_v13 = vpop.f32.mrb[16].mxu0  ;;  %v1230_v17 = vpop.f32.mrb[16].mxu1 }
 0x1ee   :  { %v1349_v20 = vadd.f32 %v1189_v13, %v197_v1  ;;  %v1351_v21 = vadd.f32 %v1230_v17, %v270_v4  ;;  %v1191_v7 = vpop.f32.mrb[17].mxu0  ;;  %v1232_v22 = vpop.f32.mrb[17].mxu1  ;;  %v11854_v17 = vsub.s32 0, %v9344_v25 }
 0x1ef   :  { %v1350_v53 = vadd.f32 %v1191_v7, %v199_v8  ;;  %v1352_v23 = vadd.f32 %v1232_v22, %v272_v12  ;;  %v1193_v26 = vpop.f32.mrb[18].mxu0  ;;  %v1234_v36 = vpop.f32.mrb[18].mxu1  ;;  %v11856_v7 = vsub.s32 1, %v9344_v25 }
 0x1f0   :  { %v1354_v38 = vmul.f32 0.5, %v1349_v20  ;;  %v1194_v51 = vpop.f32.mrb[19].mxu0  ;;  %v1235_v30 = vpop.f32.mrb[19].mxu1 }
 0x1f1   :  { %v1355_v45 = vmul.f32 0.5, %v1350_v53  ;;  %v336_v30 = vld [vmem:[%s11457_s4] sm:$0xf] }
 0x1f2   :  { %9020 = vtanh.f32 %v1354_v38  ;;  %v9816_v20 = vrot.slane %v336_v30, %v11854_v17  ;;  %v9820_v22 = vrot.slane %v336_v30, %v11856_v7  ;;  %v1356_v7 = vmul.f32 0.5, %v1351_v21 }
 0x1f3   :  { %9022 = vtanh.f32 %v1355_v45 }
 0x1f4   :  { %9024 = vtanh.f32 %v1352_v23  ;;  %11855 = vst [vmem:[#allocation117_spill] sm:$0xff] %v9816_v20  ;;  %11857 = vst [vmem:[#allocation118_spill] sm:$0xff] %v9820_v22 }
 0x1fc   :  { %v9021_v41 = vpop.eup %9020 }
 0x1fd   :  { %v1360_v31 = vmul.f32 0.5, %v9021_v41  ;;  %v9023_v47 = vpop.eup %9022 }
 0x1fe   :  { %v1361_v46 = vmul.f32 0.5, %v9023_v47  ;;  %v9025_v1 = vpop.eup %9024 }
 0x1ff   :  { %v1363_v33 = vadd.f32 0.5, %v1360_v31 }
 0x200   :  { %v1364_v4 = vadd.f32 0.5, %v1361_v46 }
 0x201   :  { %v1368_v13 = vmul.f32 %v9025_v1, %v1363_v33 }
 0x202   :  { %v1367_v8 = vmul.f32 %v1364_v4, %v9381_v59  ;;  %v11858_v59 = vsub.s32 3, %v9344_v25 }
 0x204   :  { %v9809_v12 = vadd.f32 %v1368_v13, %v1367_v8  ;;  %v9825_v23 = vrot.slane %v336_v30, %v11858_v59  ;;  %v11860_v13 = vsub.s32 2, %v9344_v25 }
 0x206   :  { %11859 = vst [vmem:[#allocation119_spill] sm:$0xff] %v9825_v23  ;;  %v9831_v8 = vrot.slane %v336_v30, %v11860_v13 }
 0x208   :  { %11861 = vst [vmem:[#allocation120_spill] sm:$0xff] %v9831_v8 }
 0x22d   :  { %v1271_v31 = vpop.f32.mrb[20].mxu0  ;;  %v1312_v53 = vpop.f32.mrb[20].mxu1 }
 0x22e   :  { %v1319_v33 = vadd.f32 %v1271_v31, %v9816_v20  ;;  %v1273_v46 = vpop.f32.mrb[21].mxu0  ;;  %v1314_v26 = vpop.f32.mrb[21].mxu1  ;;  %v1321_v17 = vadd.f32 %v1312_v53, %v9831_v8 }
 0x22f   :  { %v1320_v36 = vadd.f32 %v1273_v46, %v9820_v22  ;;  %v1275_v38 = vpop.f32.mrb[22].mxu0  ;;  %v1316_v51 = vpop.f32.mrb[22].mxu1  ;;  %v1322_v4 = vadd.f32 %v1314_v26, %v9825_v23 }
 0x230   :  { %v1324_v45 = vmul.f32 0.5, %v1319_v33  ;;  %v1276_v41 = vpop.f32.mrb[23].mxu0  ;;  %v1317_v47 = vpop.f32.mrb[23].mxu1  ;;  %v1326_v31 = vmul.f32 0.5, %v1321_v17 }
 0x231   :  { %v1325_v1 = vmul.f32 0.5, %v1320_v36 }
 0x232   :  { %9026 = vtanh.f32 %v1324_v45 }
 0x233   :  { %9028 = vtanh.f32 %v1325_v1 }
 0x234   :  { %9030 = vtanh.f32 %v1322_v4 }
 0x235   :  { %9032 = vtanh.f32 %v1356_v7 }
 0x236   :  { %9034 = vtanh.f32 %v1326_v31 }
 0x237   :  { %9036 = vtanh.f32 %v9809_v12 }
 0x23c   :  { %v9027_v46 = vpop.eup %9026 }
 0x23d   :  { %v1330_v59 = vmul.f32 0.5, %v9027_v46  ;;  %v9029_v38 = vpop.eup %9028 }
 0x23e   :  { %v1331_v36 = vmul.f32 0.5, %v9029_v38  ;;  %v9031_v51 = vpop.eup %9030  ;;  %v11885_v38 = vld [vmem:[#allocation37_spill] sm:$0xff] }
 0x23f   :  { %v1333_v33 = vadd.f32 0.5, %v1330_v59  ;;  %v9033_v30 = vpop.eup %9032 }
 0x240   :  { %v1334_v45 = vadd.f32 0.5, %v1331_v36  ;;  %v9035_v21 = vpop.eup %9034  ;;  %v1362_v53 = vmul.f32 0.5, %v9033_v30  ;;  %v11887_v36 = vld [vmem:[#allocation39_spill] sm:$0xff]  ;;  %v11892_v30 = vld [vmem:[#allocation44_spill] sm:$0xff] }
 0x241   :  { %v1338_v26 = vmul.f32 %v9031_v51, %v1333_v33  ;;  %v1332_v47 = vmul.f32 0.5, %v9035_v21  ;;  %v9037_v1 = vpop.eup %9036  ;;  %v11886_v33 = vld [vmem:[#allocation38_spill] sm:$0xff]  ;;  %v11888_v51 = vld [vmem:[#allocation40_spill] sm:$0xff]  ;;  %v11893_v21 = vld [vmem:[#allocation45_spill] sm:$0xff] }
 0x242   :  { %v1337_v41 = vmul.f32 0.0, %v1334_v45  ;;  %v1365_v4 = vadd.f32 0.5, %v1362_v53  ;;  %v11889_v45 = vld [vmem:[#allocation41_spill] sm:$0xff]  ;;  %v11894_v53 = vld [vmem:[#allocation46_spill] sm:$0xff] }
 0x243   :  { %v1335_v13 = vadd.f32 0.5, %v1332_v47  ;;  %v11895_v47 = vld [vmem:[#allocation47_spill] sm:$0xff] }
 0x244   :  { %v9835_v25 = vadd.f32 %v1338_v26, %v1337_v41  ;;  %v1371_v7 = vmul.f32 %v9037_v1, %v1365_v4  ;;  %v11890_v26 = vld [vmem:[#allocation42_spill] sm:$0xff]  ;;  %v11891_v41 = vld [vmem:[#allocation43_spill] sm:$0xff]  ;;  %v11896_v1 = vld [vmem:[#allocation48_spill] sm:$0xff] }
 0x245   :  { %v11898_v4 = vld [vmem:[#allocation51_spill] sm:$0xff] }
 0x246   :  { %9038 = vtanh.f32 %v9835_v25  ;;  %v9838_v59 = vpack.c.bf16 %v1371_v7, %v1371_v7  ;;  %v11901_v7 = vld [vmem:[#allocation79_spill] sm:$0xff] }
 0x250   :  { %v9039_v17 = vpop.eup %9038 }
 0x251   :  { %v1341_v31 = vmul.f32 %v9039_v17, %v1335_v13  ;;  %v11899_v13 = vld [vmem:[#allocation52_spill] sm:$0xff]  ;;  %v11900_v17 = vld [vmem:[#allocation77_spill] sm:$0xff] }
 0x253   :  { %v1379_v46 = vpack.c.bf16 %v1341_v31, %v1341_v31  ;;  %v11902_v31 = vld [vmem:[#allocation76_spill] sm:$0xff] }
 0x255   :  { %2180 = vmatprep.mubr.bf16.mxu0 %v1379_v46  ;;  %2221 = vmatprep.mubr.bf16.mxu1 %v1379_v46 }
 0x256   :  { %2181 = vmatmul.mubr.bf16.vlgmr.msra.gmra.mrb[24].mxu0 %v9838_v59  ;;  %2222 = vmatmul.mubr.bf16.vlgmr.msra.gmra.mrb[24].mxu1 %v9838_v59 }
 0x257   :  { %2231 = vmatpush1.bf16.msra.mxu0 %v9317_v14  ;;  %2272 = vmatpush1.bf16.msra.mxu1 %v9323_v18  ;;  %v11862_v14 = vld [vmem:[#allocation14_spill] sm:$0xff]  ;;  %v11863_v18 = vld [vmem:[#allocation15_spill] sm:$0xff] }
 0x258   :  { %2262 = vmatprep.mubr.bf16.mxu0 %v1379_v46  ;;  %2303 = vmatprep.mubr.bf16.mxu1 %v1379_v46  ;;  %v11903_v46 = vld [vmem:[#allocation78_spill] sm:$0xff] }
 0x259   :  { %2232 = vmatprep.subr.bf16.mxu0 %v9386_v9  ;;  %2273 = vmatprep.subr.bf16.mxu1 %v9388_v10  ;;  %v11864_v9 = vld [vmem:[#allocation16_spill] sm:$0xff]  ;;  %v11865_v10 = vld [vmem:[#allocation17_spill] sm:$0xff] }
 0x25b   :  { %2233 = vmatpush1.bf16.msra.mxu0 %v9394_v27  ;;  %2274 = vmatpush1.bf16.msra.mxu1 %v9396_v32  ;;  %v11866_v27 = vld [vmem:[#allocation18_spill] sm:$0xff]  ;;  %v11867_v32 = vld [vmem:[#allocation19_spill] sm:$0xff] }
 0x25c   :  { %2234 = vmatprep.subr.bf16.mxu0 %v9400_v34  ;;  %2275 = vmatprep.subr.bf16.mxu1 %v9402_v35  ;;  %v11868_v34 = vld [vmem:[#allocation20_spill] sm:$0xff]  ;;  %v11869_v35 = vld [vmem:[#allocation21_spill] sm:$0xff] }
 0x25f   :  { %2235 = vmatpush1.bf16.msra.mxu0 %v9408_v43  ;;  %2276 = vmatpush1.bf16.msra.mxu1 %v9410_v44  ;;  %v11870_v43 = vld [vmem:[#allocation22_spill] sm:$0xff]  ;;  %v11871_v44 = vld [vmem:[#allocation23_spill] sm:$0xff] }
 0x260   :  { %2236 = vmatprep.subr.bf16.mxu0 %v9414_v48  ;;  %2277 = vmatprep.subr.bf16.mxu1 %v9416_v49  ;;  %v11872_v48 = vld [vmem:[#allocation24_spill] sm:$0xff]  ;;  %v11873_v49 = vld [vmem:[#allocation25_spill] sm:$0xff] }
 0x263   :  { %2237 = vmatpush1.bf16.msra.mxu0 %v9420_v54  ;;  %2278 = vmatpush1.bf16.msra.mxu1 %v9422_v55  ;;  %v11874_v54 = vld [vmem:[#allocation26_spill] sm:$0xff]  ;;  %v11875_v55 = vld [vmem:[#allocation27_spill] sm:$0xff] }
 0x264   :  { %2238 = vmatprep.subr.bf16.mxu0 %v9426_v56  ;;  %2279 = vmatprep.subr.bf16.mxu1 %v9428_v57  ;;  %v11876_v56 = vld [vmem:[#allocation28_spill] sm:$0xff]  ;;  %v11877_v57 = vld [vmem:[#allocation29_spill] sm:$0xff] }
 0x267   :  { %2239 = vmatpush1.bf16.msra.mxu0 %v9432_v63  ;;  %2280 = vmatpush1.bf16.msra.mxu1 %v9434_v0  ;;  %v11878_v63 = vld [vmem:[#allocation30_spill] sm:$0xff]  ;;  %v11879_v0 = vld [vmem:[#allocation31_spill] sm:$0xff] }
 0x268   :  { %2240 = vmatprep.subr.bf16.mxu0 %v9438_v2  ;;  %2281 = vmatprep.subr.bf16.mxu1 %v9440_v3  ;;  %v11880_v2 = vld [vmem:[#allocation32_spill] sm:$0xff]  ;;  %v11881_v3 = vld [vmem:[#allocation33_spill] sm:$0xff] }
 0x26b   :  { %2241 = vmatpush1.bf16.msra.mxu0 %v9444_v16  ;;  %2282 = vmatpush1.bf16.msra.mxu1 %v9446_v24  ;;  %v11882_v16 = vld [vmem:[#allocation34_spill] sm:$0xff]  ;;  %v11883_v24 = vld [vmem:[#allocation35_spill] sm:$0xff] }
 0x26c   :  { %2242 = vmatprep.subr.bf16.mxu0 %v9450_v37  ;;  %2283 = vmatprep.subr.bf16.mxu1 %v11862_v14  ;;  %v11884_v37 = vld [vmem:[#allocation36_spill] sm:$0xff] }
 0x26d   :  { %v11904_v14 = vld [vmem:[#allocation80_spill] sm:$0xff] }
 0x26f   :  { %2243 = vmatpush1.bf16.msra.mxu0 %v11863_v18  ;;  %2284 = vmatpush1.bf16.msra.mxu1 %v11864_v9  ;;  %v11905_v18 = vld [vmem:[#allocation81_spill] sm:$0xff]  ;;  %v11906_v9 = vld [vmem:[#allocation82_spill] sm:$0xff] }
 0x270   :  { %2244 = vmatprep.subr.bf16.mxu0 %v11865_v10  ;;  %2285 = vmatprep.subr.bf16.mxu1 %v11866_v27  ;;  %v11907_v10 = vld [vmem:[#allocation83_spill] sm:$0xff]  ;;  %v11908_v27 = vld [vmem:[#allocation84_spill] sm:$0xff] }
 0x273   :  { %2245 = vmatpush1.bf16.msra.mxu0 %v11867_v32  ;;  %2286 = vmatpush1.bf16.msra.mxu1 %v11868_v34  ;;  %v11909_v32 = vld [vmem:[#allocation85_spill] sm:$0xff]  ;;  %v11911_v34 = vld [vmem:[#allocation87_spill] sm:$0xff] }
 0x274   :  { %2246 = vmatprep.subr.bf16.mxu0 %v11869_v35  ;;  %2287 = vmatprep.subr.bf16.mxu1 %v11870_v43  ;;  %v11912_v35 = vld [vmem:[#allocation88_spill] sm:$0xff]  ;;  %v11913_v43 = vld [vmem:[#allocation89_spill] sm:$0xff] }
 0x277   :  { %2247 = vmatpush1.bf16.msra.mxu0 %v11871_v44  ;;  %2288 = vmatpush1.bf16.msra.mxu1 %v11872_v48  ;;  %v11917_v44 = vld [vmem:[#allocation93_spill] sm:$0xff] }
 0x278   :  { %2248 = vmatprep.subr.bf16.mxu0 %v11873_v49  ;;  %2289 = vmatprep.subr.bf16.mxu1 %v11874_v54  ;;  %v11921_v48 = vld [vmem:[#allocation97_spill] sm:$0xff]  ;;  %v11922_v49 = vld [vmem:[#allocation100_spill] sm:$0xff]  ;;  %v11923_v54 = vld [vmem:[#allocation98_spill] sm:$0xff] }
 0x27b   :  { %2249 = vmatpush1.bf16.msra.mxu0 %v11875_v55  ;;  %2290 = vmatpush1.bf16.msra.mxu1 %v11876_v56  ;;  %v11925_v55 = vld [vmem:[#allocation101_spill] sm:$0xff]  ;;  %v11926_v56 = vld [vmem:[#allocation104_spill] sm:$0xff] }
 0x27c   :  { %2250 = vmatprep.subr.bf16.mxu0 %v11877_v57  ;;  %2291 = vmatprep.subr.bf16.mxu1 %v11878_v63  ;;  %v11927_v57 = vld [vmem:[#allocation102_spill] sm:$0xff]  ;;  %v11928_v63 = vld [vmem:[#allocation103_spill] sm:$0xff] }
 0x27f   :  { %2251 = vmatpush1.bf16.msra.mxu0 %v11879_v0  ;;  %2292 = vmatpush1.bf16.msra.mxu1 %v11880_v2  ;;  %v11929_v0 = vld [vmem:[#allocation105_spill] sm:$0xff]  ;;  %v11930_v2 = vld [vmem:[#allocation108_spill] sm:$0xff] }
 0x280   :  { %2252 = vmatprep.subr.bf16.mxu0 %v11881_v3  ;;  %2293 = vmatprep.subr.bf16.mxu1 %v11882_v16  ;;  %v11931_v3 = vld [vmem:[#allocation106_spill] sm:$0xff]  ;;  %v11932_v16 = vld [vmem:[#allocation107_spill] sm:$0xff] }
 0x283   :  { %2253 = vmatpush1.bf16.msra.mxu0 %v11883_v24  ;;  %2294 = vmatpush1.bf16.msra.mxu1 %v11884_v37  ;;  %v11933_v24 = vld [vmem:[#allocation109_spill] sm:$0xff]  ;;  %v11934_v37 = vld [vmem:[#allocation112_spill] sm:$0xff] }
 0x284   :  { %2254 = vmatprep.subr.bf16.mxu0 %v11885_v38  ;;  %2295 = vmatprep.subr.bf16.mxu1 %v11886_v33  ;;  %v11935_v38 = vld [vmem:[#allocation110_spill] sm:$0xff]  ;;  %v11936_v33 = vld [vmem:[#allocation111_spill] sm:$0xff] }
 0x287   :  { %2255 = vmatpush1.bf16.msra.mxu0 %v9528_v11  ;;  %2296 = vmatpush1.bf16.msra.mxu1 %v11887_v36  ;;  %v11897_v11 = vld [vmem:[#allocation49_spill] sm:$0xff] }
 0x288   :  { %2256 = vmatprep.subr.bf16.mxu0 %v11888_v51  ;;  %2297 = vmatprep.subr.bf16.mxu1 %v11889_v45  ;;  %v11937_v36 = vld [vmem:[#allocation113_spill] sm:$0xff]  ;;  %v11938_v51 = vld [vmem:[#allocation116_spill] sm:$0xff]  ;;  %v11939_v45 = vld [vmem:[#allocation114_spill] sm:$0xff] }
 0x28b   :  { %2257 = vmatpush1.bf16.msra.mxu0 %v11890_v26  ;;  %2298 = vmatpush1.bf16.msra.mxu1 %v11891_v41  ;;  %v11940_v26 = vld [vmem:[#allocation115_spill] sm:$0xff]  ;;  %v2485_v41 = vld [vmem:[#allocation7 + $0x380] sm:$0xff] }
 0x28c   :  { %2258 = vmatprep.subr.bf16.mxu0 %v11892_v30  ;;  %2299 = vmatprep.subr.bf16.mxu1 %v11893_v21  ;;  %v2489_v30 = vld [vmem:[#allocation7 + $0x3a0] sm:$0xff]  ;;  %v2486_v21 = vld [vmem:[#allocation7 + $0x388] sm:$0xff] }
 0x28f   :  { %2259 = vmatpush1.bf16.msra.mxu0 %v11894_v53  ;;  %2300 = vmatpush1.bf16.msra.mxu1 %v11895_v47  ;;  %v9962_v53 = vcombine.low %v2485_v41, %v2489_v30  ;;  %v2493_v47 = vld [vmem:[#allocation7 + $0x3c0] sm:$0xff] }
 0x290   :  { %2260 = vmatprep.subr.bf16.mxu0 %v11896_v1  ;;  %2301 = vmatprep.subr.bf16.mxu1 %v11897_v11 }
 0x293   :  { %2261 = vmatpush1.bf16.msra.mxu0 %v11898_v4  ;;  %2302 = vmatpush1.bf16.msra.mxu1 %v11899_v13  ;;  %v2375_v13 = vld [vmem:[#allocation7 + $0x10] sm:$0xff] }
 0x294   :  { %3141 = vmatprep.subr.bf16.mxu0 %v11900_v17  ;;  %3182 = vmatprep.subr.bf16.mxu1 %v11901_v7  ;;  %v2379_v17 = vld [vmem:[#allocation7 + $0x30] sm:$0xff]  ;;  %v2376_v7 = vld [vmem:[#allocation7 + $0x18] sm:$0xff] }
 0x296   :  { %2263 = vmatmul.mubr.bf16.vlgmr.msra.gmra.mrb[28].mxu0 %v9838_v59  ;;  %2304 = vmatmul.mubr.bf16.vlgmr.msra.gmra.mrb[28].mxu1 %v9838_v59  ;;  %v11910_v59 = vld [vmem:[#allocation86_spill] sm:$0xff] }
 0x297   :  { %3142 = vmatpush1.bf16.msra.mxu0 %v11902_v31  ;;  %3183 = vmatpush1.bf16.msra.mxu1 %v11903_v46  ;;  %v9986_v31 = vcombine.high %v2375_v13, %v2379_v17  ;;  %v2380_v46 = vld [vmem:[#allocation7 + $0x38] sm:$0xff] }
 0x298   :  { %3143 = vmatprep.subr.bf16.mxu0 %v11904_v14  ;;  %3184 = vmatprep.subr.bf16.mxu1 %v11905_v18  ;;  %v9988_v14 = vcombine.low %v2375_v13, %v2379_v17  ;;  %v9990_v18 = vcombine.low %v2376_v7, %v2380_v46 }
 0x29b   :  { %3144 = vmatpush1.bf16.msra.mxu0 %v11906_v9  ;;  %3185 = vmatpush1.bf16.msra.mxu1 %v11907_v10  ;;  %v9992_v9 = vcombine.high %v2376_v7, %v2380_v46  ;;  %v11941_v10 = vld [vmem:[#allocation10_spill] sm:$0xff] }
 0x29c   :  { %3145 = vmatprep.subr.bf16.mxu0 %v11908_v27  ;;  %3186 = vmatprep.subr.bf16.mxu1 %v11909_v32  ;;  %v11942_v27 = vld [vmem:[#allocation50_spill] sm:$0xff] }
 0x29d   :  { %v203_v32 = vadd.f32 %v11942_v27, %v11941_v10 }
 0x29f   :  { %3146 = vmatpush1.bf16.msra.mxu0 %v9649_v50  ;;  %3187 = vmatpush1.bf16.msra.mxu1 %v9653_v39  ;;  %v11914_v50 = vld [vmem:[#allocation90_spill] sm:$0xff]  ;;  %v11915_v39 = vld [vmem:[#allocation91_spill] sm:$0xff] }
 0x2a0   :  { %3147 = vmatprep.subr.bf16.mxu0 %v9655_v60  ;;  %3188 = vmatprep.subr.bf16.mxu1 %v11910_v59  ;;  %v11916_v60 = vld [vmem:[#allocation92_spill] sm:$0xff]  ;;  %v11943_v59 = vld [vmem:[#allocation13_spill] sm:$0xff] }
 0x2a3   :  { %3148 = vmatpush1.bf16.msra.mxu0 %v9661_v61  ;;  %3189 = vmatpush1.bf16.msra.mxu1 %v9665_v42  ;;  %v11918_v61 = vld [vmem:[#allocation96_spill] sm:$0xff]  ;;  %v11919_v42 = vld [vmem:[#allocation94_spill] sm:$0xff] }
 0x2a4   :  { %3149 = vmatprep.subr.bf16.mxu0 %v9667_v19  ;;  %3190 = vmatprep.subr.bf16.mxu1 %v11911_v34  ;;  %v11920_v19 = vld [vmem:[#allocation95_spill] sm:$0xff]  ;;  %v11944_v34 = vld [vmem:[#allocation54_spill] sm:$0xff] }
 0x2a7   :  { %3150 = vmatpush1.bf16.msra.mxu0 %v11912_v35  ;;  %3191 = vmatpush1.bf16.msra.mxu1 %v11913_v43  ;;  %v276_v35 = vadd.f32 %v11944_v34, %v11943_v59  ;;  %v11945_v43 = vld [vmem:[#allocation11_spill] sm:$0xff] }
 0x2a8   :  { %3151 = vmatprep.subr.bf16.mxu0 %v9679_v40  ;;  %3192 = vmatprep.subr.bf16.mxu1 %v11914_v50  ;;  %v11924_v40 = vld [vmem:[#allocation99_spill] sm:$0xff]  ;;  %v11946_v50 = vld [vmem:[#allocation53_spill] sm:$0xff] }
 0x2ab   :  { %3152 = vmatpush1.bf16.msra.mxu0 %v11915_v39  ;;  %3193 = vmatpush1.bf16.msra.mxu1 %v11916_v60  ;;  %v205_v39 = vadd.f32 %v11946_v50, %v11945_v43  ;;  %v11947_v60 = vld [vmem:[#allocation12_spill] sm:$0xff] }
 0x2ac   :  { %3153 = vmatprep.subr.bf16.mxu0 %v11917_v44  ;;  %3194 = vmatprep.subr.bf16.mxu1 %v11918_v61  ;;  %v11948_v44 = vld [vmem:[#allocation56_spill] sm:$0xff] }
 0x2ad   :  { %v278_v61 = vadd.f32 %v11948_v44, %v11947_v60 }
 0x2af   :  { %3154 = vmatpush1.bf16.msra.mxu0 %v11919_v42  ;;  %3195 = vmatpush1.bf16.msra.mxu1 %v11920_v19 }
 0x2b0   :  { %3155 = vmatprep.subr.bf16.mxu0 %v11921_v48  ;;  %3196 = vmatprep.subr.bf16.mxu1 %v11922_v49 }
 0x2b3   :  { %3156 = vmatpush1.bf16.msra.mxu0 %v11923_v54  ;;  %3197 = vmatpush1.bf16.msra.mxu1 %v11924_v40 }
 0x2b4   :  { %3157 = vmatprep.subr.bf16.mxu0 %v11925_v55  ;;  %3198 = vmatprep.subr.bf16.mxu1 %v11926_v56 }
 0x2b7   :  { %3158 = vmatpush1.bf16.msra.mxu0 %v11927_v57  ;;  %3199 = vmatpush1.bf16.msra.mxu1 %v11928_v63 }
 0x2b8   :  { %3159 = vmatprep.subr.bf16.mxu0 %v11929_v0  ;;  %3200 = vmatprep.subr.bf16.mxu1 %v11930_v2 }
 0x2bb   :  { %3160 = vmatpush1.bf16.msra.mxu0 %v11931_v3  ;;  %3201 = vmatpush1.bf16.msra.mxu1 %v11932_v16 }
 0x2bc   :  { %3161 = vmatprep.subr.bf16.mxu0 %v11933_v24  ;;  %3202 = vmatprep.subr.bf16.mxu1 %v11934_v37 }
 0x2bf   :  { %3162 = vmatpush1.bf16.msra.mxu0 %v11935_v38  ;;  %3203 = vmatpush1.bf16.msra.mxu1 %v11936_v33 }
 0x2c0   :  { %3163 = vmatprep.subr.bf16.mxu0 %v11937_v36  ;;  %3204 = vmatprep.subr.bf16.mxu1 %v11938_v51 }
 0x2c3   :  { %3164 = vmatpush1.bf16.msra.mxu0 %v11939_v45  ;;  %3205 = vmatpush1.bf16.msra.mxu1 %v11940_v26 }
 0x2c4   :  { %3165 = vmatprep.subr.bf16.mxu0 %v9766_v15  ;;  %3206 = vmatprep.subr.bf16.mxu1 %v9772_v62  ;;  %v9964_v15 = vcombine.high %v2485_v41, %v2489_v30  ;;  %v2490_v62 = vld [vmem:[#allocation7 + $0x3a8] sm:$0xff] }
 0x2c5   :  { %v9966_v1 = vcombine.low %v2486_v21, %v2490_v62 }
 0x2c7   :  { %3166 = vmatpush1.bf16.msra.mxu0 %v9768_v28  ;;  %3207 = vmatpush1.bf16.msra.mxu1 %v9770_v6  ;;  %v2497_v28 = vld [vmem:[#allocation7 + $0x3e0] sm:$0xff]  ;;  %v9968_v6 = vcombine.high %v2486_v21, %v2490_v62 }
 0x2c8   :  { %3167 = vmatprep.subr.bf16.mxu0 %v9780_v52  ;;  %3208 = vmatprep.subr.bf16.mxu1 %v9784_v29  ;;  %v9970_v52 = vcombine.high %v2493_v47, %v2497_v28  ;;  %v2494_v29 = vld [vmem:[#allocation7 + $0x3c8] sm:$0xff]  ;;  %v9977_v11 = vcombine.low %v2493_v47, %v2497_v28 }
 0x2cb   :  { %3168 = vmatpush1.bf16.msra.mxu0 %v9778_v5  ;;  %3209 = vmatpush1.bf16.msra.mxu1 %v9782_v58  ;;  %v2498_v5 = vld [vmem:[#allocation7 + $0x3e8] sm:$0xff] }
 0x2cc   :  { %3169 = vmatprep.subr.bf16.mxu0 %v9964_v15  ;;  %v9973_v58 = vcombine.high %v2494_v29, %v2498_v5  ;;  %3210 = vmatprep.subr.bf16.mxu1 %v9968_v6  ;;  %v9981_v4 = vcombine.low %v2494_v29, %v2498_v5 }
 0x2cf   :  { %3170 = vmatpush1.bf16.msra.mxu0 %v9962_v53  ;;  %3211 = vmatpush1.bf16.msra.mxu1 %v9966_v1 }
 0x2d0   :  { %3171 = vmatprep.subr.bf16.mxu0 %v9970_v52  ;;  %3212 = vmatprep.subr.bf16.mxu1 %v9973_v58 }
 0x2d3   :  { %3172 = vmatpush1.bf16.msra.mxu0 %v9977_v11  ;;  %3213 = vmatpush1.bf16.msra.mxu1 %v9981_v4 }
 0x2d4   :  { %3223 = vmatprep.subr.bf16.mxu0 %v9986_v31  ;;  %3264 = vmatprep.subr.bf16.mxu1 %v9992_v9 }
 0x329   :  { %v2182_v42 = vpop.f32.mrb[24].mxu0  ;;  %v2223_v19 = vpop.f32.mrb[24].mxu1 }
 0x32a   :  { %v2342_v48 = vadd.f32 %v2182_v42, %v203_v32  ;;  %v2344_v49 = vadd.f32 %v2223_v19, %v276_v35  ;;  %v2184_v54 = vpop.f32.mrb[25].mxu0  ;;  %v2225_v40 = vpop.f32.mrb[25].mxu1 }
 0x32b   :  { %v2343_v55 = vadd.f32 %v2184_v54, %v205_v39  ;;  %v2345_v56 = vadd.f32 %v2225_v40, %v278_v61  ;;  %v2186_v57 = vpop.f32.mrb[26].mxu0  ;;  %v2227_v63 = vpop.f32.mrb[26].mxu1 }
 0x32c   :  { %v2347_v0 = vmul.f32 0.5, %v2342_v48  ;;  %v2187_v2 = vpop.f32.mrb[27].mxu0  ;;  %v2228_v3 = vpop.f32.mrb[27].mxu1  ;;  %v2349_v35 = vmul.f32 0.5, %v2344_v49 }
 0x32d   :  { %v2348_v16 = vmul.f32 0.5, %v2343_v55 }
 0x32e   :  { %9040 = vtanh.f32 %v2347_v0 }
 0x32f   :  { %9042 = vtanh.f32 %v2348_v16 }
 0x330   :  { %9044 = vtanh.f32 %v2345_v56 }
 0x338   :  { %v9041_v24 = vpop.eup %9040 }
 0x339   :  { %v2353_v37 = vmul.f32 0.5, %v9041_v24  ;;  %v9043_v38 = vpop.eup %9042 }
 0x33a   :  { %v2354_v36 = vmul.f32 0.5, %v9043_v38  ;;  %v9045_v51 = vpop.eup %9044 }
 0x33b   :  { %v2356_v33 = vadd.f32 0.5, %v2353_v37 }
 0x33c   :  { %v2357_v45 = vadd.f32 0.5, %v2354_v36  ;;  %v2387_v36 = vld [vmem:[#allocation7 + $0x70] sm:$0xff] }
 0x33d   :  { %v2361_v26 = vmul.f32 %v9045_v51, %v2356_v33  ;;  %v2383_v33 = vld [vmem:[#allocation7 + $0x50] sm:$0xff]  ;;  %v2384_v51 = vld [vmem:[#allocation7 + $0x58] sm:$0xff] }
 0x33e   :  { %v2360_v41 = vmul.f32 %v2357_v45, %v9809_v12 }
 0x340   :  { %v10005_v30 = vadd.f32 %v2361_v26, %v2360_v41  ;;  %v2391_v41 = vld [vmem:[#allocation7 + $0x90] sm:$0xff] }
 0x369   :  { %v2264_v21 = vpop.f32.mrb[28].mxu0  ;;  %v2305_v62 = vpop.f32.mrb[28].mxu1 }
 0x36a   :  { %v2312_v47 = vadd.f32 %v2264_v21, %v9816_v20  ;;  %v2266_v28 = vpop.f32.mrb[29].mxu0  ;;  %v2307_v29 = vpop.f32.mrb[29].mxu1  ;;  %v2314_v12 = vadd.f32 %v2305_v62, %v9831_v8  ;;  %v10018_v21 = vcombine.high %v2383_v33, %v2387_v36 }
 0x36b   :  { %v2313_v5 = vadd.f32 %v2266_v28, %v9820_v22  ;;  %v2268_v13 = vpop.f32.mrb[30].mxu0  ;;  %v2309_v17 = vpop.f32.mrb[30].mxu1  ;;  %v2315_v34 = vadd.f32 %v2307_v29, %v9825_v23  ;;  %v2392_v28 = vld [vmem:[#allocation7 + $0x98] sm:$0xff] }
 0x36c   :  { %v2317_v7 = vmul.f32 0.5, %v2312_v47  ;;  %v2269_v46 = vpop.f32.mrb[31].mxu0  ;;  %v2310_v27 = vpop.f32.mrb[31].mxu1  ;;  %v2319_v50 = vmul.f32 0.5, %v2314_v12  ;;  %v2395_v47 = vld [vmem:[#allocation7 + $0xb0] sm:$0xff]  ;;  %v2396_v29 = vld [vmem:[#allocation7 + $0xb8] sm:$0xff] }
 0x36d   :  { %v2318_v32 = vmul.f32 0.5, %v2313_v5  ;;  %v10026_v5 = vcombine.low %v2383_v33, %v2387_v36  ;;  %v10030_v17 = vcombine.high %v2391_v41, %v2395_v47  ;;  %v2399_v46 = vld [vmem:[#allocation7 + $0xd0] sm:$0xff]  ;;  %v10038_v12 = vcombine.low %v2391_v41, %v2395_v47  ;;  %v2424_v33 = vld [vmem:[#allocation7 + $0x198] sm:$0xff] }
 0x36e   :  { %9046 = vtanh.f32 %v2317_v7  ;;  %v10032_v7 = vcombine.high %v2392_v28, %v2396_v29  ;;  %v2403_v27 = vld [vmem:[#allocation7 + $0xf0] sm:$0xff]  ;;  %v2428_v36 = vld [vmem:[#allocation7 + $0x1b8] sm:$0xff] }
 0x36f   :  { %9048 = vtanh.f32 %v2318_v32  ;;  %v2400_v32 = vld [vmem:[#allocation7 + $0xd8] sm:$0xff]  ;;  %v10082_v41 = vcombine.high %v2424_v33, %v2428_v36  ;;  %v2431_v47 = vld [vmem:[#allocation7 + $0x1d0] sm:$0xff] }
 0x370   :  { %9050 = vtanh.f32 %v2315_v34  ;;  %v2404_v34 = vld [vmem:[#allocation7 + $0xf8] sm:$0xff] }
 0x371   :  { %9052 = vtanh.f32 %v2349_v35  ;;  %v10040_v35 = vcombine.low %v2392_v28, %v2396_v29  ;;  %11949 = vst [vmem:[#allocation14_spill] sm:$0xff] %v10082_v41  ;;  %v2435_v28 = vld [vmem:[#allocation7 + $0x1f0] sm:$0xff]  ;;  %v2432_v29 = vld [vmem:[#allocation7 + $0x1d8] sm:$0xff] }
 0x372   :  { %9054 = vtanh.f32 %v2319_v50  ;;  %v10044_v50 = vcombine.high %v2399_v46, %v2403_v27 }
 0x373   :  { %9056 = vtanh.f32 %v10005_v30 }
 0x378   :  { %v9047_v39 = vpop.eup %9046 }
 0x379   :  { %v2323_v44 = vmul.f32 0.5, %v9047_v39  ;;  %v9049_v61 = vpop.eup %9048  ;;  %v10046_v39 = vcombine.high %v2400_v32, %v2404_v34 }
 0x37a   :  { %v2324_v19 = vmul.f32 0.5, %v9049_v61  ;;  %v9051_v48 = vpop.eup %9050  ;;  %v2411_v61 = vld [vmem:[#allocation7 + $0x130] sm:$0xff] }
 0x37b   :  { %v2326_v42 = vadd.f32 0.5, %v2323_v44  ;;  %v9053_v49 = vpop.eup %9052  ;;  %v2407_v44 = vld [vmem:[#allocation7 + $0x110] sm:$0xff] }
 0x37c   :  { %v2327_v54 = vadd.f32 0.5, %v2324_v19  ;;  %v9055_v57 = vpop.eup %9054  ;;  %v2355_v63 = vmul.f32 0.5, %v9053_v49  ;;  %v2412_v19 = vld [vmem:[#allocation7 + $0x138] sm:$0xff]  ;;  %v2415_v49 = vld [vmem:[#allocation7 + $0x150] sm:$0xff] }
 0x37d   :  { %v2331_v40 = vmul.f32 %v9051_v48, %v2326_v42  ;;  %v2325_v0 = vmul.f32 0.5, %v9055_v57  ;;  %v9057_v2 = vpop.eup %9056  ;;  %v2408_v42 = vld [vmem:[#allocation7 + $0x118] sm:$0xff]  ;;  %v10050_v48 = vcombine.low %v2399_v46, %v2403_v27  ;;  %v2419_v57 = vld [vmem:[#allocation7 + $0x170] sm:$0xff] }
 0x37e   :  { %v2330_v55 = vmul.f32 %v2327_v54, %v9835_v25  ;;  %v2358_v3 = vadd.f32 0.5, %v2355_v63  ;;  %v2388_v25 = vld [vmem:[#allocation7 + $0x78] sm:$0xff]  ;;  %v10052_v54 = vcombine.low %v2400_v32, %v2404_v34  ;;  %v10088_v32 = vcombine.low %v2424_v33, %v2428_v36  ;;  %v2451_v33 = vld [vmem:[#allocation7 + $0x270] sm:$0xff] }
 0x37f   :  { %v2328_v16 = vadd.f32 0.5, %v2325_v0  ;;  %v10020_v62 = vcombine.high %v2384_v51, %v2388_v25  ;;  %v10028_v13 = vcombine.low %v2384_v51, %v2388_v25  ;;  %v2416_v63 = vld [vmem:[#allocation7 + $0x158] sm:$0xff]  ;;  %v10074_v51 = vcombine.low %v2415_v49, %v2419_v57 }
 0x380   :  { %v10013_v56 = vadd.f32 %v2331_v40, %v2330_v55  ;;  %v2364_v37 = vmul.f32 %v9057_v2, %v2358_v3  ;;  %v10056_v40 = vcombine.high %v2407_v44, %v2411_v61  ;;  %v10058_v55 = vcombine.high %v2408_v42, %v2412_v19  ;;  %v2420_v0 = vld [vmem:[#allocation7 + $0x178] sm:$0xff]  ;;  %11951 = vst [vmem:[#allocation16_spill] sm:$0xff] %v10088_v32 }
 0x381   :  { %v10062_v2 = vcombine.low %v2407_v44, %v2411_v61  ;;  %v10064_v3 = vcombine.low %v2408_v42, %v2412_v19  ;;  %v10076_v25 = vcombine.low %v2416_v63, %v2420_v0  ;;  %v2436_v46 = vld [vmem:[#allocation7 + $0x1f8] sm:$0xff]  ;;  %v10092_v34 = vcombine.high %v2431_v47, %v2435_v28  ;;  %v2439_v61 = vld [vmem:[#allocation7 + $0x210] sm:$0xff] }
 0x382   :  { %9058 = vtanh.f32 %v10013_v56  ;;  %v10016_v26 = vpack.c.bf16 %v2364_v37, %v2364_v37  ;;  %v2423_v37 = vld [vmem:[#allocation7 + $0x190] sm:$0xff]  ;;  %v10094_v44 = vcombine.high %v2432_v29, %v2436_v46  ;;  %v2440_v19 = vld [vmem:[#allocation7 + $0x218] sm:$0xff] }
 0x383   :  { %11952 = vst [vmem:[#allocation17_spill] sm:$0xff] %v10092_v34  ;;  %v2443_v42 = vld [vmem:[#allocation7 + $0x230] sm:$0xff]  ;;  %v2448_v36 = vld [vmem:[#allocation7 + $0x258] sm:$0xff] }
 0x384   :  { %11953 = vst [vmem:[#allocation18_spill] sm:$0xff] %v10094_v44 }
 0x38c   :  { %v9059_v24 = vpop.eup %9058 }
 0x38d   :  { %v2334_v38 = vmul.f32 %v9059_v24, %v2328_v16  ;;  %v10068_v16 = vcombine.high %v2415_v49, %v2419_v57  ;;  %v10070_v24 = vcombine.high %v2416_v63, %v2420_v0  ;;  %v2444_v49 = vld [vmem:[#allocation7 + $0x238] sm:$0xff]  ;;  %v10098_v57 = vcombine.low %v2431_v47, %v2435_v28 }
 0x38e   :  { %v10100_v63 = vcombine.low %v2432_v29, %v2436_v46  ;;  %v10104_v0 = vcombine.high %v2439_v61, %v2443_v42  ;;  %v10110_v47 = vcombine.low %v2439_v61, %v2443_v42  ;;  %v10112_v28 = vcombine.low %v2440_v19, %v2444_v49 }
 0x38f   :  { %v2372_v45 = vpack.c.bf16 %v2334_v38, %v2334_v38  ;;  %v2427_v38 = vld [vmem:[#allocation7 + $0x1b0] sm:$0xff]  ;;  %11954 = vst [vmem:[#allocation19_spill] sm:$0xff] %v10098_v57 }
 0x390   :  { %v10086_v27 = vcombine.low %v2423_v37, %v2427_v38  ;;  %11955 = vst [vmem:[#allocation20_spill] sm:$0xff] %v10100_v63  ;;  %11956 = vst [vmem:[#allocation21_spill] sm:$0xff] %v10104_v0 }
 0x391   :  { %3173 = vmatprep.mubr.bf16.mxu0 %v2372_v45  ;;  %3214 = vmatprep.mubr.bf16.mxu1 %v2372_v45  ;;  %11958 = vst [vmem:[#allocation23_spill] sm:$0xff] %v10110_v47  ;;  %11959 = vst [vmem:[#allocation24_spill] sm:$0xff] %v10112_v28 }
 0x392   :  { %3174 = vmatmul.mubr.bf16.vlgmr.msra.gmra.mrb[32].mxu0 %v10016_v26  ;;  %3215 = vmatmul.mubr.bf16.vlgmr.msra.gmra.mrb[32].mxu1 %v10016_v26  ;;  %11950 = vst [vmem:[#allocation15_spill] sm:$0xff] %v10086_v27 }
 0x393   :  { %3224 = vmatpush1.bf16.msra.mxu0 %v9988_v14  ;;  %3265 = vmatpush1.bf16.msra.mxu1 %v9990_v18 }
 0x394   :  { %3255 = vmatprep.mubr.bf16.mxu0 %v2372_v45  ;;  %3296 = vmatprep.mubr.bf16.mxu1 %v2372_v45  ;;  %v10080_v45 = vcombine.high %v2423_v37, %v2427_v38  ;;  %v10106_v37 = vcombine.high %v2440_v19, %v2444_v49  ;;  %v2447_v38 = vld [vmem:[#allocation7 + $0x250] sm:$0xff] }
 0x395   :  { %3225 = vmatprep.subr.bf16.mxu0 %v10018_v21  ;;  %3266 = vmatprep.subr.bf16.mxu1 %v10020_v62  ;;  %v10116_v29 = vcombine.high %v2447_v38, %v2451_v33  ;;  %v10122_v61 = vcombine.low %v2447_v38, %v2451_v33 }
 0x396   :  { %11957 = vst [vmem:[#allocation22_spill] sm:$0xff] %v10106_v37 }
 0x397   :  { %3226 = vmatpush1.bf16.msra.mxu0 %v10026_v5  ;;  %3267 = vmatpush1.bf16.msra.mxu1 %v10028_v13  ;;  %11960 = vst [vmem:[#allocation25_spill] sm:$0xff] %v10116_v29  ;;  %11962 = vst [vmem:[#allocation27_spill] sm:$0xff] %v10122_v61 }
 0x398   :  { %3227 = vmatprep.subr.bf16.mxu0 %v10030_v17  ;;  %3268 = vmatprep.subr.bf16.mxu1 %v10032_v7 }
 0x39b   :  { %3228 = vmatpush1.bf16.msra.mxu0 %v10038_v12  ;;  %3269 = vmatpush1.bf16.msra.mxu1 %v10040_v35 }
 0x39c   :  { %3229 = vmatprep.subr.bf16.mxu0 %v10044_v50  ;;  %3270 = vmatprep.subr.bf16.mxu1 %v10046_v39 }
 0x39f   :  { %3230 = vmatpush1.bf16.msra.mxu0 %v10050_v48  ;;  %3271 = vmatpush1.bf16.msra.mxu1 %v10052_v54 }
 0x3a0   :  { %3231 = vmatprep.subr.bf16.mxu0 %v10056_v40  ;;  %3272 = vmatprep.subr.bf16.mxu1 %v10058_v55 }
 0x3a3   :  { %3232 = vmatpush1.bf16.msra.mxu0 %v10062_v2  ;;  %3273 = vmatpush1.bf16.msra.mxu1 %v10064_v3 }
 0x3a4   :  { %3233 = vmatprep.subr.bf16.mxu0 %v10068_v16  ;;  %3274 = vmatprep.subr.bf16.mxu1 %v10070_v24 }
 0x3a7   :  { %3234 = vmatpush1.bf16.msra.mxu0 %v10074_v51  ;;  %3275 = vmatpush1.bf16.msra.mxu1 %v10076_v25 }
 0x3a8   :  { %3235 = vmatprep.subr.bf16.mxu0 %v10080_v45  ;;  %3276 = vmatprep.subr.bf16.mxu1 %v10082_v41  ;;  %v2452_v41 = vld [vmem:[#allocation7 + $0x278] sm:$0xff] }
 0x3a9   :  { %v10118_v46 = vcombine.high %v2448_v36, %v2452_v41  ;;  %v10124_v42 = vcombine.low %v2448_v36, %v2452_v41 }
 0x3ab   :  { %3236 = vmatpush1.bf16.msra.mxu0 %v10086_v27  ;;  %3277 = vmatpush1.bf16.msra.mxu1 %v10088_v32  ;;  %11961 = vst [vmem:[#allocation26_spill] sm:$0xff] %v10118_v46  ;;  %v2456_v32 = vld [vmem:[#allocation7 + $0x298] sm:$0xff]  ;;  %11963 = vst [vmem:[#allocation28_spill] sm:$0xff] %v10124_v42 }
 0x3ac   :  { %3237 = vmatprep.subr.bf16.mxu0 %v10092_v34  ;;  %3278 = vmatprep.subr.bf16.mxu1 %v10094_v44  ;;  %v2455_v44 = vld [vmem:[#allocation7 + $0x290] sm:$0xff]  ;;  %v2460_v27 = vld [vmem:[#allocation7 + $0x2b8] sm:$0xff] }
 0x3ad   :  { %v2459_v34 = vld [vmem:[#allocation7 + $0x2b0] sm:$0xff]  ;;  %v10130_v49 = vcombine.high %v2456_v32, %v2460_v27  ;;  %v10136_v41 = vcombine.low %v2456_v32, %v2460_v27 }
 0x3ae   :  { %v10128_v19 = vcombine.high %v2455_v44, %v2459_v34  ;;  %v10134_v38 = vcombine.low %v2455_v44, %v2459_v34 }
 0x3af   :  { %3238 = vmatpush1.bf16.msra.mxu0 %v10098_v57  ;;  %3279 = vmatpush1.bf16.msra.mxu1 %v10100_v63  ;;  %11965 = vst [vmem:[#allocation30_spill] sm:$0xff] %v10130_v49  ;;  %v2464_v63 = vld [vmem:[#allocation7 + $0x2d8] sm:$0xff]  ;;  %11967 = vst [vmem:[#allocation32_spill] sm:$0xff] %v10136_v41 }
 0x3b0   :  { %3239 = vmatprep.subr.bf16.mxu0 %v10104_v0  ;;  %3280 = vmatprep.subr.bf16.mxu1 %v10106_v37  ;;  %11964 = vst [vmem:[#allocation29_spill] sm:$0xff] %v10128_v19  ;;  %v2463_v37 = vld [vmem:[#allocation7 + $0x2d0] sm:$0xff]  ;;  %v2468_v57 = vld [vmem:[#allocation7 + $0x2f8] sm:$0xff]  ;;  %11966 = vst [vmem:[#allocation31_spill] sm:$0xff] %v10134_v38 }
 0x3b1   :  { %v2467_v0 = vld [vmem:[#allocation7 + $0x2f0] sm:$0xff]  ;;  %v10142_v36 = vcombine.high %v2464_v63, %v2468_v57  ;;  %v10148_v27 = vcombine.low %v2464_v63, %v2468_v57 }
 0x3b2   :  { %v10140_v33 = vcombine.high %v2463_v37, %v2467_v0  ;;  %v10146_v34 = vcombine.low %v2463_v37, %v2467_v0 }
 0x3b3   :  { %3240 = vmatpush1.bf16.msra.mxu0 %v10110_v47  ;;  %3281 = vmatpush1.bf16.msra.mxu1 %v10112_v28  ;;  %11969 = vst [vmem:[#allocation34_spill] sm:$0xff] %v10142_v36  ;;  %v2472_v28 = vld [vmem:[#allocation7 + $0x318] sm:$0xff]  ;;  %11971 = vst [vmem:[#allocation36_spill] sm:$0xff] %v10148_v27 }
 0x3b4   :  { %3241 = vmatprep.subr.bf16.mxu0 %v10116_v29  ;;  %3282 = vmatprep.subr.bf16.mxu1 %v10118_v46  ;;  %11968 = vst [vmem:[#allocation33_spill] sm:$0xff] %v10140_v33  ;;  %v2471_v46 = vld [vmem:[#allocation7 + $0x310] sm:$0xff]  ;;  %v2476_v47 = vld [vmem:[#allocation7 + $0x338] sm:$0xff]  ;;  %11970 = vst [vmem:[#allocation35_spill] sm:$0xff] %v10146_v34 }
 0x3b5   :  { %v2475_v29 = vld [vmem:[#allocation7 + $0x330] sm:$0xff]  ;;  %v10154_v44 = vcombine.high %v2472_v28, %v2476_v47  ;;  %v10160_v57 = vcombine.low %v2472_v28, %v2476_v47 }
 0x3b6   :  { %v10152_v32 = vcombine.high %v2471_v46, %v2475_v29  ;;  %v10158_v0 = vcombine.low %v2471_v46, %v2475_v29 }
 0x3b7   :  { %3242 = vmatpush1.bf16.msra.mxu0 %v10122_v61  ;;  %3283 = vmatpush1.bf16.msra.mxu1 %v10124_v42  ;;  %11973 = vst [vmem:[#allocation38_spill] sm:$0xff] %v10154_v44  ;;  %v2480_v42 = vld [vmem:[#allocation7 + $0x358] sm:$0xff]  ;;  %11974 = vst [vmem:[#allocation39_spill] sm:$0xff] %v10160_v57 }
 0x3b8   :  { %3243 = vmatprep.subr.bf16.mxu0 %v10128_v19  ;;  %3284 = vmatprep.subr.bf16.mxu1 %v10130_v49  ;;  %11972 = vst [vmem:[#allocation37_spill] sm:$0xff] %v10152_v32  ;;  %v2479_v49 = vld [vmem:[#allocation7 + $0x350] sm:$0xff]  ;;  %v2484_v61 = vld [vmem:[#allocation7 + $0x378] sm:$0xff] }
 0x3b9   :  { %v2483_v19 = vld [vmem:[#allocation7 + $0x370] sm:$0xff]  ;;  %v10166_v37 = vcombine.high %v2480_v42, %v2484_v61  ;;  %v10172_v47 = vcombine.low %v2480_v42, %v2484_v61 }
 0x3ba   :  { %v10164_v63 = vcombine.high %v2479_v49, %v2483_v19  ;;  %v10170_v29 = vcombine.low %v2479_v49, %v2483_v19 }
 0x3bb   :  { %3244 = vmatpush1.bf16.msra.mxu0 %v10134_v38  ;;  %3285 = vmatpush1.bf16.msra.mxu1 %v10136_v41  ;;  %11976 = vst [vmem:[#allocation41_spill] sm:$0xff] %v10166_v37  ;;  %v2488_v41 = vld [vmem:[#allocation7 + $0x398] sm:$0xff]  ;;  %11978 = vst [vmem:[#allocation43_spill] sm:$0xff] %v10172_v47 }
 0x3bc   :  { %3245 = vmatprep.subr.bf16.mxu0 %v10140_v33  ;;  %3286 = vmatprep.subr.bf16.mxu1 %v10142_v36  ;;  %11975 = vst [vmem:[#allocation40_spill] sm:$0xff] %v10164_v63  ;;  %v2487_v36 = vld [vmem:[#allocation7 + $0x390] sm:$0xff]  ;;  %v2492_v38 = vld [vmem:[#allocation7 + $0x3b8] sm:$0xff]  ;;  %11977 = vst [vmem:[#allocation42_spill] sm:$0xff] %v10170_v29 }
 0x3bd   :  { %v2491_v33 = vld [vmem:[#allocation7 + $0x3b0] sm:$0xff]  ;;  %v10178_v46 = vcombine.high %v2488_v41, %v2492_v38  ;;  %v10184_v61 = vcombine.low %v2488_v41, %v2492_v38  ;;  %v3366_v38 = vld [vmem:[#allocation7] sm:$0xff] }
 0x3be   :  { %v10176_v28 = vcombine.high %v2487_v36, %v2491_v33  ;;  %v10182_v19 = vcombine.low %v2487_v36, %v2491_v33  ;;  %v3370_v41 = vld [vmem:[#allocation7 + $0x20] sm:$0xff]  ;;  %v3367_v33 = vld [vmem:[#allocation7 + $0x8] sm:$0xff] }
 0x3bf   :  { %3246 = vmatpush1.bf16.msra.mxu0 %v10146_v34  ;;  %3287 = vmatpush1.bf16.msra.mxu1 %v10148_v27  ;;  %11980 = vst [vmem:[#allocation45_spill] sm:$0xff] %v10178_v46  ;;  %v2496_v27 = vld [vmem:[#allocation7 + $0x3d8] sm:$0xff]  ;;  %11982 = vst [vmem:[#allocation47_spill] sm:$0xff] %v10184_v61  ;;  %v10204_v36 = vcombine.low %v3366_v38, %v3370_v41 }
 0x3c0   :  { %3247 = vmatprep.subr.bf16.mxu0 %v10152_v32  ;;  %3288 = vmatprep.subr.bf16.mxu1 %v10154_v44  ;;  %11979 = vst [vmem:[#allocation44_spill] sm:$0xff] %v10176_v28  ;;  %v2495_v44 = vld [vmem:[#allocation7 + $0x3d0] sm:$0xff]  ;;  %v2500_v34 = vld [vmem:[#allocation7 + $0x3f8] sm:$0xff]  ;;  %11981 = vst [vmem:[#allocation46_spill] sm:$0xff] %v10182_v19 }
 0x3c1   :  { %v2499_v32 = vld [vmem:[#allocation7 + $0x3f0] sm:$0xff]  ;;  %v10190_v49 = vcombine.high %v2496_v27, %v2500_v34  ;;  %11987 = vst [vmem:[#allocation77_spill] sm:$0xff] %v10204_v36 }
 0x3c2   :  { %v10188_v42 = vcombine.high %v2495_v44, %v2499_v32 }
 0x3c3   :  { %3248 = vmatpush1.bf16.msra.mxu0 %v10158_v0  ;;  %3289 = vmatpush1.bf16.msra.mxu1 %v10160_v57  ;;  %11984 = vst [vmem:[#allocation49_spill] sm:$0xff] %v10190_v49  ;;  %v3391_v57 = vld [vmem:[#allocation7 + $0xc8] sm:$0xff] }
 0x3c4   :  { %3249 = vmatprep.subr.bf16.mxu0 %v10164_v63  ;;  %3290 = vmatprep.subr.bf16.mxu1 %v10166_v37  ;;  %11983 = vst [vmem:[#allocation48_spill] sm:$0xff] %v10188_v42  ;;  %v10194_v37 = vcombine.low %v2495_v44, %v2499_v32  ;;  %v10206_v32 = vcombine.high %v3366_v38, %v3370_v41  ;;  %v3378_v44 = vld [vmem:[#allocation7 + $0x60] sm:$0xff]  ;;  %v3387_v38 = vld [vmem:[#allocation7 + $0xa8] sm:$0xff] }
 0x3c5   :  { %v3394_v63 = vld [vmem:[#allocation7 + $0xe0] sm:$0xff] }
 0x3c6   :  { %11985 = vst [vmem:[#allocation51_spill] sm:$0xff] %v10194_v37  ;;  %11988 = vst [vmem:[#allocation79_spill] sm:$0xff] %v10206_v32 }
 0x3c7   :  { %3250 = vmatpush1.bf16.msra.mxu0 %v10170_v29  ;;  %3291 = vmatpush1.bf16.msra.mxu1 %v10172_v47  ;;  %v10196_v29 = vcombine.low %v2496_v27, %v2500_v34  ;;  %v3371_v34 = vld [vmem:[#allocation7 + $0x28] sm:$0xff]  ;;  %v3374_v27 = vld [vmem:[#allocation7 + $0x40] sm:$0xff] }
 0x3c8   :  { %3251 = vmatprep.subr.bf16.mxu0 %v10176_v28  ;;  %3292 = vmatprep.subr.bf16.mxu1 %v10178_v46  ;;  %v3386_v46 = vld [vmem:[#allocation7 + $0xa0] sm:$0xff]  ;;  %v3383_v28 = vld [vmem:[#allocation7 + $0x88] sm:$0xff]  ;;  %v10219_v41 = vcombine.low %v3374_v27, %v3378_v44 }
 0x3c9   :  { %11986 = vst [vmem:[#allocation52_spill] sm:$0xff] %v10196_v29  ;;  %v3390_v47 = vld [vmem:[#allocation7 + $0xc0] sm:$0xff] }
 0x3ca   :  { %11993 = vst [vmem:[#allocation82_spill] sm:$0xff] %v10219_v41 }
 0x3cb   :  { %3252 = vmatpush1.bf16.msra.mxu0 %v10182_v19  ;;  %3293 = vmatpush1.bf16.msra.mxu1 %v10184_v61  ;;  %v3379_v61 = vld [vmem:[#allocation7 + $0x68] sm:$0xff]  ;;  %v3382_v19 = vld [vmem:[#allocation7 + $0x80] sm:$0xff] }
 0x3cc   :  { %3253 = vmatprep.subr.bf16.mxu0 %v10188_v42  ;;  %3294 = vmatprep.subr.bf16.mxu1 %v10190_v49  ;;  %v10208_v42 = vcombine.low %v3367_v33, %v3371_v34  ;;  %v10210_v49 = vcombine.high %v3367_v33, %v3371_v34  ;;  %v10225_v34 = vcombine.high %v3382_v19, %v3386_v46 }
 0x3ce   :  { %11989 = vst [vmem:[#allocation76_spill] sm:$0xff] %v10208_v42  ;;  %11990 = vst [vmem:[#allocation78_spill] sm:$0xff] %v10210_v49 }
 0x3cf   :  { %3254 = vmatpush1.bf16.msra.mxu0 %v10194_v37  ;;  %3295 = vmatpush1.bf16.msra.mxu1 %v10196_v29  ;;  %v10212_v37 = vcombine.high %v3374_v27, %v3378_v44  ;;  %v3375_v29 = vld [vmem:[#allocation7 + $0x48] sm:$0xff]  ;;  %11995 = vst [vmem:[#allocation84_spill] sm:$0xff] %v10225_v34  ;;  %v10231_v27 = vcombine.low %v3382_v19, %v3386_v46 }
 0x3d0   :  { %4134 = vmatprep.subr.bf16.mxu0 %v10206_v32  ;;  %4175 = vmatprep.subr.bf16.mxu1 %v10210_v49  ;;  %v10223_v33 = vcombine.low %v3375_v29, %v3379_v61  ;;  %v10228_v32 = vcombine.high %v3383_v28, %v3387_v38  ;;  %v3395_v49 = vld [vmem:[#allocation7 + $0xe8] sm:$0xff]  ;;  %v10243_v46 = vcombine.low %v3390_v47, %v3394_v63 }
 0x3d1   :  { %11991 = vst [vmem:[#allocation80_spill] sm:$0xff] %v10212_v37  ;;  %v10240_v44 = vcombine.high %v3391_v57, %v3395_v49 }
 0x3d2   :  { %3256 = vmatmul.mubr.bf16.vlgmr.msra.gmra.mrb[36].mxu0 %v10016_v26  ;;  %3297 = vmatmul.mubr.bf16.vlgmr.msra.gmra.mrb[36].mxu1 %v10016_v26  ;;  %v10215_v26 = vcombine.high %v3375_v29, %v3379_v61  ;;  %11994 = vst [vmem:[#allocation83_spill] sm:$0xff] %v10223_v33  ;;  %11996 = vst [vmem:[#allocation85_spill] sm:$0xff] %v10228_v32  ;;  %v10235_v29 = vcombine.low %v3383_v28, %v3387_v38 }
 0x3d3   :  { %4135 = vmatpush1.bf16.msra.mxu0 %v10204_v36  ;;  %4176 = vmatpush1.bf16.msra.mxu1 %v10208_v42  ;;  %v10237_v61 = vcombine.high %v3390_v47, %v3394_v63  ;;  %11997 = vst [vmem:[#allocation86_spill] sm:$0xff] %v10240_v44  ;;  %v3399_v42 = vld [vmem:[#allocation7 + $0x108] sm:$0xff]  ;;  %v10247_v28 = vcombine.low %v3391_v57, %v3395_v49 }
 0x3d4   :  { %11992 = vst [vmem:[#allocation81_spill] sm:$0xff] %v10215_v26  ;;  %4136 = vmatprep.subr.bf16.mxu0 %v10212_v37  ;;  %4177 = vmatprep.subr.bf16.mxu1 %v10215_v26  ;;  %v3398_v26 = vld [vmem:[#allocation7 + $0x100] sm:$0xff]  ;;  %v3403_v36 = vld [vmem:[#allocation7 + $0x128] sm:$0xff] }
 0x3d5   :  { %v3402_v37 = vld [vmem:[#allocation7 + $0x120] sm:$0xff]  ;;  %v10252_v38 = vcombine.high %v3399_v42, %v3403_v36  ;;  %v10259_v57 = vcombine.low %v3399_v42, %v3403_v36 }
 0x3d6   :  { %v10249_v19 = vcombine.high %v3398_v26, %v3402_v37  ;;  %v10255_v63 = vcombine.low %v3398_v26, %v3402_v37  ;;  %v3414_v42 = vld [vmem:[#allocation7 + $0x180] sm:$0xff]  ;;  %v3415_v26 = vld [vmem:[#allocation7 + $0x188] sm:$0xff] }
 0x3d7   :  { %4137 = vmatpush1.bf16.msra.mxu0 %v10219_v41  ;;  %4178 = vmatpush1.bf16.msra.mxu1 %v10223_v33  ;;  %11998 = vst [vmem:[#allocation87_spill] sm:$0xff] %v10252_v38  ;;  %v3407_v33 = vld [vmem:[#allocation7 + $0x148] sm:$0xff]  ;;  %12000 = vst [vmem:[#allocation89_spill] sm:$0xff] %v10259_v57  ;;  %v3418_v36 = vld [vmem:[#allocation7 + $0x1a0] sm:$0xff] }
 0x3d8   :  { %4138 = vmatprep.subr.bf16.mxu0 %v10225_v34  ;;  %4179 = vmatprep.subr.bf16.mxu1 %v10228_v32  ;;  %v3406_v32 = vld [vmem:[#allocation7 + $0x140] sm:$0xff]  ;;  %v3411_v41 = vld [vmem:[#allocation7 + $0x168] sm:$0xff]  ;;  %11999 = vst [vmem:[#allocation88_spill] sm:$0xff] %v10255_v63 }
 0x3d9   :  { %v3410_v34 = vld [vmem:[#allocation7 + $0x160] sm:$0xff]  ;;  %v10264_v49 = vcombine.high %v3407_v33, %v3411_v41  ;;  %v10271_v37 = vcombine.low %v3407_v33, %v3411_v41 }
 0x3da   :  { %v10261_v47 = vcombine.high %v3406_v32, %v3410_v34  ;;  %v3422_v41 = vld [vmem:[#allocation7 + $0x1c0] sm:$0xff] }
 0x3db   :  { %4139 = vmatpush1.bf16.msra.mxu0 %v10231_v27  ;;  %4180 = vmatpush1.bf16.msra.mxu1 %v10235_v29  ;;  %12001 = vst [vmem:[#allocation90_spill] sm:$0xff] %v10264_v49  ;;  %12003 = vst [vmem:[#allocation92_spill] sm:$0xff] %v10271_v37  ;;  %v3426_v33 = vld [vmem:[#allocation7 + $0x1e0] sm:$0xff] }
 0x3dc   :  { %4140 = vmatprep.subr.bf16.mxu0 %v10237_v61  ;;  %4181 = vmatprep.subr.bf16.mxu1 %v10240_v44  ;;  %v10267_v44 = vcombine.low %v3406_v32, %v3410_v34  ;;  %v10278_v32 = vcombine.low %v3414_v42, %v3418_v36 }
 0x3de   :  { %12002 = vst [vmem:[#allocation91_spill] sm:$0xff] %v10267_v44  ;;  %12005 = vst [vmem:[#allocation96_spill] sm:$0xff] %v10278_v32 }
 0x3df   :  { %4141 = vmatpush1.bf16.msra.mxu0 %v10243_v46  ;;  %4182 = vmatpush1.bf16.msra.mxu1 %v10247_v28 }
 0x3e0   :  { %4142 = vmatprep.subr.bf16.mxu0 %v10249_v19  ;;  %4183 = vmatprep.subr.bf16.mxu1 %v10252_v38  ;;  %v10276_v38 = vcombine.high %v3414_v42, %v3418_v36  ;;  %v10290_v42 = vcombine.low %v3422_v41, %v3426_v33 }
 0x3e2   :  { %12004 = vst [vmem:[#allocation93_spill] sm:$0xff] %v10276_v38  ;;  %12009 = vst [vmem:[#allocation100_spill] sm:$0xff] %v10290_v42 }
 0x3e3   :  { %4143 = vmatpush1.bf16.msra.mxu0 %v10255_v63  ;;  %4184 = vmatpush1.bf16.msra.mxu1 %v10259_v57  ;;  %v3419_v63 = vld [vmem:[#allocation7 + $0x1a8] sm:$0xff] }
 0x3e4   :  { %4144 = vmatprep.subr.bf16.mxu0 %v10261_v47  ;;  %4185 = vmatprep.subr.bf16.mxu1 %v10264_v49  ;;  %v10280_v34 = vcombine.low %v3415_v26, %v3419_v63  ;;  %v10282_v57 = vcombine.high %v3415_v26, %v3419_v63  ;;  %v3427_v49 = vld [vmem:[#allocation7 + $0x1e8] sm:$0xff]  ;;  %v3430_v26 = vld [vmem:[#allocation7 + $0x200] sm:$0xff] }
 0x3e6   :  { %12006 = vst [vmem:[#allocation94_spill] sm:$0xff] %v10280_v34  ;;  %12007 = vst [vmem:[#allocation95_spill] sm:$0xff] %v10282_v57 }
 0x3e7   :  { %4145 = vmatpush1.bf16.msra.mxu0 %v10267_v44  ;;  %4186 = vmatpush1.bf16.msra.mxu1 %v10271_v37  ;;  %v3423_v37 = vld [vmem:[#allocation7 + $0x1c8] sm:$0xff]  ;;  %v10288_v44 = vcombine.high %v3422_v41, %v3426_v33 }
 0x3e8   :  { %4146 = vmatprep.subr.bf16.mxu0 %v10276_v38  ;;  %4187 = vmatprep.subr.bf16.mxu1 %v10282_v57  ;;  %v10292_v36 = vcombine.low %v3423_v37, %v3427_v49  ;;  %v10294_v63 = vcombine.high %v3423_v37, %v3427_v49  ;;  %v3431_v57 = vld [vmem:[#allocation7 + $0x208] sm:$0xff]  ;;  %v3438_v37 = vld [vmem:[#allocation7 + $0x240] sm:$0xff] }
 0x3e9   :  { %12008 = vst [vmem:[#allocation97_spill] sm:$0xff] %v10288_v44  ;;  %v3435_v38 = vld [vmem:[#allocation7 + $0x228] sm:$0xff] }
 0x3ea   :  { %12010 = vst [vmem:[#allocation98_spill] sm:$0xff] %v10292_v36  ;;  %12011 = vst [vmem:[#allocation99_spill] sm:$0xff] %v10294_v63  ;;  %v10304_v33 = vcombine.low %v3431_v57, %v3435_v38  ;;  %v10306_v49 = vcombine.high %v3431_v57, %v3435_v38  ;;  %v3446_v57 = vld [vmem:[#allocation7 + $0x280] sm:$0xff] }
 0x3eb   :  { %4147 = vmatpush1.bf16.msra.mxu0 %v10278_v32  ;;  %4188 = vmatpush1.bf16.msra.mxu1 %v10280_v34  ;;  %v3434_v32 = vld [vmem:[#allocation7 + $0x220] sm:$0xff] }
 0x3ec   :  { %4148 = vmatprep.subr.bf16.mxu0 %v10288_v44  ;;  %4189 = vmatprep.subr.bf16.mxu1 %v10294_v63  ;;  %v10300_v34 = vcombine.high %v3430_v26, %v3434_v32  ;;  %v10302_v41 = vcombine.low %v3430_v26, %v3434_v32  ;;  %12014 = vst [vmem:[#allocation102_spill] sm:$0xff] %v10304_v33  ;;  %12015 = vst [vmem:[#allocation103_spill] sm:$0xff] %v10306_v49  ;;  %v3439_v63 = vld [vmem:[#allocation7 + $0x248] sm:$0xff] }
 0x3ed   :  { %v3443_v44 = vld [vmem:[#allocation7 + $0x268] sm:$0xff] }
 0x3ee   :  { %12012 = vst [vmem:[#allocation101_spill] sm:$0xff] %v10300_v34  ;;  %12013 = vst [vmem:[#allocation104_spill] sm:$0xff] %v10302_v41  ;;  %v10316_v26 = vcombine.low %v3439_v63, %v3443_v44  ;;  %v10318_v38 = vcombine.high %v3439_v63, %v3443_v44  ;;  %v3454_v63 = vld [vmem:[#allocation7 + $0x2c0] sm:$0xff] }
 0x3ef   :  { %4149 = vmatpush1.bf16.msra.mxu0 %v10290_v42  ;;  %4190 = vmatpush1.bf16.msra.mxu1 %v10292_v36  ;;  %v3442_v42 = vld [vmem:[#allocation7 + $0x260] sm:$0xff] }
 0x3f0   :  { %4150 = vmatprep.subr.bf16.mxu0 %v10300_v34  ;;  %4191 = vmatprep.subr.bf16.mxu1 %v10306_v49  ;;  %v10312_v36 = vcombine.high %v3438_v37, %v3442_v42  ;;  %v10314_v32 = vcombine.low %v3438_v37, %v3442_v42  ;;  %12018 = vst [vmem:[#allocation106_spill] sm:$0xff] %v10316_v26  ;;  %12019 = vst [vmem:[#allocation107_spill] sm:$0xff] %v10318_v38  ;;  %v3447_v49 = vld [vmem:[#allocation7 + $0x288] sm:$0xff] }
 0x3f1   :  { %v3451_v34 = vld [vmem:[#allocation7 + $0x2a8] sm:$0xff] }
 0x3f2   :  { %12016 = vst [vmem:[#allocation105_spill] sm:$0xff] %v10312_v36  ;;  %12017 = vst [vmem:[#allocation108_spill] sm:$0xff] %v10314_v32  ;;  %v10328_v37 = vcombine.low %v3447_v49, %v3451_v34  ;;  %v10330_v44 = vcombine.high %v3447_v49, %v3451_v34  ;;  %v3462_v49 = vld [vmem:[#allocation7 + $0x300] sm:$0xff] }
 0x3f3   :  { %4151 = vmatpush1.bf16.msra.mxu0 %v10302_v41  ;;  %4192 = vmatpush1.bf16.msra.mxu1 %v10304_v33  ;;  %v3450_v41 = vld [vmem:[#allocation7 + $0x2a0] sm:$0xff] }
 0x3f4   :  { %4152 = vmatprep.subr.bf16.mxu0 %v10312_v36  ;;  %4193 = vmatprep.subr.bf16.mxu1 %v10318_v38  ;;  %v10324_v33 = vcombine.high %v3446_v57, %v3450_v41  ;;  %v10326_v42 = vcombine.low %v3446_v57, %v3450_v41  ;;  %12022 = vst [vmem:[#allocation110_spill] sm:$0xff] %v10328_v37  ;;  %12023 = vst [vmem:[#allocation111_spill] sm:$0xff] %v10330_v44  ;;  %v3455_v38 = vld [vmem:[#allocation7 + $0x2c8] sm:$0xff] }
 0x3f5   :  { %v3459_v36 = vld [vmem:[#allocation7 + $0x2e8] sm:$0xff] }
 0x3f6   :  { %12020 = vst [vmem:[#allocation109_spill] sm:$0xff] %v10324_v33  ;;  %12021 = vst [vmem:[#allocation112_spill] sm:$0xff] %v10326_v42  ;;  %v10340_v57 = vcombine.low %v3455_v38, %v3459_v36  ;;  %v10342_v34 = vcombine.high %v3455_v38, %v3459_v36  ;;  %v3470_v38 = vld [vmem:[#allocation7 + $0x340] sm:$0xff] }
 0x3f7   :  { %4153 = vmatpush1.bf16.msra.mxu0 %v10314_v32  ;;  %4194 = vmatpush1.bf16.msra.mxu1 %v10316_v26  ;;  %v3458_v32 = vld [vmem:[#allocation7 + $0x2e0] sm:$0xff] }
 0x3f8   :  { %4154 = vmatprep.subr.bf16.mxu0 %v10324_v33  ;;  %4195 = vmatprep.subr.bf16.mxu1 %v10330_v44  ;;  %v10336_v26 = vcombine.high %v3454_v63, %v3458_v32  ;;  %v10338_v41 = vcombine.low %v3454_v63, %v3458_v32  ;;  %12026 = vst [vmem:[#allocation114_spill] sm:$0xff] %v10340_v57  ;;  %12027 = vst [vmem:[#allocation115_spill] sm:$0xff] %v10342_v34  ;;  %v3463_v44 = vld [vmem:[#allocation7 + $0x308] sm:$0xff] }
 0x3f9   :  { %v3467_v33 = vld [vmem:[#allocation7 + $0x328] sm:$0xff] }
 0x3fa   :  { %12024 = vst [vmem:[#allocation113_spill] sm:$0xff] %v10336_v26  ;;  %12025 = vst [vmem:[#allocation116_spill] sm:$0xff] %v10338_v41  ;;  %v10352_v63 = vcombine.low %v3463_v44, %v3467_v33  ;;  %v10354_v36 = vcombine.high %v3463_v44, %v3467_v33 }
 0x3fb   :  { %4155 = vmatpush1.bf16.msra.mxu0 %v10326_v42  ;;  %4196 = vmatpush1.bf16.msra.mxu1 %v10328_v37  ;;  %v3466_v42 = vld [vmem:[#allocation7 + $0x320] sm:$0xff] }
 0x3fc   :  { %4156 = vmatprep.subr.bf16.mxu0 %v10336_v26  ;;  %4197 = vmatprep.subr.bf16.mxu1 %v10342_v34  ;;  %v10348_v37 = vcombine.high %v3462_v49, %v3466_v42  ;;  %v10350_v32 = vcombine.low %v3462_v49, %v3466_v42  ;;  %v3471_v34 = vld [vmem:[#allocation7 + $0x348] sm:$0xff] }
 0x3fd   :  { %v3475_v42 = vld [vmem:[#allocation7 + $0x368] sm:$0xff] }
 0x3fe   :  { %v10364_v49 = vcombine.low %v3471_v34, %v3475_v42  ;;  %v10366_v33 = vcombine.high %v3471_v34, %v3475_v42 }
 0x3ff   :  { %4157 = vmatpush1.bf16.msra.mxu0 %v10338_v41  ;;  %4198 = vmatpush1.bf16.msra.mxu1 %v10340_v57  ;;  %v3474_v41 = vld [vmem:[#allocation7 + $0x360] sm:$0xff] }
 0x400   :  { %4158 = vmatprep.subr.bf16.mxu0 %v10348_v37  ;;  %4199 = vmatprep.subr.bf16.mxu1 %v10354_v36  ;;  %v10360_v57 = vcombine.low %v3470_v38, %v3474_v41  ;;  %v10362_v26 = vcombine.high %v3470_v38, %v3474_v41  ;;  %12030 = vst [vmem:[#allocation53_spill] sm:$0xff] %v10364_v49  ;;  %12031 = vst [vmem:[#allocation56_spill] sm:$0xff] %v10366_v33 }
 0x402   :  { %12028 = vst [vmem:[#allocation50_spill] sm:$0xff] %v10360_v57  ;;  %12029 = vst [vmem:[#allocation54_spill] sm:$0xff] %v10362_v26 }
 0x403   :  { %4159 = vmatpush1.bf16.msra.mxu0 %v10350_v32  ;;  %4200 = vmatpush1.bf16.msra.mxu1 %v10352_v63 }
 0x404   :  { %4160 = vmatprep.subr.bf16.mxu0 %v10362_v26  ;;  %4201 = vmatprep.subr.bf16.mxu1 %v10366_v33 }
 0x407   :  { %4161 = vmatpush1.bf16.msra.mxu0 %v10360_v57  ;;  %4202 = vmatpush1.bf16.msra.mxu1 %v10364_v49 }
 0x408   :  { %4162 = vmatprep.subr.bf16.mxu0 %v9964_v15  ;;  %4203 = vmatprep.subr.bf16.mxu1 %v9968_v6  ;;  %v12032_v15 = vld [vmem:[#allocation55_spill] sm:$0xff]  ;;  %v12033_v6 = vld [vmem:[#allocation58_spill] sm:$0xff] }
 0x409   :  { %v207_v44 = vadd.f32 %v12032_v15, %v11941_v10 }
 0x40b   :  { %4163 = vmatpush1.bf16.msra.mxu0 %v9962_v53  ;;  %4204 = vmatpush1.bf16.msra.mxu1 %v9966_v1  ;;  %v280_v53 = vadd.f32 %v12033_v6, %v11943_v59  ;;  %v12034_v1 = vld [vmem:[#allocation57_spill] sm:$0xff] }
 0x40c   :  { %4164 = vmatprep.subr.bf16.mxu0 %v9970_v52  ;;  %4205 = vmatprep.subr.bf16.mxu1 %v9973_v58  ;;  %v209_v41 = vadd.f32 %v12034_v1, %v11945_v43  ;;  %v12035_v52 = vld [vmem:[#allocation59_spill] sm:$0xff] }
 0x40d   :  { %v282_v58 = vadd.f32 %v12035_v52, %v11947_v60 }
 0x40f   :  { %4165 = vmatpush1.bf16.msra.mxu0 %v9977_v11  ;;  %4206 = vmatpush1.bf16.msra.mxu1 %v9981_v4 }
 0x410   :  { %4216 = vmatprep.subr.bf16.mxu0 %v9986_v31  ;;  %4257 = vmatprep.subr.bf16.mxu1 %v9992_v9 }
 0x465   :  { %v3175_v34 = vpop.f32.mrb[32].mxu0  ;;  %v3216_v11 = vpop.f32.mrb[32].mxu1 }
 0x466   :  { %v3335_v38 = vadd.f32 %v3175_v34, %v207_v44  ;;  %v3337_v4 = vadd.f32 %v3216_v11, %v280_v53  ;;  %v3177_v42 = vpop.f32.mrb[33].mxu0  ;;  %v3218_v31 = vpop.f32.mrb[33].mxu1 }
 0x467   :  { %v3336_v49 = vadd.f32 %v3177_v42, %v209_v41  ;;  %v3338_v9 = vadd.f32 %v3218_v31, %v282_v58  ;;  %v3179_v57 = vpop.f32.mrb[34].mxu0  ;;  %v3220_v33 = vpop.f32.mrb[34].mxu1 }
 0x468   :  { %v3340_v15 = vmul.f32 0.5, %v3335_v38  ;;  %v3180_v10 = vpop.f32.mrb[35].mxu0  ;;  %v3221_v26 = vpop.f32.mrb[35].mxu1 }
 0x469   :  { %v3341_v6 = vmul.f32 0.5, %v3336_v49 }
 0x46a   :  { %9060 = vtanh.f32 %v3340_v15 }
 0x46b   :  { %9062 = vtanh.f32 %v3341_v6 }
 0x46c   :  { %9064 = vtanh.f32 %v3338_v9 }
 0x474   :  { %v9061_v1 = vpop.eup %9060 }
 0x475   :  { %v3346_v43 = vmul.f32 0.5, %v9061_v1  ;;  %v9063_v52 = vpop.eup %9062 }
 0x476   :  { %v3347_v59 = vmul.f32 0.5, %v9063_v52  ;;  %v9065_v44 = vpop.eup %9064 }
 0x477   :  { %v3349_v60 = vadd.f32 0.5, %v3346_v43 }
 0x478   :  { %v3350_v53 = vadd.f32 0.5, %v3347_v59 }
 0x479   :  { %v3354_v34 = vmul.f32 %v9065_v44, %v3349_v60 }
 0x47a   :  { %v3353_v41 = vmul.f32 %v3350_v53, %v10005_v30  ;;  %v3342_v30 = vmul.f32 0.5, %v3337_v4 }
 0x47c   :  { %v10391_v58 = vadd.f32 %v3354_v34, %v3353_v41 }
 0x4a5   :  { %v3257_v57 = vpop.f32.mrb[36].mxu0  ;;  %v3298_v33 = vpop.f32.mrb[36].mxu1 }
 0x4a6   :  { %v3305_v10 = vadd.f32 %v3257_v57, %v9816_v20  ;;  %v3259_v26 = vpop.f32.mrb[37].mxu0  ;;  %v3300_v49 = vpop.f32.mrb[37].mxu1  ;;  %v3307_v60 = vadd.f32 %v3298_v33, %v9831_v8 }
 0x4a7   :  { %v3306_v11 = vadd.f32 %v3259_v26, %v9820_v22  ;;  %v3261_v38 = vpop.f32.mrb[38].mxu0  ;;  %v3302_v42 = vpop.f32.mrb[38].mxu1  ;;  %v3308_v59 = vadd.f32 %v3300_v49, %v9825_v23 }
 0x4a8   :  { %v3310_v31 = vmul.f32 0.5, %v3305_v10  ;;  %v3262_v43 = vpop.f32.mrb[39].mxu0  ;;  %v3303_v9 = vpop.f32.mrb[39].mxu1  ;;  %v3312_v6 = vmul.f32 0.5, %v3307_v60 }
 0x4a9   :  { %v3311_v15 = vmul.f32 0.5, %v3306_v11 }
 0x4aa   :  { %9066 = vtanh.f32 %v3310_v31 }
 0x4ab   :  { %9068 = vtanh.f32 %v3311_v15 }
 0x4ac   :  { %9070 = vtanh.f32 %v3308_v59 }
 0x4ad   :  { %9072 = vtanh.f32 %v3342_v30 }
 0x4ae   :  { %9074 = vtanh.f32 %v3312_v6  ;;  %v12060_v6 = vld [vmem:[#allocation38_spill] sm:$0xff] }
 0x4af   :  { %9076 = vtanh.f32 %v10391_v58 }
 0x4b4   :  { %v9067_v1 = vpop.eup %9066 }
 0x4b5   :  { %v3316_v52 = vmul.f32 0.5, %v9067_v1  ;;  %v9069_v44 = vpop.eup %9068  ;;  %v12061_v1 = vld [vmem:[#allocation39_spill] sm:$0xff] }
 0x4b6   :  { %v3317_v34 = vmul.f32 0.5, %v9069_v44  ;;  %v9071_v41 = vpop.eup %9070  ;;  %v12063_v44 = vld [vmem:[#allocation41_spill] sm:$0xff] }
 0x4b7   :  { %v3319_v53 = vadd.f32 0.5, %v3316_v52  ;;  %v9073_v4 = vpop.eup %9072  ;;  %v12062_v52 = vld [vmem:[#allocation40_spill] sm:$0xff] }
 0x4b8   :  { %v3320_v57 = vadd.f32 0.5, %v3317_v34  ;;  %v9075_v33 = vpop.eup %9074  ;;  %v3348_v11 = vmul.f32 0.5, %v9073_v4  ;;  %v12065_v34 = vld [vmem:[#allocation43_spill] sm:$0xff]  ;;  %v12070_v4 = vld [vmem:[#allocation48_spill] sm:$0xff] }
 0x4b9   :  { %v3324_v10 = vmul.f32 %v9071_v41, %v3319_v53  ;;  %v3318_v38 = vmul.f32 0.5, %v9075_v33  ;;  %v9077_v42 = vpop.eup %9076  ;;  %v12064_v53 = vld [vmem:[#allocation42_spill] sm:$0xff]  ;;  %v12066_v41 = vld [vmem:[#allocation44_spill] sm:$0xff]  ;;  %v12072_v33 = vld [vmem:[#allocation51_spill] sm:$0xff] }
 0x4ba   :  { %v3323_v26 = vmul.f32 %v3320_v57, %v10013_v56  ;;  %v3351_v31 = vadd.f32 0.5, %v3348_v11  ;;  %v12038_v56 = vld [vmem:[#allocation16_spill] sm:$0xff]  ;;  %v12067_v57 = vld [vmem:[#allocation45_spill] sm:$0xff] }
 0x4bb   :  { %v3321_v43 = vadd.f32 0.5, %v3318_v38  ;;  %v12073_v11 = vld [vmem:[#allocation52_spill] sm:$0xff]  ;;  %v12074_v38 = vld [vmem:[#allocation79_spill] sm:$0xff] }
 0x4bc   :  { %v10399_v49 = vadd.f32 %v3324_v10, %v3323_v26  ;;  %v3357_v15 = vmul.f32 %v9077_v42, %v3351_v31  ;;  %v12068_v10 = vld [vmem:[#allocation46_spill] sm:$0xff]  ;;  %v12069_v26 = vld [vmem:[#allocation47_spill] sm:$0xff]  ;;  %v12076_v31 = vld [vmem:[#allocation77_spill] sm:$0xff] }
 0x4bd   :  { %v12075_v42 = vld [vmem:[#allocation78_spill] sm:$0xff] }
 0x4be   :  { %9078 = vtanh.f32 %v10399_v49  ;;  %v10402_v30 = vpack.c.bf16 %v3357_v15, %v3357_v15  ;;  %v12079_v15 = vld [vmem:[#allocation81_spill] sm:$0xff] }
 0x4c8   :  { %v9079_v9 = vpop.eup %9078 }
 0x4c9   :  { %v3327_v59 = vmul.f32 %v9079_v9, %v3321_v43  ;;  %v12077_v43 = vld [vmem:[#allocation76_spill] sm:$0xff] }
 0x4ca   :  { %v12078_v9 = vld [vmem:[#allocation80_spill] sm:$0xff] }
 0x4cb   :  { %v3365_v60 = vpack.c.bf16 %v3327_v59, %v3327_v59  ;;  %v12080_v59 = vld [vmem:[#allocation82_spill] sm:$0xff] }
 0x4cd   :  { %4166 = vmatprep.mubr.bf16.mxu0 %v3365_v60  ;;  %4207 = vmatprep.mubr.bf16.mxu1 %v3365_v60 }
 0x4ce   :  { %4167 = vmatmul.mubr.bf16.vlgmr.msra.gmra.mrb[40].mxu0 %v10402_v30  ;;  %4208 = vmatmul.mubr.bf16.vlgmr.msra.gmra.mrb[40].mxu1 %v10402_v30 }
 0x4cf   :  { %4217 = vmatpush1.bf16.msra.mxu0 %v9988_v14  ;;  %4258 = vmatpush1.bf16.msra.mxu1 %v9990_v18  ;;  %v12036_v14 = vld [vmem:[#allocation14_spill] sm:$0xff]  ;;  %v12037_v18 = vld [vmem:[#allocation15_spill] sm:$0xff] }
 0x4d0   :  { %4248 = vmatprep.mubr.bf16.mxu0 %v3365_v60  ;;  %4289 = vmatprep.mubr.bf16.mxu1 %v3365_v60  ;;  %v12081_v60 = vld [vmem:[#allocation83_spill] sm:$0xff] }
 0x4d1   :  { %4218 = vmatprep.subr.bf16.mxu0 %v10018_v21  ;;  %4259 = vmatprep.subr.bf16.mxu1 %v10020_v62  ;;  %v12039_v21 = vld [vmem:[#allocation17_spill] sm:$0xff]  ;;  %v12040_v62 = vld [vmem:[#allocation18_spill] sm:$0xff] }
 0x4d3   :  { %4219 = vmatpush1.bf16.msra.mxu0 %v10026_v5  ;;  %4260 = vmatpush1.bf16.msra.mxu1 %v10028_v13  ;;  %v12041_v5 = vld [vmem:[#allocation19_spill] sm:$0xff]  ;;  %v12042_v13 = vld [vmem:[#allocation20_spill] sm:$0xff] }
 0x4d4   :  { %4220 = vmatprep.subr.bf16.mxu0 %v10030_v17  ;;  %4261 = vmatprep.subr.bf16.mxu1 %v10032_v7  ;;  %v12043_v17 = vld [vmem:[#allocation21_spill] sm:$0xff]  ;;  %v12044_v7 = vld [vmem:[#allocation22_spill] sm:$0xff] }
 0x4d7   :  { %4221 = vmatpush1.bf16.msra.mxu0 %v10038_v12  ;;  %4262 = vmatpush1.bf16.msra.mxu1 %v10040_v35  ;;  %v12045_v12 = vld [vmem:[#allocation23_spill] sm:$0xff]  ;;  %v12046_v35 = vld [vmem:[#allocation24_spill] sm:$0xff] }
 0x4d8   :  { %4222 = vmatprep.subr.bf16.mxu0 %v10044_v50  ;;  %4263 = vmatprep.subr.bf16.mxu1 %v10046_v39  ;;  %v12047_v50 = vld [vmem:[#allocation25_spill] sm:$0xff]  ;;  %v12048_v39 = vld [vmem:[#allocation26_spill] sm:$0xff] }
 0x4db   :  { %4223 = vmatpush1.bf16.msra.mxu0 %v10050_v48  ;;  %4264 = vmatpush1.bf16.msra.mxu1 %v10052_v54  ;;  %v12049_v48 = vld [vmem:[#allocation27_spill] sm:$0xff]  ;;  %v12050_v54 = vld [vmem:[#allocation28_spill] sm:$0xff] }
 0x4dc   :  { %4224 = vmatprep.subr.bf16.mxu0 %v10056_v40  ;;  %4265 = vmatprep.subr.bf16.mxu1 %v10058_v55  ;;  %v12051_v40 = vld [vmem:[#allocation29_spill] sm:$0xff]  ;;  %v12052_v55 = vld [vmem:[#allocation30_spill] sm:$0xff] }
 0x4df   :  { %4225 = vmatpush1.bf16.msra.mxu0 %v10062_v2  ;;  %4266 = vmatpush1.bf16.msra.mxu1 %v10064_v3  ;;  %v12053_v2 = vld [vmem:[#allocation31_spill] sm:$0xff]  ;;  %v12054_v3 = vld [vmem:[#allocation32_spill] sm:$0xff] }
 0x4e0   :  { %4226 = vmatprep.subr.bf16.mxu0 %v10068_v16  ;;  %4267 = vmatprep.subr.bf16.mxu1 %v10070_v24  ;;  %v12055_v16 = vld [vmem:[#allocation33_spill] sm:$0xff]  ;;  %v12056_v24 = vld [vmem:[#allocation34_spill] sm:$0xff] }
 0x4e3   :  { %4227 = vmatpush1.bf16.msra.mxu0 %v10074_v51  ;;  %4268 = vmatpush1.bf16.msra.mxu1 %v10076_v25  ;;  %v12057_v51 = vld [vmem:[#allocation35_spill] sm:$0xff]  ;;  %v12058_v25 = vld [vmem:[#allocation36_spill] sm:$0xff] }
 0x4e4   :  { %4228 = vmatprep.subr.bf16.mxu0 %v10080_v45  ;;  %4269 = vmatprep.subr.bf16.mxu1 %v12036_v14  ;;  %v12059_v45 = vld [vmem:[#allocation37_spill] sm:$0xff]  ;;  %v12082_v14 = vld [vmem:[#allocation84_spill] sm:$0xff] }
 0x4e7   :  { %4229 = vmatpush1.bf16.msra.mxu0 %v12037_v18  ;;  %4270 = vmatpush1.bf16.msra.mxu1 %v12038_v56  ;;  %v12083_v18 = vld [vmem:[#allocation85_spill] sm:$0xff]  ;;  %v12085_v56 = vld [vmem:[#allocation87_spill] sm:$0xff] }
 0x4e8   :  { %4230 = vmatprep.subr.bf16.mxu0 %v12039_v21  ;;  %4271 = vmatprep.subr.bf16.mxu1 %v12040_v62  ;;  %v12086_v21 = vld [vmem:[#allocation88_spill] sm:$0xff]  ;;  %v12087_v62 = vld [vmem:[#allocation89_spill] sm:$0xff] }
 0x4eb   :  { %4231 = vmatpush1.bf16.msra.mxu0 %v12041_v5  ;;  %4272 = vmatpush1.bf16.msra.mxu1 %v12042_v13  ;;  %v12091_v5 = vld [vmem:[#allocation93_spill] sm:$0xff] }
 0x4ec   :  { %4232 = vmatprep.subr.bf16.mxu0 %v12043_v17  ;;  %4273 = vmatprep.subr.bf16.mxu1 %v12044_v7  ;;  %v12095_v13 = vld [vmem:[#allocation97_spill] sm:$0xff]  ;;  %v12096_v17 = vld [vmem:[#allocation99_spill] sm:$0xff]  ;;  %v12097_v7 = vld [vmem:[#allocation100_spill] sm:$0xff] }
 0x4ef   :  { %4233 = vmatpush1.bf16.msra.mxu0 %v12045_v12  ;;  %4274 = vmatpush1.bf16.msra.mxu1 %v12046_v35  ;;  %v12099_v12 = vld [vmem:[#allocation101_spill] sm:$0xff]  ;;  %v12100_v35 = vld [vmem:[#allocation103_spill] sm:$0xff] }
 0x4f0   :  { %4234 = vmatprep.subr.bf16.mxu0 %v12047_v50  ;;  %4275 = vmatprep.subr.bf16.mxu1 %v12048_v39  ;;  %v12101_v50 = vld [vmem:[#allocation104_spill] sm:$0xff]  ;;  %v12102_v39 = vld [vmem:[#allocation102_spill] sm:$0xff] }
 0x4f3   :  { %4235 = vmatpush1.bf16.msra.mxu0 %v12049_v48  ;;  %4276 = vmatpush1.bf16.msra.mxu1 %v12050_v54  ;;  %v12103_v48 = vld [vmem:[#allocation105_spill] sm:$0xff]  ;;  %v12104_v54 = vld [vmem:[#allocation107_spill] sm:$0xff] }
 0x4f4   :  { %4236 = vmatprep.subr.bf16.mxu0 %v12051_v40  ;;  %4277 = vmatprep.subr.bf16.mxu1 %v12052_v55  ;;  %v12105_v40 = vld [vmem:[#allocation108_spill] sm:$0xff]  ;;  %v12106_v55 = vld [vmem:[#allocation106_spill] sm:$0xff] }
 0x4f7   :  { %4237 = vmatpush1.bf16.msra.mxu0 %v12053_v2  ;;  %4278 = vmatpush1.bf16.msra.mxu1 %v12054_v3  ;;  %v12107_v2 = vld [vmem:[#allocation109_spill] sm:$0xff]  ;;  %v12108_v3 = vld [vmem:[#allocation111_spill] sm:$0xff] }
 0x4f8   :  { %4238 = vmatprep.subr.bf16.mxu0 %v12055_v16  ;;  %4279 = vmatprep.subr.bf16.mxu1 %v12056_v24  ;;  %v12109_v16 = vld [vmem:[#allocation112_spill] sm:$0xff]  ;;  %v12110_v24 = vld [vmem:[#allocation110_spill] sm:$0xff] }
 0x4fb   :  { %4239 = vmatpush1.bf16.msra.mxu0 %v12057_v51  ;;  %4280 = vmatpush1.bf16.msra.mxu1 %v12058_v25  ;;  %v12111_v51 = vld [vmem:[#allocation113_spill] sm:$0xff]  ;;  %v12112_v25 = vld [vmem:[#allocation115_spill] sm:$0xff] }
 0x4fc   :  { %4240 = vmatprep.subr.bf16.mxu0 %v12059_v45  ;;  %4281 = vmatprep.subr.bf16.mxu1 %v12060_v6  ;;  %v12113_v45 = vld [vmem:[#allocation116_spill] sm:$0xff]  ;;  %v12114_v6 = vld [vmem:[#allocation114_spill] sm:$0xff] }
 0x4ff   :  { %4241 = vmatpush1.bf16.msra.mxu0 %v10158_v0  ;;  %4282 = vmatpush1.bf16.msra.mxu1 %v12061_v1  ;;  %v12071_v0 = vld [vmem:[#allocation49_spill] sm:$0xff]  ;;  %v12115_v1 = vld [vmem:[#allocation54_spill] sm:$0xff] }
 0x500   :  { %4242 = vmatprep.subr.bf16.mxu0 %v12062_v52  ;;  %4283 = vmatprep.subr.bf16.mxu1 %v12063_v44  ;;  %v12116_v52 = vld [vmem:[#allocation56_spill] sm:$0xff]  ;;  %v12117_v44 = vld [vmem:[#allocation50_spill] sm:$0xff] }
 0x503   :  { %4243 = vmatpush1.bf16.msra.mxu0 %v12064_v53  ;;  %4284 = vmatpush1.bf16.msra.mxu1 %v12065_v34  ;;  %v12118_v53 = vld [vmem:[#allocation53_spill] sm:$0xff]  ;;  %v4471_v34 = vld [vmem:[#allocation7 + $0x380] sm:$0xff] }
 0x504   :  { %4244 = vmatprep.subr.bf16.mxu0 %v12066_v41  ;;  %4285 = vmatprep.subr.bf16.mxu1 %v12067_v57  ;;  %v4475_v41 = vld [vmem:[#allocation7 + $0x3a0] sm:$0xff]  ;;  %v4472_v57 = vld [vmem:[#allocation7 + $0x388] sm:$0xff] }
 0x507   :  { %4245 = vmatpush1.bf16.msra.mxu0 %v12068_v10  ;;  %4286 = vmatpush1.bf16.msra.mxu1 %v12069_v26  ;;  %v10526_v10 = vcombine.low %v4471_v34, %v4475_v41  ;;  %v4479_v26 = vld [vmem:[#allocation7 + $0x3c0] sm:$0xff] }
 0x508   :  { %4246 = vmatprep.subr.bf16.mxu0 %v12070_v4  ;;  %4287 = vmatprep.subr.bf16.mxu1 %v12071_v0 }
 0x50b   :  { %4247 = vmatpush1.bf16.msra.mxu0 %v12072_v33  ;;  %4288 = vmatpush1.bf16.msra.mxu1 %v12073_v11  ;;  %v4480_v33 = vld [vmem:[#allocation7 + $0x3c8] sm:$0xff] }
 0x50c   :  { %5127 = vmatprep.subr.bf16.mxu0 %v12074_v38  ;;  %5168 = vmatprep.subr.bf16.mxu1 %v12075_v42  ;;  %v4484_v11 = vld [vmem:[#allocation7 + $0x3e8] sm:$0xff] }
 0x50d   :  { %v10537_v38 = vcombine.high %v4480_v33, %v4484_v11 }
 0x50e   :  { %4249 = vmatmul.mubr.bf16.vlgmr.msra.gmra.mrb[44].mxu0 %v10402_v30  ;;  %4290 = vmatmul.mubr.bf16.vlgmr.msra.gmra.mrb[44].mxu1 %v10402_v30  ;;  %v12084_v30 = vld [vmem:[#allocation86_spill] sm:$0xff] }
 0x50f   :  { %5128 = vmatpush1.bf16.msra.mxu0 %v12076_v31  ;;  %5169 = vmatpush1.bf16.msra.mxu1 %v12077_v43  ;;  %v10545_v31 = vcombine.low %v4480_v33, %v4484_v11  ;;  %v4361_v43 = vld [vmem:[#allocation7 + $0x10] sm:$0xff] }
 0x510   :  { %5129 = vmatprep.subr.bf16.mxu0 %v12078_v9  ;;  %5170 = vmatprep.subr.bf16.mxu1 %v12079_v15  ;;  %v4365_v9 = vld [vmem:[#allocation7 + $0x30] sm:$0xff]  ;;  %v4362_v15 = vld [vmem:[#allocation7 + $0x18] sm:$0xff] }
 0x513   :  { %5130 = vmatpush1.bf16.msra.mxu0 %v12080_v59  ;;  %5171 = vmatpush1.bf16.msra.mxu1 %v12081_v60  ;;  %v10550_v59 = vcombine.high %v4361_v43, %v4365_v9  ;;  %v4366_v60 = vld [vmem:[#allocation7 + $0x38] sm:$0xff] }
 0x514   :  { %5131 = vmatprep.subr.bf16.mxu0 %v12082_v14  ;;  %5172 = vmatprep.subr.bf16.mxu1 %v12083_v18  ;;  %v10552_v14 = vcombine.low %v4361_v43, %v4365_v9  ;;  %v10554_v18 = vcombine.low %v4362_v15, %v4366_v60 }
 0x517   :  { %5132 = vmatpush1.bf16.msra.mxu0 %v10231_v27  ;;  %5173 = vmatpush1.bf16.msra.mxu1 %v10235_v29  ;;  %v12088_v27 = vld [vmem:[#allocation90_spill] sm:$0xff]  ;;  %v12089_v29 = vld [vmem:[#allocation91_spill] sm:$0xff] }
 0x518   :  { %5133 = vmatprep.subr.bf16.mxu0 %v10237_v61  ;;  %5174 = vmatprep.subr.bf16.mxu1 %v12084_v30  ;;  %v12090_v61 = vld [vmem:[#allocation92_spill] sm:$0xff]  ;;  %v10556_v30 = vcombine.high %v4362_v15, %v4366_v60 }
 0x51b   :  { %5134 = vmatpush1.bf16.msra.mxu0 %v10243_v46  ;;  %5175 = vmatpush1.bf16.msra.mxu1 %v10247_v28  ;;  %v12092_v46 = vld [vmem:[#allocation95_spill] sm:$0xff]  ;;  %v12093_v28 = vld [vmem:[#allocation96_spill] sm:$0xff] }
 0x51c   :  { %5135 = vmatprep.subr.bf16.mxu0 %v10249_v19  ;;  %5176 = vmatprep.subr.bf16.mxu1 %v12085_v56  ;;  %v12094_v19 = vld [vmem:[#allocation94_spill] sm:$0xff] }
 0x51d   :  { %v12119_v56 = vld [vmem:[#allocation10_spill] sm:$0xff] }
 0x51f   :  { %5136 = vmatpush1.bf16.msra.mxu0 %v12086_v21  ;;  %5177 = vmatpush1.bf16.msra.mxu1 %v12087_v62  ;;  %v12120_v21 = vld [vmem:[#allocation60_spill] sm:$0xff] }
 0x520   :  { %5137 = vmatprep.subr.bf16.mxu0 %v10261_v47  ;;  %5178 = vmatprep.subr.bf16.mxu1 %v12088_v27  ;;  %v12098_v47 = vld [vmem:[#allocation98_spill] sm:$0xff]  ;;  %v213_v62 = vadd.f32 %v12120_v21, %v12119_v56  ;;  %v12121_v27 = vld [vmem:[#allocation13_spill] sm:$0xff] }
 0x523   :  { %5138 = vmatpush1.bf16.msra.mxu0 %v12089_v29  ;;  %5179 = vmatpush1.bf16.msra.mxu1 %v12090_v61  ;;  %v12122_v29 = vld [vmem:[#allocation62_spill] sm:$0xff] }
 0x524   :  { %5139 = vmatprep.subr.bf16.mxu0 %v12091_v5  ;;  %5180 = vmatprep.subr.bf16.mxu1 %v12092_v46  ;;  %v286_v61 = vadd.f32 %v12122_v29, %v12121_v27  ;;  %v12123_v5 = vld [vmem:[#allocation11_spill] sm:$0xff]  ;;  %v12124_v46 = vld [vmem:[#allocation61_spill] sm:$0xff] }
 0x527   :  { %5140 = vmatpush1.bf16.msra.mxu0 %v12093_v28  ;;  %5181 = vmatpush1.bf16.msra.mxu1 %v12094_v19  ;;  %v215_v28 = vadd.f32 %v12124_v46, %v12123_v5  ;;  %v12125_v19 = vld [vmem:[#allocation12_spill] sm:$0xff] }
 0x528   :  { %5141 = vmatprep.subr.bf16.mxu0 %v12095_v13  ;;  %5182 = vmatprep.subr.bf16.mxu1 %v12096_v17  ;;  %v12126_v13 = vld [vmem:[#allocation64_spill] sm:$0xff] }
 0x529   :  { %v288_v17 = vadd.f32 %v12126_v13, %v12125_v19 }
 0x52b   :  { %5142 = vmatpush1.bf16.msra.mxu0 %v12097_v7  ;;  %5183 = vmatpush1.bf16.msra.mxu1 %v12098_v47 }
 0x52c   :  { %5143 = vmatprep.subr.bf16.mxu0 %v12099_v12  ;;  %5184 = vmatprep.subr.bf16.mxu1 %v12100_v35 }
 0x52f   :  { %5144 = vmatpush1.bf16.msra.mxu0 %v12101_v50  ;;  %5185 = vmatpush1.bf16.msra.mxu1 %v12102_v39 }
 0x530   :  { %5145 = vmatprep.subr.bf16.mxu0 %v12103_v48  ;;  %5186 = vmatprep.subr.bf16.mxu1 %v12104_v54 }
 0x533   :  { %5146 = vmatpush1.bf16.msra.mxu0 %v12105_v40  ;;  %5187 = vmatpush1.bf16.msra.mxu1 %v12106_v55 }
 0x534   :  { %5147 = vmatprep.subr.bf16.mxu0 %v12107_v2  ;;  %5188 = vmatprep.subr.bf16.mxu1 %v12108_v3 }
 0x537   :  { %5148 = vmatpush1.bf16.msra.mxu0 %v12109_v16  ;;  %5189 = vmatpush1.bf16.msra.mxu1 %v12110_v24 }
 0x538   :  { %5149 = vmatprep.subr.bf16.mxu0 %v12111_v51  ;;  %5190 = vmatprep.subr.bf16.mxu1 %v12112_v25 }
 0x53b   :  { %5150 = vmatpush1.bf16.msra.mxu0 %v12113_v45  ;;  %5191 = vmatpush1.bf16.msra.mxu1 %v12114_v6 }
 0x53c   :  { %5151 = vmatprep.subr.bf16.mxu0 %v10348_v37  ;;  %5192 = vmatprep.subr.bf16.mxu1 %v10354_v36  ;;  %v10528_v37 = vcombine.high %v4471_v34, %v4475_v41  ;;  %v4476_v36 = vld [vmem:[#allocation7 + $0x3a8] sm:$0xff] }
 0x53d   :  { %v10530_v4 = vcombine.low %v4472_v57, %v4476_v36 }
 0x53f   :  { %5152 = vmatpush1.bf16.msra.mxu0 %v10350_v32  ;;  %5193 = vmatpush1.bf16.msra.mxu1 %v10352_v63  ;;  %v4483_v32 = vld [vmem:[#allocation7 + $0x3e0] sm:$0xff]  ;;  %v10532_v63 = vcombine.high %v4472_v57, %v4476_v36 }
 0x540   :  { %5153 = vmatprep.subr.bf16.mxu0 %v12115_v1  ;;  %5194 = vmatprep.subr.bf16.mxu1 %v12116_v52  ;;  %v10534_v0 = vcombine.high %v4479_v26, %v4483_v32  ;;  %v10541_v42 = vcombine.low %v4479_v26, %v4483_v32 }
 0x543   :  { %5154 = vmatpush1.bf16.msra.mxu0 %v12117_v44  ;;  %5195 = vmatpush1.bf16.msra.mxu1 %v12118_v53 }
 0x544   :  { %5155 = vmatprep.subr.bf16.mxu0 %v10528_v37  ;;  %5196 = vmatprep.subr.bf16.mxu1 %v10532_v63 }
 0x547   :  { %5156 = vmatpush1.bf16.msra.mxu0 %v10526_v10  ;;  %5197 = vmatpush1.bf16.msra.mxu1 %v10530_v4 }
 0x548   :  { %5157 = vmatprep.subr.bf16.mxu0 %v10534_v0  ;;  %5198 = vmatprep.subr.bf16.mxu1 %v10537_v38 }
 0x54b   :  { %5158 = vmatpush1.bf16.msra.mxu0 %v10541_v42  ;;  %5199 = vmatpush1.bf16.msra.mxu1 %v10545_v31 }
 0x54c   :  { %5209 = vmatprep.subr.bf16.mxu0 %v10550_v59  ;;  %5250 = vmatprep.subr.bf16.mxu1 %v10556_v30 }
 0x5a1   :  { %v4168_v7 = vpop.f32.mrb[40].mxu0  ;;  %v4209_v47 = vpop.f32.mrb[40].mxu1 }
 0x5a2   :  { %v4328_v12 = vadd.f32 %v4168_v7, %v213_v62  ;;  %v4330_v35 = vadd.f32 %v4209_v47, %v286_v61  ;;  %v4170_v50 = vpop.f32.mrb[41].mxu0  ;;  %v4211_v39 = vpop.f32.mrb[41].mxu1 }
 0x5a3   :  { %v4329_v48 = vadd.f32 %v4170_v50, %v215_v28  ;;  %v4331_v54 = vadd.f32 %v4211_v39, %v288_v17  ;;  %v4172_v40 = vpop.f32.mrb[42].mxu0  ;;  %v4213_v55 = vpop.f32.mrb[42].mxu1 }
 0x5a4   :  { %v4333_v2 = vmul.f32 0.5, %v4328_v12  ;;  %v4173_v3 = vpop.f32.mrb[43].mxu0  ;;  %v4214_v16 = vpop.f32.mrb[43].mxu1  ;;  %v4335_v61 = vmul.f32 0.5, %v4330_v35 }
 0x5a5   :  { %v4334_v24 = vmul.f32 0.5, %v4329_v48 }
 0x5a6   :  { %9080 = vtanh.f32 %v4333_v2 }
 0x5a7   :  { %9082 = vtanh.f32 %v4334_v24 }
 0x5a8   :  { %9084 = vtanh.f32 %v4331_v54 }
 0x5b0   :  { %v9081_v51 = vpop.eup %9080 }
 0x5b1   :  { %v4339_v25 = vmul.f32 0.5, %v9081_v51  ;;  %v9083_v45 = vpop.eup %9082 }
 0x5b2   :  { %v4340_v1 = vmul.f32 0.5, %v9083_v45  ;;  %v9085_v52 = vpop.eup %9084 }
 0x5b3   :  { %v4342_v6 = vadd.f32 0.5, %v4339_v25 }
 0x5b4   :  { %v4343_v44 = vadd.f32 0.5, %v4340_v1  ;;  %v4373_v1 = vld [vmem:[#allocation7 + $0x70] sm:$0xff] }
 0x5b5   :  { %v4347_v53 = vmul.f32 %v9085_v52, %v4342_v6  ;;  %v4369_v6 = vld [vmem:[#allocation7 + $0x50] sm:$0xff]  ;;  %v4370_v52 = vld [vmem:[#allocation7 + $0x58] sm:$0xff] }
 0x5b6   :  { %v4346_v34 = vmul.f32 %v4343_v44, %v10391_v58 }
 0x5b8   :  { %v10569_v41 = vadd.f32 %v4347_v53, %v4346_v34  ;;  %v4377_v34 = vld [vmem:[#allocation7 + $0x90] sm:$0xff] }
 0x5e1   :  { %v4250_v57 = vpop.f32.mrb[44].mxu0  ;;  %v4291_v36 = vpop.f32.mrb[44].mxu1 }
 0x5e2   :  { %v4298_v26 = vadd.f32 %v4250_v57, %v9816_v20  ;;  %v4252_v32 = vpop.f32.mrb[45].mxu0  ;;  %v4293_v33 = vpop.f32.mrb[45].mxu1  ;;  %v4300_v58 = vadd.f32 %v4291_v36, %v9831_v8  ;;  %v10582_v57 = vcombine.high %v4369_v6, %v4373_v1 }
 0x5e3   :  { %v4299_v11 = vadd.f32 %v4252_v32, %v9820_v22  ;;  %v4254_v43 = vpop.f32.mrb[46].mxu0  ;;  %v4295_v9 = vpop.f32.mrb[46].mxu1  ;;  %v4301_v29 = vadd.f32 %v4293_v33, %v9825_v23  ;;  %v4378_v32 = vld [vmem:[#allocation7 + $0x98] sm:$0xff] }
 0x5e4   :  { %v4303_v15 = vmul.f32 0.5, %v4298_v26  ;;  %v4255_v60 = vpop.f32.mrb[47].mxu0  ;;  %v4296_v21 = vpop.f32.mrb[47].mxu1  ;;  %v4305_v46 = vmul.f32 0.5, %v4300_v58  ;;  %v4381_v26 = vld [vmem:[#allocation7 + $0xb0] sm:$0xff]  ;;  %v4382_v33 = vld [vmem:[#allocation7 + $0xb8] sm:$0xff] }
 0x5e5   :  { %v4304_v62 = vmul.f32 0.5, %v4299_v11  ;;  %v10590_v11 = vcombine.low %v4369_v6, %v4373_v1  ;;  %v10594_v9 = vcombine.high %v4377_v34, %v4381_v26  ;;  %v4385_v60 = vld [vmem:[#allocation7 + $0xd0] sm:$0xff]  ;;  %v10602_v58 = vcombine.low %v4377_v34, %v4381_v26  ;;  %v4410_v6 = vld [vmem:[#allocation7 + $0x198] sm:$0xff] }
 0x5e6   :  { %9086 = vtanh.f32 %v4303_v15  ;;  %v10596_v15 = vcombine.high %v4378_v32, %v4382_v33  ;;  %v4389_v21 = vld [vmem:[#allocation7 + $0xf0] sm:$0xff]  ;;  %v4414_v1 = vld [vmem:[#allocation7 + $0x1b8] sm:$0xff] }
 0x5e7   :  { %9088 = vtanh.f32 %v4304_v62  ;;  %v4386_v62 = vld [vmem:[#allocation7 + $0xd8] sm:$0xff]  ;;  %v10646_v34 = vcombine.high %v4410_v6, %v4414_v1  ;;  %v4417_v26 = vld [vmem:[#allocation7 + $0x1d0] sm:$0xff] }
 0x5e8   :  { %9090 = vtanh.f32 %v4301_v29  ;;  %v4390_v29 = vld [vmem:[#allocation7 + $0xf8] sm:$0xff] }
 0x5e9   :  { %9092 = vtanh.f32 %v4335_v61  ;;  %v10604_v61 = vcombine.low %v4378_v32, %v4382_v33  ;;  %12127 = vst [vmem:[#allocation55_spill] sm:$0xff] %v10646_v34  ;;  %v4421_v32 = vld [vmem:[#allocation7 + $0x1f0] sm:$0xff]  ;;  %v4418_v33 = vld [vmem:[#allocation7 + $0x1d8] sm:$0xff] }
 0x5ea   :  { %9094 = vtanh.f32 %v4305_v46  ;;  %v10608_v46 = vcombine.high %v4385_v60, %v4389_v21 }
 0x5eb   :  { %9096 = vtanh.f32 %v10569_v41 }
 0x5f0   :  { %v9087_v28 = vpop.eup %9086 }
 0x5f1   :  { %v4309_v13 = vmul.f32 0.5, %v9087_v28  ;;  %v9089_v17 = vpop.eup %9088  ;;  %v10610_v28 = vcombine.high %v4386_v62, %v4390_v29 }
 0x5f2   :  { %v4310_v47 = vmul.f32 0.5, %v9089_v17  ;;  %v9091_v12 = vpop.eup %9090  ;;  %v4397_v17 = vld [vmem:[#allocation7 + $0x130] sm:$0xff] }
 0x5f3   :  { %v4312_v7 = vadd.f32 0.5, %v4309_v13  ;;  %v9093_v35 = vpop.eup %9092  ;;  %v4393_v13 = vld [vmem:[#allocation7 + $0x110] sm:$0xff] }
 0x5f4   :  { %v4313_v50 = vadd.f32 0.5, %v4310_v47  ;;  %v9095_v40 = vpop.eup %9094  ;;  %v4341_v55 = vmul.f32 0.5, %v9093_v35  ;;  %v4398_v47 = vld [vmem:[#allocation7 + $0x138] sm:$0xff]  ;;  %v4401_v35 = vld [vmem:[#allocation7 + $0x150] sm:$0xff] }
 0x5f5   :  { %v4317_v39 = vmul.f32 %v9091_v12, %v4312_v7  ;;  %v4311_v2 = vmul.f32 0.5, %v9095_v40  ;;  %v9097_v3 = vpop.eup %9096  ;;  %v4394_v7 = vld [vmem:[#allocation7 + $0x118] sm:$0xff]  ;;  %v10614_v12 = vcombine.low %v4385_v60, %v4389_v21  ;;  %v4405_v40 = vld [vmem:[#allocation7 + $0x170] sm:$0xff] }
 0x5f6   :  { %v4316_v48 = vmul.f32 %v4313_v50, %v10399_v49  ;;  %v4344_v16 = vadd.f32 0.5, %v4341_v55  ;;  %v4374_v49 = vld [vmem:[#allocation7 + $0x78] sm:$0xff]  ;;  %v10616_v50 = vcombine.low %v4386_v62, %v4390_v29  ;;  %v10652_v62 = vcombine.low %v4410_v6, %v4414_v1  ;;  %v4437_v6 = vld [vmem:[#allocation7 + $0x270] sm:$0xff] }
 0x5f7   :  { %v4314_v24 = vadd.f32 0.5, %v4311_v2  ;;  %v10584_v36 = vcombine.high %v4370_v52, %v4374_v49  ;;  %v10592_v43 = vcombine.low %v4370_v52, %v4374_v49  ;;  %v4402_v55 = vld [vmem:[#allocation7 + $0x158] sm:$0xff]  ;;  %v10638_v52 = vcombine.low %v4401_v35, %v4405_v40 }
 0x5f8   :  { %v10577_v54 = vadd.f32 %v4317_v39, %v4316_v48  ;;  %v4350_v25 = vmul.f32 %v9097_v3, %v4344_v16  ;;  %v10620_v39 = vcombine.high %v4393_v13, %v4397_v17  ;;  %v10622_v48 = vcombine.high %v4394_v7, %v4398_v47  ;;  %v4406_v2 = vld [vmem:[#allocation7 + $0x178] sm:$0xff]  ;;  %12129 = vst [vmem:[#allocation57_spill] sm:$0xff] %v10652_v62 }
 0x5f9   :  { %v10626_v3 = vcombine.low %v4393_v13, %v4397_v17  ;;  %v10628_v16 = vcombine.low %v4394_v7, %v4398_v47  ;;  %v10640_v49 = vcombine.low %v4402_v55, %v4406_v2  ;;  %v4422_v60 = vld [vmem:[#allocation7 + $0x1f8] sm:$0xff]  ;;  %v10656_v29 = vcombine.high %v4417_v26, %v4421_v32  ;;  %v4425_v17 = vld [vmem:[#allocation7 + $0x210] sm:$0xff] }
 0x5fa   :  { %9098 = vtanh.f32 %v10577_v54  ;;  %v10580_v53 = vpack.c.bf16 %v4350_v25, %v4350_v25  ;;  %v4409_v25 = vld [vmem:[#allocation7 + $0x190] sm:$0xff]  ;;  %v10658_v13 = vcombine.high %v4418_v33, %v4422_v60  ;;  %v4426_v47 = vld [vmem:[#allocation7 + $0x218] sm:$0xff] }
 0x5fb   :  { %12130 = vst [vmem:[#allocation59_spill] sm:$0xff] %v10656_v29  ;;  %v4429_v7 = vld [vmem:[#allocation7 + $0x230] sm:$0xff]  ;;  %v4434_v1 = vld [vmem:[#allocation7 + $0x258] sm:$0xff] }
 0x5fc   :  { %12131 = vst [vmem:[#allocation14_spill] sm:$0xff] %v10658_v13 }
 0x604   :  { %v9099_v51 = vpop.eup %9098 }
 0x605   :  { %v4320_v45 = vmul.f32 %v9099_v51, %v4314_v24  ;;  %v10632_v24 = vcombine.high %v4401_v35, %v4405_v40  ;;  %v10634_v51 = vcombine.high %v4402_v55, %v4406_v2  ;;  %v4430_v35 = vld [vmem:[#allocation7 + $0x238] sm:$0xff]  ;;  %v10662_v40 = vcombine.low %v4417_v26, %v4421_v32 }
 0x606   :  { %v10664_v55 = vcombine.low %v4418_v33, %v4422_v60  ;;  %v10668_v2 = vcombine.high %v4425_v17, %v4429_v7  ;;  %v10674_v26 = vcombine.low %v4425_v17, %v4429_v7  ;;  %v10676_v32 = vcombine.low %v4426_v47, %v4430_v35 }
 0x607   :  { %v4358_v44 = vpack.c.bf16 %v4320_v45, %v4320_v45  ;;  %v4413_v45 = vld [vmem:[#allocation7 + $0x1b0] sm:$0xff]  ;;  %12132 = vst [vmem:[#allocation15_spill] sm:$0xff] %v10662_v40 }
 0x608   :  { %v10650_v21 = vcombine.low %v4409_v25, %v4413_v45  ;;  %12133 = vst [vmem:[#allocation16_spill] sm:$0xff] %v10664_v55  ;;  %12134 = vst [vmem:[#allocation17_spill] sm:$0xff] %v10668_v2 }
 0x609   :  { %5159 = vmatprep.mubr.bf16.mxu0 %v4358_v44  ;;  %5200 = vmatprep.mubr.bf16.mxu1 %v4358_v44  ;;  %12136 = vst [vmem:[#allocation19_spill] sm:$0xff] %v10674_v26  ;;  %12137 = vst [vmem:[#allocation20_spill] sm:$0xff] %v10676_v32 }
 0x60a   :  { %5160 = vmatmul.mubr.bf16.vlgmr.msra.gmra.mrb[48].mxu0 %v10580_v53  ;;  %5201 = vmatmul.mubr.bf16.vlgmr.msra.gmra.mrb[48].mxu1 %v10580_v53  ;;  %12128 = vst [vmem:[#allocation58_spill] sm:$0xff] %v10650_v21 }
 0x60b   :  { %5210 = vmatpush1.bf16.msra.mxu0 %v10552_v14  ;;  %5251 = vmatpush1.bf16.msra.mxu1 %v10554_v18 }
 0x60c   :  { %5241 = vmatprep.mubr.bf16.mxu0 %v4358_v44  ;;  %5282 = vmatprep.mubr.bf16.mxu1 %v4358_v44  ;;  %v10644_v44 = vcombine.high %v4409_v25, %v4413_v45  ;;  %v10670_v25 = vcombine.high %v4426_v47, %v4430_v35  ;;  %v4433_v45 = vld [vmem:[#allocation7 + $0x250] sm:$0xff] }
 0x60d   :  { %5211 = vmatprep.subr.bf16.mxu0 %v10582_v57  ;;  %5252 = vmatprep.subr.bf16.mxu1 %v10584_v36  ;;  %v10680_v33 = vcombine.high %v4433_v45, %v4437_v6  ;;  %v10686_v17 = vcombine.low %v4433_v45, %v4437_v6 }
 0x60e   :  { %12135 = vst [vmem:[#allocation18_spill] sm:$0xff] %v10670_v25 }
 0x60f   :  { %5212 = vmatpush1.bf16.msra.mxu0 %v10590_v11  ;;  %5253 = vmatpush1.bf16.msra.mxu1 %v10592_v43  ;;  %12138 = vst [vmem:[#allocation21_spill] sm:$0xff] %v10680_v33  ;;  %12140 = vst [vmem:[#allocation23_spill] sm:$0xff] %v10686_v17 }
 0x610   :  { %5213 = vmatprep.subr.bf16.mxu0 %v10594_v9  ;;  %5254 = vmatprep.subr.bf16.mxu1 %v10596_v15 }
 0x613   :  { %5214 = vmatpush1.bf16.msra.mxu0 %v10602_v58  ;;  %5255 = vmatpush1.bf16.msra.mxu1 %v10604_v61 }
 0x614   :  { %5215 = vmatprep.subr.bf16.mxu0 %v10608_v46  ;;  %5256 = vmatprep.subr.bf16.mxu1 %v10610_v28 }
 0x617   :  { %5216 = vmatpush1.bf16.msra.mxu0 %v10614_v12  ;;  %5257 = vmatpush1.bf16.msra.mxu1 %v10616_v50 }
 0x618   :  { %5217 = vmatprep.subr.bf16.mxu0 %v10620_v39  ;;  %5258 = vmatprep.subr.bf16.mxu1 %v10622_v48 }
 0x61b   :  { %5218 = vmatpush1.bf16.msra.mxu0 %v10626_v3  ;;  %5259 = vmatpush1.bf16.msra.mxu1 %v10628_v16 }
 0x61c   :  { %5219 = vmatprep.subr.bf16.mxu0 %v10632_v24  ;;  %5260 = vmatprep.subr.bf16.mxu1 %v10634_v51 }
 0x61f   :  { %5220 = vmatpush1.bf16.msra.mxu0 %v10638_v52  ;;  %5261 = vmatpush1.bf16.msra.mxu1 %v10640_v49 }
 0x620   :  { %5221 = vmatprep.subr.bf16.mxu0 %v10644_v44  ;;  %5262 = vmatprep.subr.bf16.mxu1 %v10646_v34  ;;  %v4438_v34 = vld [vmem:[#allocation7 + $0x278] sm:$0xff] }
 0x621   :  { %v10682_v60 = vcombine.high %v4434_v1, %v4438_v34  ;;  %v10688_v7 = vcombine.low %v4434_v1, %v4438_v34 }
 0x623   :  { %5222 = vmatpush1.bf16.msra.mxu0 %v10650_v21  ;;  %5263 = vmatpush1.bf16.msra.mxu1 %v10652_v62  ;;  %12139 = vst [vmem:[#allocation22_spill] sm:$0xff] %v10682_v60  ;;  %v4442_v62 = vld [vmem:[#allocation7 + $0x298] sm:$0xff]  ;;  %12141 = vst [vmem:[#allocation24_spill] sm:$0xff] %v10688_v7 }
 0x624   :  { %5223 = vmatprep.subr.bf16.mxu0 %v10656_v29  ;;  %5264 = vmatprep.subr.bf16.mxu1 %v10658_v13  ;;  %v4441_v13 = vld [vmem:[#allocation7 + $0x290] sm:$0xff]  ;;  %v4446_v21 = vld [vmem:[#allocation7 + $0x2b8] sm:$0xff] }
 0x625   :  { %v4445_v29 = vld [vmem:[#allocation7 + $0x2b0] sm:$0xff]  ;;  %v10694_v35 = vcombine.high %v4442_v62, %v4446_v21  ;;  %v10700_v34 = vcombine.low %v4442_v62, %v4446_v21 }
 0x626   :  { %v10692_v47 = vcombine.high %v4441_v13, %v4445_v29  ;;  %v10698_v45 = vcombine.low %v4441_v13, %v4445_v29 }
 0x627   :  { %5224 = vmatpush1.bf16.msra.mxu0 %v10662_v40  ;;  %5265 = vmatpush1.bf16.msra.mxu1 %v10664_v55  ;;  %12143 = vst [vmem:[#allocation26_spill] sm:$0xff] %v10694_v35  ;;  %v4450_v55 = vld [vmem:[#allocation7 + $0x2d8] sm:$0xff]  ;;  %12145 = vst [vmem:[#allocation28_spill] sm:$0xff] %v10700_v34 }
 0x628   :  { %5225 = vmatprep.subr.bf16.mxu0 %v10668_v2  ;;  %5266 = vmatprep.subr.bf16.mxu1 %v10670_v25  ;;  %12142 = vst [vmem:[#allocation25_spill] sm:$0xff] %v10692_v47  ;;  %v4449_v25 = vld [vmem:[#allocation7 + $0x2d0] sm:$0xff]  ;;  %v4454_v40 = vld [vmem:[#allocation7 + $0x2f8] sm:$0xff]  ;;  %12144 = vst [vmem:[#allocation27_spill] sm:$0xff] %v10698_v45 }
 0x629   :  { %v4453_v2 = vld [vmem:[#allocation7 + $0x2f0] sm:$0xff]  ;;  %v10706_v1 = vcombine.high %v4450_v55, %v4454_v40  ;;  %v10712_v21 = vcombine.low %v4450_v55, %v4454_v40 }
 0x62a   :  { %v10704_v6 = vcombine.high %v4449_v25, %v4453_v2  ;;  %v10710_v29 = vcombine.low %v4449_v25, %v4453_v2 }
 0x62b   :  { %5226 = vmatpush1.bf16.msra.mxu0 %v10674_v26  ;;  %5267 = vmatpush1.bf16.msra.mxu1 %v10676_v32  ;;  %12147 = vst [vmem:[#allocation30_spill] sm:$0xff] %v10706_v1  ;;  %v4458_v32 = vld [vmem:[#allocation7 + $0x318] sm:$0xff]  ;;  %12149 = vst [vmem:[#allocation32_spill] sm:$0xff] %v10712_v21 }
 0x62c   :  { %5227 = vmatprep.subr.bf16.mxu0 %v10680_v33  ;;  %5268 = vmatprep.subr.bf16.mxu1 %v10682_v60  ;;  %12146 = vst [vmem:[#allocation29_spill] sm:$0xff] %v10704_v6  ;;  %v4457_v60 = vld [vmem:[#allocation7 + $0x310] sm:$0xff]  ;;  %v4462_v26 = vld [vmem:[#allocation7 + $0x338] sm:$0xff]  ;;  %12148 = vst [vmem:[#allocation31_spill] sm:$0xff] %v10710_v29 }
 0x62d   :  { %v4461_v33 = vld [vmem:[#allocation7 + $0x330] sm:$0xff]  ;;  %v10718_v13 = vcombine.high %v4458_v32, %v4462_v26  ;;  %v10724_v40 = vcombine.low %v4458_v32, %v4462_v26 }
 0x62e   :  { %v10716_v62 = vcombine.high %v4457_v60, %v4461_v33  ;;  %v10722_v2 = vcombine.low %v4457_v60, %v4461_v33 }
 0x62f   :  { %5228 = vmatpush1.bf16.msra.mxu0 %v10686_v17  ;;  %5269 = vmatpush1.bf16.msra.mxu1 %v10688_v7  ;;  %12151 = vst [vmem:[#allocation34_spill] sm:$0xff] %v10718_v13  ;;  %v4466_v7 = vld [vmem:[#allocation7 + $0x358] sm:$0xff]  ;;  %12152 = vst [vmem:[#allocation35_spill] sm:$0xff] %v10724_v40 }
 0x630   :  { %5229 = vmatprep.subr.bf16.mxu0 %v10692_v47  ;;  %5270 = vmatprep.subr.bf16.mxu1 %v10694_v35  ;;  %12150 = vst [vmem:[#allocation33_spill] sm:$0xff] %v10716_v62  ;;  %v4465_v35 = vld [vmem:[#allocation7 + $0x350] sm:$0xff]  ;;  %v4470_v17 = vld [vmem:[#allocation7 + $0x378] sm:$0xff] }
 0x631   :  { %v4469_v47 = vld [vmem:[#allocation7 + $0x370] sm:$0xff]  ;;  %v10730_v25 = vcombine.high %v4466_v7, %v4470_v17  ;;  %v10736_v26 = vcombine.low %v4466_v7, %v4470_v17 }
 0x632   :  { %v10728_v55 = vcombine.high %v4465_v35, %v4469_v47  ;;  %v10734_v33 = vcombine.low %v4465_v35, %v4469_v47 }
 0x633   :  { %5230 = vmatpush1.bf16.msra.mxu0 %v10698_v45  ;;  %5271 = vmatpush1.bf16.msra.mxu1 %v10700_v34  ;;  %12154 = vst [vmem:[#allocation37_spill] sm:$0xff] %v10730_v25  ;;  %v4474_v34 = vld [vmem:[#allocation7 + $0x398] sm:$0xff]  ;;  %12156 = vst [vmem:[#allocation39_spill] sm:$0xff] %v10736_v26 }
 0x634   :  { %5231 = vmatprep.subr.bf16.mxu0 %v10704_v6  ;;  %5272 = vmatprep.subr.bf16.mxu1 %v10706_v1  ;;  %12153 = vst [vmem:[#allocation36_spill] sm:$0xff] %v10728_v55  ;;  %v4473_v1 = vld [vmem:[#allocation7 + $0x390] sm:$0xff]  ;;  %v4478_v45 = vld [vmem:[#allocation7 + $0x3b8] sm:$0xff]  ;;  %12155 = vst [vmem:[#allocation38_spill] sm:$0xff] %v10734_v33 }
 0x635   :  { %v4477_v6 = vld [vmem:[#allocation7 + $0x3b0] sm:$0xff]  ;;  %v10742_v60 = vcombine.high %v4474_v34, %v4478_v45  ;;  %v10748_v17 = vcombine.low %v4474_v34, %v4478_v45  ;;  %v5352_v45 = vld [vmem:[#allocation7] sm:$0xff] }
 0x636   :  { %v10740_v32 = vcombine.high %v4473_v1, %v4477_v6  ;;  %v10746_v47 = vcombine.low %v4473_v1, %v4477_v6  ;;  %v5356_v34 = vld [vmem:[#allocation7 + $0x20] sm:$0xff]  ;;  %v5353_v6 = vld [vmem:[#allocation7 + $0x8] sm:$0xff] }
 0x637   :  { %5232 = vmatpush1.bf16.msra.mxu0 %v10710_v29  ;;  %5273 = vmatpush1.bf16.msra.mxu1 %v10712_v21  ;;  %12158 = vst [vmem:[#allocation41_spill] sm:$0xff] %v10742_v60  ;;  %v4482_v21 = vld [vmem:[#allocation7 + $0x3d8] sm:$0xff]  ;;  %12160 = vst [vmem:[#allocation43_spill] sm:$0xff] %v10748_v17  ;;  %v10768_v1 = vcombine.low %v5352_v45, %v5356_v34 }
 0x638   :  { %5233 = vmatprep.subr.bf16.mxu0 %v10716_v62  ;;  %5274 = vmatprep.subr.bf16.mxu1 %v10718_v13  ;;  %12157 = vst [vmem:[#allocation40_spill] sm:$0xff] %v10740_v32  ;;  %v4481_v13 = vld [vmem:[#allocation7 + $0x3d0] sm:$0xff]  ;;  %v4486_v29 = vld [vmem:[#allocation7 + $0x3f8] sm:$0xff]  ;;  %12159 = vst [vmem:[#allocation42_spill] sm:$0xff] %v10746_v47 }
 0x639   :  { %v4485_v62 = vld [vmem:[#allocation7 + $0x3f0] sm:$0xff]  ;;  %v10754_v35 = vcombine.high %v4482_v21, %v4486_v29  ;;  %12165 = vst [vmem:[#allocation48_spill] sm:$0xff] %v10768_v1 }
 0x63a   :  { %v10752_v7 = vcombine.high %v4481_v13, %v4485_v62 }
 0x63b   :  { %5234 = vmatpush1.bf16.msra.mxu0 %v10722_v2  ;;  %5275 = vmatpush1.bf16.msra.mxu1 %v10724_v40  ;;  %12162 = vst [vmem:[#allocation45_spill] sm:$0xff] %v10754_v35  ;;  %v5377_v40 = vld [vmem:[#allocation7 + $0xc8] sm:$0xff] }
 0x63c   :  { %5235 = vmatprep.subr.bf16.mxu0 %v10728_v55  ;;  %5276 = vmatprep.subr.bf16.mxu1 %v10730_v25  ;;  %12161 = vst [vmem:[#allocation44_spill] sm:$0xff] %v10752_v7  ;;  %v10758_v25 = vcombine.low %v4481_v13, %v4485_v62  ;;  %v10770_v62 = vcombine.high %v5352_v45, %v5356_v34  ;;  %v5364_v13 = vld [vmem:[#allocation7 + $0x60] sm:$0xff]  ;;  %v5373_v45 = vld [vmem:[#allocation7 + $0xa8] sm:$0xff] }
 0x63d   :  { %v5380_v55 = vld [vmem:[#allocation7 + $0xe0] sm:$0xff] }
 0x63e   :  { %12163 = vst [vmem:[#allocation46_spill] sm:$0xff] %v10758_v25  ;;  %12166 = vst [vmem:[#allocation49_spill] sm:$0xff] %v10770_v62 }
 0x63f   :  { %5236 = vmatpush1.bf16.msra.mxu0 %v10734_v33  ;;  %5277 = vmatpush1.bf16.msra.mxu1 %v10736_v26  ;;  %v10760_v33 = vcombine.low %v4482_v21, %v4486_v29  ;;  %v5357_v29 = vld [vmem:[#allocation7 + $0x28] sm:$0xff]  ;;  %v5360_v21 = vld [vmem:[#allocation7 + $0x40] sm:$0xff] }
 0x640   :  { %5237 = vmatprep.subr.bf16.mxu0 %v10740_v32  ;;  %5278 = vmatprep.subr.bf16.mxu1 %v10742_v60  ;;  %v5372_v60 = vld [vmem:[#allocation7 + $0xa0] sm:$0xff]  ;;  %v5369_v32 = vld [vmem:[#allocation7 + $0x88] sm:$0xff]  ;;  %v10783_v34 = vcombine.low %v5360_v21, %v5364_v13 }
 0x641   :  { %12164 = vst [vmem:[#allocation47_spill] sm:$0xff] %v10760_v33  ;;  %v5376_v26 = vld [vmem:[#allocation7 + $0xc0] sm:$0xff] }
 0x642   :  { %12171 = vst [vmem:[#allocation77_spill] sm:$0xff] %v10783_v34 }
 0x643   :  { %5238 = vmatpush1.bf16.msra.mxu0 %v10746_v47  ;;  %5279 = vmatpush1.bf16.msra.mxu1 %v10748_v17  ;;  %v5365_v17 = vld [vmem:[#allocation7 + $0x68] sm:$0xff]  ;;  %v5368_v47 = vld [vmem:[#allocation7 + $0x80] sm:$0xff] }
 0x644   :  { %5239 = vmatprep.subr.bf16.mxu0 %v10752_v7  ;;  %5280 = vmatprep.subr.bf16.mxu1 %v10754_v35  ;;  %v10772_v7 = vcombine.low %v5353_v6, %v5357_v29  ;;  %v10774_v35 = vcombine.high %v5353_v6, %v5357_v29  ;;  %v10789_v29 = vcombine.high %v5368_v47, %v5372_v60 }
 0x646   :  { %12167 = vst [vmem:[#allocation51_spill] sm:$0xff] %v10772_v7  ;;  %12168 = vst [vmem:[#allocation52_spill] sm:$0xff] %v10774_v35 }
 0x647   :  { %5240 = vmatpush1.bf16.msra.mxu0 %v10758_v25  ;;  %5281 = vmatpush1.bf16.msra.mxu1 %v10760_v33  ;;  %v10776_v25 = vcombine.high %v5360_v21, %v5364_v13  ;;  %v5361_v33 = vld [vmem:[#allocation7 + $0x48] sm:$0xff]  ;;  %12173 = vst [vmem:[#allocation80_spill] sm:$0xff] %v10789_v29  ;;  %v10795_v21 = vcombine.low %v5368_v47, %v5372_v60 }
 0x648   :  { %6120 = vmatprep.subr.bf16.mxu0 %v10770_v62  ;;  %6161 = vmatprep.subr.bf16.mxu1 %v10774_v35  ;;  %v10787_v6 = vcombine.low %v5361_v33, %v5365_v17  ;;  %v10792_v62 = vcombine.high %v5369_v32, %v5373_v45  ;;  %v5381_v35 = vld [vmem:[#allocation7 + $0xe8] sm:$0xff]  ;;  %v10807_v60 = vcombine.low %v5376_v26, %v5380_v55 }
 0x649   :  { %12169 = vst [vmem:[#allocation79_spill] sm:$0xff] %v10776_v25  ;;  %v10804_v13 = vcombine.high %v5377_v40, %v5381_v35 }
 0x64a   :  { %5242 = vmatmul.mubr.bf16.vlgmr.msra.gmra.mrb[52].mxu0 %v10580_v53  ;;  %5283 = vmatmul.mubr.bf16.vlgmr.msra.gmra.mrb[52].mxu1 %v10580_v53  ;;  %v10779_v53 = vcombine.high %v5361_v33, %v5365_v17  ;;  %12172 = vst [vmem:[#allocation76_spill] sm:$0xff] %v10787_v6  ;;  %12174 = vst [vmem:[#allocation81_spill] sm:$0xff] %v10792_v62  ;;  %v10799_v33 = vcombine.low %v5369_v32, %v5373_v45 }
 0x64b   :  { %6121 = vmatpush1.bf16.msra.mxu0 %v10768_v1  ;;  %6162 = vmatpush1.bf16.msra.mxu1 %v10772_v7  ;;  %v10801_v17 = vcombine.high %v5376_v26, %v5380_v55  ;;  %12175 = vst [vmem:[#allocation82_spill] sm:$0xff] %v10804_v13  ;;  %v5385_v7 = vld [vmem:[#allocation7 + $0x108] sm:$0xff]  ;;  %v10811_v32 = vcombine.low %v5377_v40, %v5381_v35 }
 0x64c   :  { %12170 = vst [vmem:[#allocation78_spill] sm:$0xff] %v10779_v53  ;;  %6122 = vmatprep.subr.bf16.mxu0 %v10776_v25  ;;  %6163 = vmatprep.subr.bf16.mxu1 %v10779_v53  ;;  %v5384_v53 = vld [vmem:[#allocation7 + $0x100] sm:$0xff]  ;;  %v5389_v1 = vld [vmem:[#allocation7 + $0x128] sm:$0xff] }
 0x64d   :  { %v5388_v25 = vld [vmem:[#allocation7 + $0x120] sm:$0xff]  ;;  %v10816_v45 = vcombine.high %v5385_v7, %v5389_v1  ;;  %v10823_v40 = vcombine.low %v5385_v7, %v5389_v1 }
 0x64e   :  { %v10813_v47 = vcombine.high %v5384_v53, %v5388_v25  ;;  %v10819_v55 = vcombine.low %v5384_v53, %v5388_v25  ;;  %v5400_v7 = vld [vmem:[#allocation7 + $0x180] sm:$0xff]  ;;  %v5401_v53 = vld [vmem:[#allocation7 + $0x188] sm:$0xff] }
 0x64f   :  { %6123 = vmatpush1.bf16.msra.mxu0 %v10783_v34  ;;  %6164 = vmatpush1.bf16.msra.mxu1 %v10787_v6  ;;  %12176 = vst [vmem:[#allocation83_spill] sm:$0xff] %v10816_v45  ;;  %v5393_v6 = vld [vmem:[#allocation7 + $0x148] sm:$0xff]  ;;  %12178 = vst [vmem:[#allocation85_spill] sm:$0xff] %v10823_v40  ;;  %v5404_v1 = vld [vmem:[#allocation7 + $0x1a0] sm:$0xff] }
 0x650   :  { %6124 = vmatprep.subr.bf16.mxu0 %v10789_v29  ;;  %6165 = vmatprep.subr.bf16.mxu1 %v10792_v62  ;;  %v5392_v62 = vld [vmem:[#allocation7 + $0x140] sm:$0xff]  ;;  %v5397_v34 = vld [vmem:[#allocation7 + $0x168] sm:$0xff]  ;;  %12177 = vst [vmem:[#allocation84_spill] sm:$0xff] %v10819_v55 }
 0x651   :  { %v5396_v29 = vld [vmem:[#allocation7 + $0x160] sm:$0xff]  ;;  %v10828_v35 = vcombine.high %v5393_v6, %v5397_v34  ;;  %v10835_v25 = vcombine.low %v5393_v6, %v5397_v34 }
 0x652   :  { %v10825_v26 = vcombine.high %v5392_v62, %v5396_v29  ;;  %v5408_v34 = vld [vmem:[#allocation7 + $0x1c0] sm:$0xff] }
 0x653   :  { %6125 = vmatpush1.bf16.msra.mxu0 %v10795_v21  ;;  %6166 = vmatpush1.bf16.msra.mxu1 %v10799_v33  ;;  %12179 = vst [vmem:[#allocation86_spill] sm:$0xff] %v10828_v35  ;;  %12181 = vst [vmem:[#allocation88_spill] sm:$0xff] %v10835_v25  ;;  %v5412_v6 = vld [vmem:[#allocation7 + $0x1e0] sm:$0xff] }
 0x654   :  { %6126 = vmatprep.subr.bf16.mxu0 %v10801_v17  ;;  %6167 = vmatprep.subr.bf16.mxu1 %v10804_v13  ;;  %v10831_v13 = vcombine.low %v5392_v62, %v5396_v29  ;;  %v10842_v62 = vcombine.low %v5400_v7, %v5404_v1 }
 0x656   :  { %12180 = vst [vmem:[#allocation87_spill] sm:$0xff] %v10831_v13  ;;  %12183 = vst [vmem:[#allocation90_spill] sm:$0xff] %v10842_v62 }
 0x657   :  { %6127 = vmatpush1.bf16.msra.mxu0 %v10807_v60  ;;  %6168 = vmatpush1.bf16.msra.mxu1 %v10811_v32 }
 0x658   :  { %6128 = vmatprep.subr.bf16.mxu0 %v10813_v47  ;;  %6169 = vmatprep.subr.bf16.mxu1 %v10816_v45  ;;  %v10840_v45 = vcombine.high %v5400_v7, %v5404_v1  ;;  %v10854_v7 = vcombine.low %v5408_v34, %v5412_v6 }
 0x65a   :  { %12182 = vst [vmem:[#allocation89_spill] sm:$0xff] %v10840_v45  ;;  %12187 = vst [vmem:[#allocation95_spill] sm:$0xff] %v10854_v7 }
 0x65b   :  { %6129 = vmatpush1.bf16.msra.mxu0 %v10819_v55  ;;  %6170 = vmatpush1.bf16.msra.mxu1 %v10823_v40  ;;  %v5405_v55 = vld [vmem:[#allocation7 + $0x1a8] sm:$0xff] }
 0x65c   :  { %6130 = vmatprep.subr.bf16.mxu0 %v10825_v26  ;;  %6171 = vmatprep.subr.bf16.mxu1 %v10828_v35  ;;  %v10844_v29 = vcombine.low %v5401_v53, %v5405_v55  ;;  %v10846_v40 = vcombine.high %v5401_v53, %v5405_v55  ;;  %v5413_v35 = vld [vmem:[#allocation7 + $0x1e8] sm:$0xff]  ;;  %v5416_v53 = vld [vmem:[#allocation7 + $0x200] sm:$0xff] }
 0x65e   :  { %12184 = vst [vmem:[#allocation91_spill] sm:$0xff] %v10844_v29  ;;  %12185 = vst [vmem:[#allocation92_spill] sm:$0xff] %v10846_v40 }
 0x65f   :  { %6131 = vmatpush1.bf16.msra.mxu0 %v10831_v13  ;;  %6172 = vmatpush1.bf16.msra.mxu1 %v10835_v25  ;;  %v5409_v25 = vld [vmem:[#allocation7 + $0x1c8] sm:$0xff]  ;;  %v10852_v13 = vcombine.high %v5408_v34, %v5412_v6 }
 0x660   :  { %6132 = vmatprep.subr.bf16.mxu0 %v10840_v45  ;;  %6173 = vmatprep.subr.bf16.mxu1 %v10846_v40  ;;  %v10856_v1 = vcombine.low %v5409_v25, %v5413_v35  ;;  %v10858_v55 = vcombine.high %v5409_v25, %v5413_v35  ;;  %v5417_v40 = vld [vmem:[#allocation7 + $0x208] sm:$0xff]  ;;  %v5424_v25 = vld [vmem:[#allocation7 + $0x240] sm:$0xff] }
 0x661   :  { %12186 = vst [vmem:[#allocation93_spill] sm:$0xff] %v10852_v13  ;;  %v5421_v45 = vld [vmem:[#allocation7 + $0x228] sm:$0xff] }
 0x662   :  { %12188 = vst [vmem:[#allocation96_spill] sm:$0xff] %v10856_v1  ;;  %12189 = vst [vmem:[#allocation94_spill] sm:$0xff] %v10858_v55  ;;  %v10868_v6 = vcombine.low %v5417_v40, %v5421_v45  ;;  %v10870_v35 = vcombine.high %v5417_v40, %v5421_v45  ;;  %v5432_v40 = vld [vmem:[#allocation7 + $0x280] sm:$0xff] }
 0x663   :  { %6133 = vmatpush1.bf16.msra.mxu0 %v10842_v62  ;;  %6174 = vmatpush1.bf16.msra.mxu1 %v10844_v29  ;;  %v5420_v62 = vld [vmem:[#allocation7 + $0x220] sm:$0xff] }
 0x664   :  { %6134 = vmatprep.subr.bf16.mxu0 %v10852_v13  ;;  %6175 = vmatprep.subr.bf16.mxu1 %v10858_v55  ;;  %v10864_v29 = vcombine.high %v5416_v53, %v5420_v62  ;;  %v10866_v34 = vcombine.low %v5416_v53, %v5420_v62  ;;  %12192 = vst [vmem:[#allocation100_spill] sm:$0xff] %v10868_v6  ;;  %12193 = vst [vmem:[#allocation98_spill] sm:$0xff] %v10870_v35  ;;  %v5425_v55 = vld [vmem:[#allocation7 + $0x248] sm:$0xff] }
 0x665   :  { %v5429_v13 = vld [vmem:[#allocation7 + $0x268] sm:$0xff] }
 0x666   :  { %12190 = vst [vmem:[#allocation97_spill] sm:$0xff] %v10864_v29  ;;  %12191 = vst [vmem:[#allocation99_spill] sm:$0xff] %v10866_v34  ;;  %v10880_v53 = vcombine.low %v5425_v55, %v5429_v13  ;;  %v10882_v45 = vcombine.high %v5425_v55, %v5429_v13  ;;  %v5440_v55 = vld [vmem:[#allocation7 + $0x2c0] sm:$0xff] }
 0x667   :  { %6135 = vmatpush1.bf16.msra.mxu0 %v10854_v7  ;;  %6176 = vmatpush1.bf16.msra.mxu1 %v10856_v1  ;;  %v5428_v7 = vld [vmem:[#allocation7 + $0x260] sm:$0xff] }
 0x668   :  { %6136 = vmatprep.subr.bf16.mxu0 %v10864_v29  ;;  %6177 = vmatprep.subr.bf16.mxu1 %v10870_v35  ;;  %v10876_v1 = vcombine.high %v5424_v25, %v5428_v7  ;;  %v10878_v62 = vcombine.low %v5424_v25, %v5428_v7  ;;  %12196 = vst [vmem:[#allocation104_spill] sm:$0xff] %v10880_v53  ;;  %12197 = vst [vmem:[#allocation102_spill] sm:$0xff] %v10882_v45  ;;  %v5433_v35 = vld [vmem:[#allocation7 + $0x288] sm:$0xff] }
 0x669   :  { %v5437_v29 = vld [vmem:[#allocation7 + $0x2a8] sm:$0xff] }
 0x66a   :  { %12194 = vst [vmem:[#allocation101_spill] sm:$0xff] %v10876_v1  ;;  %12195 = vst [vmem:[#allocation103_spill] sm:$0xff] %v10878_v62  ;;  %v10892_v25 = vcombine.low %v5433_v35, %v5437_v29  ;;  %v10894_v13 = vcombine.high %v5433_v35, %v5437_v29  ;;  %v5448_v35 = vld [vmem:[#allocation7 + $0x300] sm:$0xff] }
 0x66b   :  { %6137 = vmatpush1.bf16.msra.mxu0 %v10866_v34  ;;  %6178 = vmatpush1.bf16.msra.mxu1 %v10868_v6  ;;  %v5436_v34 = vld [vmem:[#allocation7 + $0x2a0] sm:$0xff] }
 0x66c   :  { %6138 = vmatprep.subr.bf16.mxu0 %v10876_v1  ;;  %6179 = vmatprep.subr.bf16.mxu1 %v10882_v45  ;;  %v10888_v6 = vcombine.high %v5432_v40, %v5436_v34  ;;  %v10890_v7 = vcombine.low %v5432_v40, %v5436_v34  ;;  %12200 = vst [vmem:[#allocation108_spill] sm:$0xff] %v10892_v25  ;;  %12201 = vst [vmem:[#allocation106_spill] sm:$0xff] %v10894_v13  ;;  %v5441_v45 = vld [vmem:[#allocation7 + $0x2c8] sm:$0xff] }
 0x66d   :  { %v5445_v1 = vld [vmem:[#allocation7 + $0x2e8] sm:$0xff] }
 0x66e   :  { %12198 = vst [vmem:[#allocation105_spill] sm:$0xff] %v10888_v6  ;;  %12199 = vst [vmem:[#allocation107_spill] sm:$0xff] %v10890_v7  ;;  %v10904_v40 = vcombine.low %v5441_v45, %v5445_v1  ;;  %v10906_v29 = vcombine.high %v5441_v45, %v5445_v1  ;;  %v5456_v45 = vld [vmem:[#allocation7 + $0x340] sm:$0xff] }
 0x66f   :  { %6139 = vmatpush1.bf16.msra.mxu0 %v10878_v62  ;;  %6180 = vmatpush1.bf16.msra.mxu1 %v10880_v53  ;;  %v5444_v62 = vld [vmem:[#allocation7 + $0x2e0] sm:$0xff] }
 0x670   :  { %6140 = vmatprep.subr.bf16.mxu0 %v10888_v6  ;;  %6181 = vmatprep.subr.bf16.mxu1 %v10894_v13  ;;  %v10900_v53 = vcombine.high %v5440_v55, %v5444_v62  ;;  %v10902_v34 = vcombine.low %v5440_v55, %v5444_v62  ;;  %12204 = vst [vmem:[#allocation112_spill] sm:$0xff] %v10904_v40  ;;  %12205 = vst [vmem:[#allocation110_spill] sm:$0xff] %v10906_v29  ;;  %v5449_v13 = vld [vmem:[#allocation7 + $0x308] sm:$0xff] }
 0x671   :  { %v5453_v6 = vld [vmem:[#allocation7 + $0x328] sm:$0xff] }
 0x672   :  { %12202 = vst [vmem:[#allocation109_spill] sm:$0xff] %v10900_v53  ;;  %12203 = vst [vmem:[#allocation111_spill] sm:$0xff] %v10902_v34  ;;  %v10916_v55 = vcombine.low %v5449_v13, %v5453_v6  ;;  %v10918_v1 = vcombine.high %v5449_v13, %v5453_v6 }
 0x673   :  { %6141 = vmatpush1.bf16.msra.mxu0 %v10890_v7  ;;  %6182 = vmatpush1.bf16.msra.mxu1 %v10892_v25  ;;  %v5452_v7 = vld [vmem:[#allocation7 + $0x320] sm:$0xff] }
 0x674   :  { %6142 = vmatprep.subr.bf16.mxu0 %v10900_v53  ;;  %6183 = vmatprep.subr.bf16.mxu1 %v10906_v29  ;;  %v10912_v25 = vcombine.high %v5448_v35, %v5452_v7  ;;  %v10914_v62 = vcombine.low %v5448_v35, %v5452_v7  ;;  %v5457_v29 = vld [vmem:[#allocation7 + $0x348] sm:$0xff] }
 0x675   :  { %v5461_v7 = vld [vmem:[#allocation7 + $0x368] sm:$0xff] }
 0x676   :  { %v10928_v35 = vcombine.low %v5457_v29, %v5461_v7  ;;  %v10930_v6 = vcombine.high %v5457_v29, %v5461_v7 }
 0x677   :  { %6143 = vmatpush1.bf16.msra.mxu0 %v10902_v34  ;;  %6184 = vmatpush1.bf16.msra.mxu1 %v10904_v40  ;;  %v5460_v34 = vld [vmem:[#allocation7 + $0x360] sm:$0xff] }
 0x678   :  { %6144 = vmatprep.subr.bf16.mxu0 %v10912_v25  ;;  %6185 = vmatprep.subr.bf16.mxu1 %v10918_v1  ;;  %v10924_v40 = vcombine.low %v5456_v45, %v5460_v34  ;;  %v10926_v53 = vcombine.high %v5456_v45, %v5460_v34  ;;  %12208 = vst [vmem:[#allocation116_spill] sm:$0xff] %v10928_v35  ;;  %12209 = vst [vmem:[#allocation114_spill] sm:$0xff] %v10930_v6 }
 0x67a   :  { %12206 = vst [vmem:[#allocation113_spill] sm:$0xff] %v10924_v40  ;;  %12207 = vst [vmem:[#allocation115_spill] sm:$0xff] %v10926_v53 }
 0x67b   :  { %6145 = vmatpush1.bf16.msra.mxu0 %v10914_v62  ;;  %6186 = vmatpush1.bf16.msra.mxu1 %v10916_v55 }
 0x67c   :  { %6146 = vmatprep.subr.bf16.mxu0 %v10926_v53  ;;  %6187 = vmatprep.subr.bf16.mxu1 %v10930_v6 }
 0x67f   :  { %6147 = vmatpush1.bf16.msra.mxu0 %v10924_v40  ;;  %6188 = vmatpush1.bf16.msra.mxu1 %v10928_v35 }
 0x680   :  { %6148 = vmatprep.subr.bf16.mxu0 %v10528_v37  ;;  %6189 = vmatprep.subr.bf16.mxu1 %v10532_v63  ;;  %v12210_v37 = vld [vmem:[#allocation63_spill] sm:$0xff]  ;;  %v12211_v63 = vld [vmem:[#allocation66_spill] sm:$0xff] }
 0x681   :  { %v217_v13 = vadd.f32 %v12210_v37, %v12119_v56 }
 0x683   :  { %6149 = vmatpush1.bf16.msra.mxu0 %v10526_v10  ;;  %6190 = vmatpush1.bf16.msra.mxu1 %v10530_v4  ;;  %v290_v10 = vadd.f32 %v12211_v63, %v12121_v27  ;;  %v12212_v4 = vld [vmem:[#allocation65_spill] sm:$0xff] }
 0x684   :  { %6150 = vmatprep.subr.bf16.mxu0 %v10534_v0  ;;  %6191 = vmatprep.subr.bf16.mxu1 %v10537_v38  ;;  %v219_v34 = vadd.f32 %v12212_v4, %v12123_v5  ;;  %v12213_v0 = vld [vmem:[#allocation67_spill] sm:$0xff] }
 0x685   :  { %v292_v38 = vadd.f32 %v12213_v0, %v12125_v19 }
 0x687   :  { %6151 = vmatpush1.bf16.msra.mxu0 %v10541_v42  ;;  %6192 = vmatpush1.bf16.msra.mxu1 %v10545_v31 }
 0x688   :  { %6202 = vmatprep.subr.bf16.mxu0 %v10550_v59  ;;  %6243 = vmatprep.subr.bf16.mxu1 %v10556_v30 }
 0x6dd   :  { %v5161_v29 = vpop.f32.mrb[48].mxu0  ;;  %v5202_v42 = vpop.f32.mrb[48].mxu1 }
 0x6de   :  { %v5321_v45 = vadd.f32 %v5161_v29, %v217_v13  ;;  %v5323_v31 = vadd.f32 %v5202_v42, %v290_v10  ;;  %v5163_v7 = vpop.f32.mrb[49].mxu0  ;;  %v5204_v59 = vpop.f32.mrb[49].mxu1 }
 0x6df   :  { %v5322_v35 = vadd.f32 %v5163_v7, %v219_v34  ;;  %v5324_v30 = vadd.f32 %v5204_v59, %v292_v38  ;;  %v5165_v40 = vpop.f32.mrb[50].mxu0  ;;  %v5206_v6 = vpop.f32.mrb[50].mxu1 }
 0x6e0   :  { %v5326_v37 = vmul.f32 0.5, %v5321_v45  ;;  %v5166_v56 = vpop.f32.mrb[51].mxu0  ;;  %v5207_v53 = vpop.f32.mrb[51].mxu1 }
 0x6e1   :  { %v5327_v63 = vmul.f32 0.5, %v5322_v35 }
 0x6e2   :  { %9100 = vtanh.f32 %v5326_v37 }
 0x6e3   :  { %9102 = vtanh.f32 %v5327_v63 }
 0x6e4   :  { %9104 = vtanh.f32 %v5324_v30 }
 0x6ec   :  { %v9101_v4 = vpop.eup %9100 }
 0x6ed   :  { %v5332_v5 = vmul.f32 0.5, %v9101_v4  ;;  %v9103_v0 = vpop.eup %9102 }
 0x6ee   :  { %v5333_v27 = vmul.f32 0.5, %v9103_v0  ;;  %v9105_v13 = vpop.eup %9104 }
 0x6ef   :  { %v5335_v19 = vadd.f32 0.5, %v5332_v5 }
 0x6f0   :  { %v5336_v10 = vadd.f32 0.5, %v5333_v27 }
 0x6f1   :  { %v5340_v29 = vmul.f32 %v9105_v13, %v5335_v19 }
 0x6f2   :  { %v5339_v34 = vmul.f32 %v5336_v10, %v10569_v41  ;;  %v5328_v41 = vmul.f32 0.5, %v5323_v31 }
 0x6f4   :  { %v10955_v38 = vadd.f32 %v5340_v29, %v5339_v34 }
 0x71d   :  { %v5243_v40 = vpop.f32.mrb[52].mxu0  ;;  %v5284_v6 = vpop.f32.mrb[52].mxu1 }
 0x71e   :  { %v5291_v56 = vadd.f32 %v5243_v40, %v9816_v20  ;;  %v5245_v53 = vpop.f32.mrb[53].mxu0  ;;  %v5286_v35 = vpop.f32.mrb[53].mxu1  ;;  %v5293_v19 = vadd.f32 %v5284_v6, %v9831_v8 }
 0x71f   :  { %v5292_v42 = vadd.f32 %v5245_v53, %v9820_v22  ;;  %v5247_v45 = vpop.f32.mrb[54].mxu0  ;;  %v5288_v7 = vpop.f32.mrb[54].mxu1  ;;  %v5294_v27 = vadd.f32 %v5286_v35, %v9825_v23 }
 0x720   :  { %v5296_v59 = vmul.f32 0.5, %v5291_v56  ;;  %v5248_v5 = vpop.f32.mrb[55].mxu0  ;;  %v5289_v30 = vpop.f32.mrb[55].mxu1  ;;  %v5298_v63 = vmul.f32 0.5, %v5293_v19 }
 0x721   :  { %v5297_v37 = vmul.f32 0.5, %v5292_v42 }
 0x722   :  { %9106 = vtanh.f32 %v5296_v59 }
 0x723   :  { %9108 = vtanh.f32 %v5297_v37 }
 0x724   :  { %9110 = vtanh.f32 %v5294_v27 }
 0x725   :  { %9112 = vtanh.f32 %v5328_v41 }
 0x726   :  { %9114 = vtanh.f32 %v5298_v63  ;;  %v12238_v63 = vld [vmem:[#allocation34_spill] sm:$0xff] }
 0x727   :  { %9116 = vtanh.f32 %v10955_v38 }
 0x72c   :  { %v9107_v4 = vpop.eup %9106 }
 0x72d   :  { %v5302_v0 = vmul.f32 0.5, %v9107_v4  ;;  %v9109_v13 = vpop.eup %9108  ;;  %v12239_v4 = vld [vmem:[#allocation35_spill] sm:$0xff] }
 0x72e   :  { %v5303_v29 = vmul.f32 0.5, %v9109_v13  ;;  %v9111_v34 = vpop.eup %9110  ;;  %v12241_v13 = vld [vmem:[#allocation37_spill] sm:$0xff] }
 0x72f   :  { %v5305_v10 = vadd.f32 0.5, %v5302_v0  ;;  %v9113_v31 = vpop.eup %9112  ;;  %v12240_v0 = vld [vmem:[#allocation36_spill] sm:$0xff] }
 0x730   :  { %v5306_v40 = vadd.f32 0.5, %v5303_v29  ;;  %v9115_v6 = vpop.eup %9114  ;;  %v5334_v42 = vmul.f32 0.5, %v9113_v31  ;;  %v12243_v29 = vld [vmem:[#allocation39_spill] sm:$0xff]  ;;  %v12248_v31 = vld [vmem:[#allocation44_spill] sm:$0xff] }
 0x731   :  { %v5310_v56 = vmul.f32 %v9111_v34, %v5305_v10  ;;  %v5304_v45 = vmul.f32 0.5, %v9115_v6  ;;  %v9117_v7 = vpop.eup %9116  ;;  %v12242_v10 = vld [vmem:[#allocation38_spill] sm:$0xff]  ;;  %v12244_v34 = vld [vmem:[#allocation40_spill] sm:$0xff] }
 0x732   :  { %v5309_v53 = vmul.f32 %v5306_v40, %v10577_v54  ;;  %v5337_v59 = vadd.f32 0.5, %v5334_v42  ;;  %v12216_v54 = vld [vmem:[#allocation57_spill] sm:$0xff]  ;;  %v12250_v6 = vld [vmem:[#allocation46_spill] sm:$0xff]  ;;  %v12251_v42 = vld [vmem:[#allocation47_spill] sm:$0xff] }
 0x733   :  { %v5307_v5 = vadd.f32 0.5, %v5304_v45  ;;  %v12245_v40 = vld [vmem:[#allocation41_spill] sm:$0xff] }
 0x734   :  { %v10963_v35 = vadd.f32 %v5310_v56, %v5309_v53  ;;  %v5343_v37 = vmul.f32 %v9117_v7, %v5337_v59  ;;  %v12246_v56 = vld [vmem:[#allocation42_spill] sm:$0xff]  ;;  %v12247_v53 = vld [vmem:[#allocation43_spill] sm:$0xff]  ;;  %v12252_v45 = vld [vmem:[#allocation49_spill] sm:$0xff] }
 0x735   :  { %v12253_v7 = vld [vmem:[#allocation52_spill] sm:$0xff] }
 0x736   :  { %9118 = vtanh.f32 %v10963_v35  ;;  %v10966_v41 = vpack.c.bf16 %v5343_v37, %v5343_v37  ;;  %v12254_v59 = vld [vmem:[#allocation48_spill] sm:$0xff]  ;;  %v12257_v37 = vld [vmem:[#allocation78_spill] sm:$0xff] }
 0x740   :  { %v9119_v30 = vpop.eup %9118 }
 0x741   :  { %v5313_v27 = vmul.f32 %v9119_v30, %v5307_v5  ;;  %v12255_v5 = vld [vmem:[#allocation51_spill] sm:$0xff] }
 0x742   :  { %v12256_v30 = vld [vmem:[#allocation79_spill] sm:$0xff] }
 0x743   :  { %v5351_v19 = vpack.c.bf16 %v5313_v27, %v5313_v27  ;;  %v12258_v27 = vld [vmem:[#allocation77_spill] sm:$0xff] }
 0x745   :  { %6152 = vmatprep.mubr.bf16.mxu0 %v5351_v19  ;;  %6193 = vmatprep.mubr.bf16.mxu1 %v5351_v19 }
 0x746   :  { %6153 = vmatmul.mubr.bf16.vlgmr.msra.gmra.mrb[56].mxu0 %v10966_v41  ;;  %6194 = vmatmul.mubr.bf16.vlgmr.msra.gmra.mrb[56].mxu1 %v10966_v41 }
 0x747   :  { %6203 = vmatpush1.bf16.msra.mxu0 %v10552_v14  ;;  %6244 = vmatpush1.bf16.msra.mxu1 %v10554_v18  ;;  %v12214_v14 = vld [vmem:[#allocation55_spill] sm:$0xff]  ;;  %v12215_v18 = vld [vmem:[#allocation58_spill] sm:$0xff] }
 0x748   :  { %6234 = vmatprep.mubr.bf16.mxu0 %v5351_v19  ;;  %6275 = vmatprep.mubr.bf16.mxu1 %v5351_v19  ;;  %v12259_v19 = vld [vmem:[#allocation76_spill] sm:$0xff] }
 0x749   :  { %6204 = vmatprep.subr.bf16.mxu0 %v10582_v57  ;;  %6245 = vmatprep.subr.bf16.mxu1 %v10584_v36  ;;  %v12217_v57 = vld [vmem:[#allocation59_spill] sm:$0xff]  ;;  %v12218_v36 = vld [vmem:[#allocation14_spill] sm:$0xff] }
 0x74b   :  { %6205 = vmatpush1.bf16.msra.mxu0 %v10590_v11  ;;  %6246 = vmatpush1.bf16.msra.mxu1 %v10592_v43  ;;  %v12219_v11 = vld [vmem:[#allocation15_spill] sm:$0xff]  ;;  %v12220_v43 = vld [vmem:[#allocation16_spill] sm:$0xff] }
 0x74c   :  { %6206 = vmatprep.subr.bf16.mxu0 %v10594_v9  ;;  %6247 = vmatprep.subr.bf16.mxu1 %v10596_v15  ;;  %v12221_v9 = vld [vmem:[#allocation17_spill] sm:$0xff]  ;;  %v12222_v15 = vld [vmem:[#allocation18_spill] sm:$0xff] }
 0x74f   :  { %6207 = vmatpush1.bf16.msra.mxu0 %v10602_v58  ;;  %6248 = vmatpush1.bf16.msra.mxu1 %v10604_v61  ;;  %v12223_v58 = vld [vmem:[#allocation19_spill] sm:$0xff]  ;;  %v12224_v61 = vld [vmem:[#allocation20_spill] sm:$0xff] }
 0x750   :  { %6208 = vmatprep.subr.bf16.mxu0 %v10608_v46  ;;  %6249 = vmatprep.subr.bf16.mxu1 %v10610_v28  ;;  %v12225_v46 = vld [vmem:[#allocation21_spill] sm:$0xff]  ;;  %v12226_v28 = vld [vmem:[#allocation22_spill] sm:$0xff] }
 0x753   :  { %6209 = vmatpush1.bf16.msra.mxu0 %v10614_v12  ;;  %6250 = vmatpush1.bf16.msra.mxu1 %v10616_v50  ;;  %v12227_v12 = vld [vmem:[#allocation23_spill] sm:$0xff]  ;;  %v12228_v50 = vld [vmem:[#allocation24_spill] sm:$0xff] }
 0x754   :  { %6210 = vmatprep.subr.bf16.mxu0 %v10620_v39  ;;  %6251 = vmatprep.subr.bf16.mxu1 %v10622_v48  ;;  %v12229_v39 = vld [vmem:[#allocation25_spill] sm:$0xff]  ;;  %v12230_v48 = vld [vmem:[#allocation26_spill] sm:$0xff] }
 0x757   :  { %6211 = vmatpush1.bf16.msra.mxu0 %v10626_v3  ;;  %6252 = vmatpush1.bf16.msra.mxu1 %v10628_v16  ;;  %v12231_v3 = vld [vmem:[#allocation27_spill] sm:$0xff]  ;;  %v12232_v16 = vld [vmem:[#allocation28_spill] sm:$0xff] }
 0x758   :  { %6212 = vmatprep.subr.bf16.mxu0 %v10632_v24  ;;  %6253 = vmatprep.subr.bf16.mxu1 %v10634_v51  ;;  %v12233_v24 = vld [vmem:[#allocation29_spill] sm:$0xff]  ;;  %v12234_v51 = vld [vmem:[#allocation30_spill] sm:$0xff] }
 0x75b   :  { %6213 = vmatpush1.bf16.msra.mxu0 %v10638_v52  ;;  %6254 = vmatpush1.bf16.msra.mxu1 %v10640_v49  ;;  %v12235_v52 = vld [vmem:[#allocation31_spill] sm:$0xff]  ;;  %v12236_v49 = vld [vmem:[#allocation32_spill] sm:$0xff] }
 0x75c   :  { %6214 = vmatprep.subr.bf16.mxu0 %v10644_v44  ;;  %6255 = vmatprep.subr.bf16.mxu1 %v12214_v14  ;;  %v12237_v44 = vld [vmem:[#allocation33_spill] sm:$0xff]  ;;  %v12260_v14 = vld [vmem:[#allocation80_spill] sm:$0xff] }
 0x75f   :  { %6215 = vmatpush1.bf16.msra.mxu0 %v12215_v18  ;;  %6256 = vmatpush1.bf16.msra.mxu1 %v12216_v54  ;;  %v12261_v18 = vld [vmem:[#allocation81_spill] sm:$0xff]  ;;  %v12263_v54 = vld [vmem:[#allocation83_spill] sm:$0xff] }
 0x760   :  { %6216 = vmatprep.subr.bf16.mxu0 %v12217_v57  ;;  %6257 = vmatprep.subr.bf16.mxu1 %v12218_v36  ;;  %v12264_v57 = vld [vmem:[#allocation84_spill] sm:$0xff]  ;;  %v12265_v36 = vld [vmem:[#allocation85_spill] sm:$0xff] }
 0x763   :  { %6217 = vmatpush1.bf16.msra.mxu0 %v12219_v11  ;;  %6258 = vmatpush1.bf16.msra.mxu1 %v12220_v43  ;;  %v12269_v11 = vld [vmem:[#allocation89_spill] sm:$0xff] }
 0x764   :  { %6218 = vmatprep.subr.bf16.mxu0 %v12221_v9  ;;  %6259 = vmatprep.subr.bf16.mxu1 %v12222_v15  ;;  %v12273_v43 = vld [vmem:[#allocation93_spill] sm:$0xff]  ;;  %v12274_v9 = vld [vmem:[#allocation94_spill] sm:$0xff]  ;;  %v12275_v15 = vld [vmem:[#allocation95_spill] sm:$0xff] }
 0x767   :  { %6219 = vmatpush1.bf16.msra.mxu0 %v12223_v58  ;;  %6260 = vmatpush1.bf16.msra.mxu1 %v12224_v61  ;;  %v12277_v58 = vld [vmem:[#allocation97_spill] sm:$0xff]  ;;  %v12278_v61 = vld [vmem:[#allocation98_spill] sm:$0xff] }
 0x768   :  { %6220 = vmatprep.subr.bf16.mxu0 %v12225_v46  ;;  %6261 = vmatprep.subr.bf16.mxu1 %v12226_v28  ;;  %v12279_v46 = vld [vmem:[#allocation99_spill] sm:$0xff]  ;;  %v12280_v28 = vld [vmem:[#allocation100_spill] sm:$0xff] }
 0x76b   :  { %6221 = vmatpush1.bf16.msra.mxu0 %v12227_v12  ;;  %6262 = vmatpush1.bf16.msra.mxu1 %v12228_v50  ;;  %v12281_v12 = vld [vmem:[#allocation101_spill] sm:$0xff]  ;;  %v12282_v50 = vld [vmem:[#allocation102_spill] sm:$0xff] }
 0x76c   :  { %6222 = vmatprep.subr.bf16.mxu0 %v12229_v39  ;;  %6263 = vmatprep.subr.bf16.mxu1 %v12230_v48  ;;  %v12283_v39 = vld [vmem:[#allocation103_spill] sm:$0xff]  ;;  %v12284_v48 = vld [vmem:[#allocation104_spill] sm:$0xff] }
 0x76f   :  { %6223 = vmatpush1.bf16.msra.mxu0 %v12231_v3  ;;  %6264 = vmatpush1.bf16.msra.mxu1 %v12232_v16  ;;  %v12285_v3 = vld [vmem:[#allocation105_spill] sm:$0xff]  ;;  %v12286_v16 = vld [vmem:[#allocation106_spill] sm:$0xff] }
 0x770   :  { %6224 = vmatprep.subr.bf16.mxu0 %v12233_v24  ;;  %6265 = vmatprep.subr.bf16.mxu1 %v12234_v51  ;;  %v12287_v24 = vld [vmem:[#allocation107_spill] sm:$0xff]  ;;  %v12288_v51 = vld [vmem:[#allocation108_spill] sm:$0xff] }
 0x773   :  { %6225 = vmatpush1.bf16.msra.mxu0 %v12235_v52  ;;  %6266 = vmatpush1.bf16.msra.mxu1 %v12236_v49  ;;  %v12289_v52 = vld [vmem:[#allocation109_spill] sm:$0xff]  ;;  %v12290_v49 = vld [vmem:[#allocation110_spill] sm:$0xff] }
 0x774   :  { %6226 = vmatprep.subr.bf16.mxu0 %v12237_v44  ;;  %6267 = vmatprep.subr.bf16.mxu1 %v12238_v63  ;;  %v12291_v44 = vld [vmem:[#allocation111_spill] sm:$0xff]  ;;  %v12292_v63 = vld [vmem:[#allocation112_spill] sm:$0xff] }
 0x777   :  { %6227 = vmatpush1.bf16.msra.mxu0 %v10722_v2  ;;  %6268 = vmatpush1.bf16.msra.mxu1 %v12239_v4  ;;  %v12249_v2 = vld [vmem:[#allocation45_spill] sm:$0xff]  ;;  %v12293_v4 = vld [vmem:[#allocation115_spill] sm:$0xff] }
 0x778   :  { %6228 = vmatprep.subr.bf16.mxu0 %v12240_v0  ;;  %6269 = vmatprep.subr.bf16.mxu1 %v12241_v13  ;;  %v12294_v0 = vld [vmem:[#allocation114_spill] sm:$0xff]  ;;  %v12295_v13 = vld [vmem:[#allocation113_spill] sm:$0xff] }
 0x77b   :  { %6229 = vmatpush1.bf16.msra.mxu0 %v12242_v10  ;;  %6270 = vmatpush1.bf16.msra.mxu1 %v12243_v29  ;;  %v12296_v10 = vld [vmem:[#allocation116_spill] sm:$0xff]  ;;  %v6457_v29 = vld [vmem:[#allocation7 + $0x380] sm:$0xff] }
 0x77c   :  { %6230 = vmatprep.subr.bf16.mxu0 %v12244_v34  ;;  %6271 = vmatprep.subr.bf16.mxu1 %v12245_v40  ;;  %v6461_v34 = vld [vmem:[#allocation7 + $0x3a0] sm:$0xff]  ;;  %v6458_v40 = vld [vmem:[#allocation7 + $0x388] sm:$0xff] }
 0x77f   :  { %6231 = vmatpush1.bf16.msra.mxu0 %v12246_v56  ;;  %6272 = vmatpush1.bf16.msra.mxu1 %v12247_v53  ;;  %v8830_v56 = vcombine.low %v6457_v29, %v6461_v34  ;;  %v8831_v53 = vcombine.high %v6457_v29, %v6461_v34 }
 0x780   :  { %6232 = vmatprep.subr.bf16.mxu0 %v12248_v31  ;;  %6273 = vmatprep.subr.bf16.mxu1 %v12249_v2  ;;  %v6465_v31 = vld [vmem:[#allocation7 + $0x3c0] sm:$0xff] }
 0x783   :  { %6233 = vmatpush1.bf16.msra.mxu0 %v12250_v6  ;;  %6274 = vmatpush1.bf16.msra.mxu1 %v12251_v42  ;;  %v6470_v42 = vld [vmem:[#allocation7 + $0x3e8] sm:$0xff] }
 0x784   :  { %7113 = vmatprep.subr.bf16.mxu0 %v12252_v45  ;;  %7154 = vmatprep.subr.bf16.mxu1 %v12253_v7 }
 0x786   :  { %6235 = vmatmul.mubr.bf16.vlgmr.msra.gmra.mrb[60].mxu0 %v10966_v41  ;;  %6276 = vmatmul.mubr.bf16.vlgmr.msra.gmra.mrb[60].mxu1 %v10966_v41  ;;  %v12262_v41 = vld [vmem:[#allocation82_spill] sm:$0xff] }
 0x787   :  { %7114 = vmatpush1.bf16.msra.mxu0 %v12254_v59  ;;  %7155 = vmatpush1.bf16.msra.mxu1 %v12255_v5  ;;  %v6347_v5 = vld [vmem:[#allocation7 + $0x10] sm:$0xff] }
 0x788   :  { %7115 = vmatprep.subr.bf16.mxu0 %v12256_v30  ;;  %7156 = vmatprep.subr.bf16.mxu1 %v12257_v37  ;;  %v6351_v30 = vld [vmem:[#allocation7 + $0x30] sm:$0xff]  ;;  %v6348_v37 = vld [vmem:[#allocation7 + $0x18] sm:$0xff] }
 0x78b   :  { %7116 = vmatpush1.bf16.msra.mxu0 %v12258_v27  ;;  %7157 = vmatpush1.bf16.msra.mxu1 %v12259_v19  ;;  %v11090_v27 = vcombine.high %v6347_v5, %v6351_v30  ;;  %v6352_v19 = vld [vmem:[#allocation7 + $0x38] sm:$0xff] }
 0x78c   :  { %7117 = vmatprep.subr.bf16.mxu0 %v12260_v14  ;;  %7158 = vmatprep.subr.bf16.mxu1 %v12261_v18  ;;  %v11092_v14 = vcombine.low %v6347_v5, %v6351_v30  ;;  %v11094_v18 = vcombine.low %v6348_v37, %v6352_v19 }
 0x78f   :  { %7118 = vmatpush1.bf16.msra.mxu0 %v10795_v21  ;;  %7159 = vmatpush1.bf16.msra.mxu1 %v10799_v33  ;;  %v12266_v21 = vld [vmem:[#allocation86_spill] sm:$0xff]  ;;  %v12267_v33 = vld [vmem:[#allocation87_spill] sm:$0xff] }
 0x790   :  { %7119 = vmatprep.subr.bf16.mxu0 %v10801_v17  ;;  %7160 = vmatprep.subr.bf16.mxu1 %v12262_v41  ;;  %v12268_v17 = vld [vmem:[#allocation88_spill] sm:$0xff]  ;;  %v11096_v41 = vcombine.high %v6348_v37, %v6352_v19 }
 0x793   :  { %7120 = vmatpush1.bf16.msra.mxu0 %v10807_v60  ;;  %7161 = vmatpush1.bf16.msra.mxu1 %v10811_v32  ;;  %v12270_v60 = vld [vmem:[#allocation92_spill] sm:$0xff]  ;;  %v12271_v32 = vld [vmem:[#allocation90_spill] sm:$0xff] }
 0x794   :  { %7121 = vmatprep.subr.bf16.mxu0 %v10813_v47  ;;  %7162 = vmatprep.subr.bf16.mxu1 %v12263_v54  ;;  %v12272_v47 = vld [vmem:[#allocation91_spill] sm:$0xff]  ;;  %v12297_v54 = vld [vmem:[#allocation10_spill] sm:$0xff] }
 0x797   :  { %7122 = vmatpush1.bf16.msra.mxu0 %v12264_v57  ;;  %7163 = vmatpush1.bf16.msra.mxu1 %v12265_v36  ;;  %v12298_v57 = vld [vmem:[#allocation68_spill] sm:$0xff] }
 0x798   :  { %7123 = vmatprep.subr.bf16.mxu0 %v10825_v26  ;;  %7164 = vmatprep.subr.bf16.mxu1 %v12266_v21  ;;  %v12276_v26 = vld [vmem:[#allocation96_spill] sm:$0xff]  ;;  %v223_v36 = vadd.f32 %v12298_v57, %v12297_v54  ;;  %v12299_v21 = vld [vmem:[#allocation13_spill] sm:$0xff] }
 0x799   :  { %v6459_v54 = vld [vmem:[#allocation7 + $0x390] sm:$0xff] }
 0x79b   :  { %7124 = vmatpush1.bf16.msra.mxu0 %v12267_v33  ;;  %7165 = vmatpush1.bf16.msra.mxu1 %v12268_v17  ;;  %v12300_v33 = vld [vmem:[#allocation71_spill] sm:$0xff] }
 0x79c   :  { %7125 = vmatprep.subr.bf16.mxu0 %v12269_v11  ;;  %7166 = vmatprep.subr.bf16.mxu1 %v12270_v60  ;;  %v296_v17 = vadd.f32 %v12300_v33, %v12299_v21  ;;  %v12301_v11 = vld [vmem:[#allocation11_spill] sm:$0xff]  ;;  %v12302_v60 = vld [vmem:[#allocation69_spill] sm:$0xff] }
 0x79d   :  { %v6456_v21 = vld [vmem:[#allocation7 + $0x378] sm:$0xff] }
 0x79f   :  { %7126 = vmatpush1.bf16.msra.mxu0 %v12271_v32  ;;  %7167 = vmatpush1.bf16.msra.mxu1 %v12272_v47  ;;  %v225_v32 = vadd.f32 %v12302_v60, %v12301_v11  ;;  %v12303_v47 = vld [vmem:[#allocation12_spill] sm:$0xff]  ;;  %v6452_v11 = vld [vmem:[#allocation7 + $0x358] sm:$0xff] }
 0x7a0   :  { %7127 = vmatprep.subr.bf16.mxu0 %v12273_v43  ;;  %7168 = vmatprep.subr.bf16.mxu1 %v12274_v9  ;;  %v12304_v43 = vld [vmem:[#allocation73_spill] sm:$0xff] }
 0x7a1   :  { %v298_v9 = vadd.f32 %v12304_v43, %v12303_v47  ;;  %v6455_v47 = vld [vmem:[#allocation7 + $0x370] sm:$0xff] }
 0x7a3   :  { %7128 = vmatpush1.bf16.msra.mxu0 %v12275_v15  ;;  %7169 = vmatpush1.bf16.msra.mxu1 %v12276_v26 }
 0x7a4   :  { %7129 = vmatprep.subr.bf16.mxu0 %v12277_v58  ;;  %7170 = vmatprep.subr.bf16.mxu1 %v12278_v61 }
 0x7a7   :  { %7130 = vmatpush1.bf16.msra.mxu0 %v12279_v46  ;;  %7171 = vmatpush1.bf16.msra.mxu1 %v12280_v28 }
 0x7a8   :  { %7131 = vmatprep.subr.bf16.mxu0 %v12281_v12  ;;  %7172 = vmatprep.subr.bf16.mxu1 %v12282_v50 }
 0x7ab   :  { %7132 = vmatpush1.bf16.msra.mxu0 %v12283_v39  ;;  %7173 = vmatpush1.bf16.msra.mxu1 %v12284_v48 }
 0x7ac   :  { %7133 = vmatprep.subr.bf16.mxu0 %v12285_v3  ;;  %7174 = vmatprep.subr.bf16.mxu1 %v12286_v16 }
 0x7af   :  { %7134 = vmatpush1.bf16.msra.mxu0 %v12287_v24  ;;  %7175 = vmatpush1.bf16.msra.mxu1 %v12288_v51 }
 0x7b0   :  { %7135 = vmatprep.subr.bf16.mxu0 %v12289_v52  ;;  %7176 = vmatprep.subr.bf16.mxu1 %v12290_v49 }
 0x7b3   :  { %7136 = vmatpush1.bf16.msra.mxu0 %v12291_v44  ;;  %7177 = vmatpush1.bf16.msra.mxu1 %v12292_v63 }
 0x7b4   :  { %7137 = vmatprep.subr.bf16.mxu0 %v10912_v25  ;;  %7178 = vmatprep.subr.bf16.mxu1 %v10918_v1  ;;  %v6462_v25 = vld [vmem:[#allocation7 + $0x3a8] sm:$0xff]  ;;  %v6469_v1 = vld [vmem:[#allocation7 + $0x3e0] sm:$0xff] }
 0x7b5   :  { %v8832_v2 = vcombine.low %v6458_v40, %v6462_v25  ;;  %v8839_v6 = vcombine.high %v6465_v31, %v6469_v1  ;;  %v8838_v7 = vcombine.low %v6465_v31, %v6469_v1 }
 0x7b7   :  { %7138 = vmatpush1.bf16.msra.mxu0 %v10914_v62  ;;  %7179 = vmatpush1.bf16.msra.mxu1 %v10916_v55  ;;  %v8833_v62 = vcombine.high %v6458_v40, %v6462_v25  ;;  %v6466_v55 = vld [vmem:[#allocation7 + $0x3c8] sm:$0xff] }
 0x7b8   :  { %7139 = vmatprep.subr.bf16.mxu0 %v12293_v4  ;;  %7180 = vmatprep.subr.bf16.mxu1 %v12294_v0  ;;  %v8841_v45 = vcombine.high %v6466_v55, %v6470_v42  ;;  %v8840_v59 = vcombine.low %v6466_v55, %v6470_v42 }
 0x7bb   :  { %7140 = vmatpush1.bf16.msra.mxu0 %v12295_v13  ;;  %7181 = vmatpush1.bf16.msra.mxu1 %v12296_v10 }
 0x7bc   :  { %7141 = vmatprep.subr.bf16.mxu0 %v8831_v53  ;;  %7182 = vmatprep.subr.bf16.mxu1 %v8833_v62 }
 0x7bf   :  { %7142 = vmatpush1.bf16.msra.mxu0 %v8830_v56  ;;  %7183 = vmatpush1.bf16.msra.mxu1 %v8832_v2 }
 0x7c0   :  { %7143 = vmatprep.subr.bf16.mxu0 %v8839_v6  ;;  %7184 = vmatprep.subr.bf16.mxu1 %v8841_v45 }
 0x7c3   :  { %7144 = vmatpush1.bf16.msra.mxu0 %v8838_v7  ;;  %7185 = vmatpush1.bf16.msra.mxu1 %v8840_v59 }
 0x7c4   :  { %7195 = vmatprep.subr.bf16.mxu0 %v11090_v27  ;;  %7236 = vmatprep.subr.bf16.mxu1 %v11096_v41 }
 0x819   :  { %v6154_v15 = vpop.f32.mrb[56].mxu0  ;;  %v6195_v26 = vpop.f32.mrb[56].mxu1 }
 0x81a   :  { %v6314_v58 = vadd.f32 %v6154_v15, %v223_v36  ;;  %v6316_v61 = vadd.f32 %v6195_v26, %v296_v17  ;;  %v6156_v46 = vpop.f32.mrb[57].mxu0  ;;  %v6197_v28 = vpop.f32.mrb[57].mxu1 }
 0x81b   :  { %v6315_v12 = vadd.f32 %v6156_v46, %v225_v32  ;;  %v6317_v50 = vadd.f32 %v6197_v28, %v298_v9  ;;  %v6158_v39 = vpop.f32.mrb[58].mxu0  ;;  %v6199_v48 = vpop.f32.mrb[58].mxu1 }
 0x81c   :  { %v6319_v3 = vmul.f32 0.5, %v6314_v58  ;;  %v6159_v16 = vpop.f32.mrb[59].mxu0  ;;  %v6200_v24 = vpop.f32.mrb[59].mxu1  ;;  %v6321_v59 = vmul.f32 0.5, %v6316_v61  ;;  %v6355_v48 = vld [vmem:[#allocation7 + $0x50] sm:$0xff] }
 0x81d   :  { %v6320_v51 = vmul.f32 0.5, %v6315_v12  ;;  %v6356_v16 = vld [vmem:[#allocation7 + $0x58] sm:$0xff] }
 0x81e   :  { %9120 = vtanh.f32 %v6319_v3  ;;  %v6359_v3 = vld [vmem:[#allocation7 + $0x70] sm:$0xff] }
 0x81f   :  { %9122 = vtanh.f32 %v6320_v51 }
 0x820   :  { %9124 = vtanh.f32 %v6317_v50 }
 0x828   :  { %v9121_v52 = vpop.eup %9120 }
 0x829   :  { %v6325_v49 = vmul.f32 0.5, %v9121_v52  ;;  %v9123_v44 = vpop.eup %9122  ;;  %v6363_v52 = vld [vmem:[#allocation7 + $0x90] sm:$0xff] }
 0x82a   :  { %v6326_v4 = vmul.f32 0.5, %v9123_v44  ;;  %v9125_v0 = vpop.eup %9124 }
 0x82b   :  { %v6328_v63 = vadd.f32 0.5, %v6325_v49  ;;  %v11122_v49 = vcombine.high %v6355_v48, %v6359_v3 }
 0x82c   :  { %v6329_v13 = vadd.f32 0.5, %v6326_v4  ;;  %v6364_v4 = vld [vmem:[#allocation7 + $0x98] sm:$0xff] }
 0x82d   :  { %v6333_v10 = vmul.f32 %v9125_v0, %v6328_v63  ;;  %v6367_v63 = vld [vmem:[#allocation7 + $0xb0] sm:$0xff]  ;;  %v6368_v0 = vld [vmem:[#allocation7 + $0xb8] sm:$0xff] }
 0x82e   :  { %v6332_v29 = vmul.f32 %v6329_v13, %v10955_v38  ;;  %v11130_v13 = vcombine.low %v6355_v48, %v6359_v3  ;;  %v6404_v48 = vld [vmem:[#allocation7 + $0x1d8] sm:$0xff] }
 0x82f   :  { %v6408_v3 = vld [vmem:[#allocation7 + $0x1f8] sm:$0xff] }
 0x830   :  { %v11109_v34 = vadd.f32 %v6333_v10, %v6332_v29  ;;  %v11134_v29 = vcombine.high %v6363_v52, %v6367_v63 }
 0x832   :  { %12305 = vst [vmem:[#allocation54_spill] sm:$0xff] %v11109_v34 }
 0x859   :  { %v6236_v40 = vpop.f32.mrb[60].mxu0  ;;  %v6277_v56 = vpop.f32.mrb[60].mxu1 }
 0x85a   :  { %v6284_v53 = vadd.f32 %v6236_v40, %v9816_v20  ;;  %v6238_v25 = vpop.f32.mrb[61].mxu0  ;;  %v6279_v31 = vpop.f32.mrb[61].mxu1  ;;  %v6286_v38 = vadd.f32 %v6277_v56, %v9831_v8  ;;  %v11136_v40 = vcombine.high %v6364_v4, %v6368_v0  ;;  %v6371_v56 = vld [vmem:[#allocation7 + $0xd0] sm:$0xff]  ;;  %v6448_v20 = vld [vmem:[#allocation7 + $0x338] sm:$0xff] }
 0x85b   :  { %v6285_v1 = vadd.f32 %v6238_v25, %v9820_v22  ;;  %v6240_v2 = vpop.f32.mrb[62].mxu0  ;;  %v6281_v62 = vpop.f32.mrb[62].mxu1  ;;  %v6287_v7 = vadd.f32 %v6279_v31, %v9825_v23  ;;  %v6372_v25 = vld [vmem:[#allocation7 + $0xd8] sm:$0xff]  ;;  %v6443_v8 = vld [vmem:[#allocation7 + $0x310] sm:$0xff] }
 0x85c   :  { %v6289_v6 = vmul.f32 0.5, %v6284_v53  ;;  %v6241_v55 = vpop.f32.mrb[63].mxu0  ;;  %v6282_v42 = vpop.f32.mrb[63].mxu1  ;;  %v6291_v5 = vmul.f32 0.5, %v6286_v38  ;;  %v6375_v53 = vld [vmem:[#allocation7 + $0xf0] sm:$0xff]  ;;  %v6376_v31 = vld [vmem:[#allocation7 + $0xf8] sm:$0xff]  ;;  %v11144_v2 = vcombine.low %v6364_v4, %v6368_v0 }
 0x85d   :  { %v6290_v45 = vmul.f32 0.5, %v6285_v1  ;;  %v11142_v1 = vcombine.low %v6363_v52, %v6367_v63  ;;  %v11148_v62 = vcombine.high %v6371_v56, %v6375_v53  ;;  %v6379_v55 = vld [vmem:[#allocation7 + $0x110] sm:$0xff]  ;;  %v11154_v38 = vcombine.low %v6371_v56, %v6375_v53  ;;  %v6412_v0 = vld [vmem:[#allocation7 + $0x218] sm:$0xff] }
 0x85e   :  { %9126 = vtanh.f32 %v6289_v6  ;;  %v11150_v6 = vcombine.high %v6372_v25, %v6376_v31  ;;  %v6383_v42 = vld [vmem:[#allocation7 + $0x130] sm:$0xff]  ;;  %v11198_v52 = vcombine.high %v6404_v48, %v6408_v3  ;;  %v6416_v56 = vld [vmem:[#allocation7 + $0x238] sm:$0xff] }
 0x85f   :  { %9128 = vtanh.f32 %v6290_v45  ;;  %v6380_v45 = vld [vmem:[#allocation7 + $0x118] sm:$0xff]  ;;  %v6411_v63 = vld [vmem:[#allocation7 + $0x210] sm:$0xff] }
 0x860   :  { %9130 = vtanh.f32 %v6287_v7  ;;  %v6384_v7 = vld [vmem:[#allocation7 + $0x138] sm:$0xff]  ;;  %v6415_v4 = vld [vmem:[#allocation7 + $0x230] sm:$0xff] }
 0x861   :  { %9132 = vtanh.f32 %v6321_v59  ;;  %v11156_v59 = vcombine.low %v6372_v25, %v6376_v31  ;;  %v11204_v25 = vcombine.low %v6404_v48, %v6408_v3  ;;  %v11208_v31 = vcombine.high %v6411_v63, %v6415_v4  ;;  %v6447_v23 = vld [vmem:[#allocation7 + $0x330] sm:$0xff]  ;;  %v6444_v22 = vld [vmem:[#allocation7 + $0x318] sm:$0xff] }
 0x862   :  { %9134 = vtanh.f32 %v6291_v5  ;;  %v11160_v5 = vcombine.high %v6379_v55, %v6383_v42 }
 0x863   :  { %9136 = vtanh.f32 %v11109_v34  ;;  %v6451_v34 = vld [vmem:[#allocation7 + $0x350] sm:$0xff] }
 0x868   :  { %v9127_v30 = vpop.eup %9126 }
 0x869   :  { %v6295_v37 = vmul.f32 0.5, %v9127_v30  ;;  %v9129_v19 = vpop.eup %9128  ;;  %v11162_v30 = vcombine.high %v6380_v45, %v6384_v7 }
 0x86a   :  { %v6296_v36 = vmul.f32 0.5, %v9129_v19  ;;  %v9131_v33 = vpop.eup %9130  ;;  %v6391_v19 = vld [vmem:[#allocation7 + $0x170] sm:$0xff] }
 0x86b   :  { %v6298_v57 = vadd.f32 0.5, %v6295_v37  ;;  %v9133_v9 = vpop.eup %9132  ;;  %v6387_v37 = vld [vmem:[#allocation7 + $0x150] sm:$0xff] }
 0x86c   :  { %v6299_v17 = vadd.f32 0.5, %v6296_v36  ;;  %v9135_v15 = vpop.eup %9134  ;;  %v6327_v26 = vmul.f32 0.5, %v9133_v9  ;;  %v6392_v36 = vld [vmem:[#allocation7 + $0x178] sm:$0xff]  ;;  %v6395_v9 = vld [vmem:[#allocation7 + $0x190] sm:$0xff] }
 0x86d   :  { %v6303_v60 = vmul.f32 %v9131_v33, %v6298_v57  ;;  %v6297_v58 = vmul.f32 0.5, %v9135_v15  ;;  %v9137_v61 = vpop.eup %9136  ;;  %v6388_v57 = vld [vmem:[#allocation7 + $0x158] sm:$0xff]  ;;  %v11166_v33 = vcombine.low %v6379_v55, %v6383_v42  ;;  %v6399_v15 = vld [vmem:[#allocation7 + $0x1b0] sm:$0xff]  ;;  %v11210_v55 = vcombine.high %v6412_v0, %v6416_v56 }
 0x86e   :  { %v6302_v32 = vmul.f32 %v6299_v17, %v10963_v35  ;;  %v6330_v46 = vadd.f32 0.5, %v6327_v26  ;;  %v6360_v35 = vld [vmem:[#allocation7 + $0x78] sm:$0xff]  ;;  %v11168_v17 = vcombine.low %v6380_v45, %v6384_v7  ;;  %v6419_v42 = vld [vmem:[#allocation7 + $0x250] sm:$0xff] }
 0x86f   :  { %v6300_v28 = vadd.f32 0.5, %v6297_v58  ;;  %v11124_v44 = vcombine.high %v6356_v16, %v6360_v35  ;;  %v11132_v10 = vcombine.low %v6356_v16, %v6360_v35  ;;  %v6396_v26 = vld [vmem:[#allocation7 + $0x198] sm:$0xff]  ;;  %v11190_v16 = vcombine.low %v6395_v9, %v6399_v15  ;;  %v6423_v45 = vld [vmem:[#allocation7 + $0x270] sm:$0xff] }
 0x870   :  { %v11117_v43 = vadd.f32 %v6303_v60, %v6302_v32  ;;  %v6336_v50 = vmul.f32 %v9137_v61, %v6330_v46  ;;  %v11172_v60 = vcombine.high %v6387_v37, %v6391_v19  ;;  %v11174_v32 = vcombine.high %v6388_v57, %v6392_v36  ;;  %v6400_v58 = vld [vmem:[#allocation7 + $0x1b8] sm:$0xff] }
 0x871   :  { %v11178_v61 = vcombine.low %v6387_v37, %v6391_v19  ;;  %v11180_v46 = vcombine.low %v6388_v57, %v6392_v36  ;;  %v11192_v35 = vcombine.low %v6396_v26, %v6400_v58  ;;  %v6420_v7 = vld [vmem:[#allocation7 + $0x258] sm:$0xff]  ;;  %v11214_v19 = vcombine.low %v6411_v63, %v6415_v4  ;;  %v6435_v4 = vld [vmem:[#allocation7 + $0x2d0] sm:$0xff] }
 0x872   :  { %12306 = vst [vmem:[#allocation56_spill] sm:$0xff] %v11117_v43  ;;  %9138 = vtanh.f32 %v11117_v43  ;;  %v11120_v51 = vpack.c.bf16 %v6336_v50, %v6336_v50  ;;  %v6403_v50 = vld [vmem:[#allocation7 + $0x1d0] sm:$0xff]  ;;  %v6424_v37 = vld [vmem:[#allocation7 + $0x278] sm:$0xff]  ;;  %v11216_v57 = vcombine.low %v6412_v0, %v6416_v56  ;;  %v11220_v36 = vcombine.high %v6419_v42, %v6423_v45 }
 0x873   :  { %v11228_v48 = vcombine.low %v6420_v7, %v6424_v37  ;;  %v6439_v0 = vld [vmem:[#allocation7 + $0x2f0] sm:$0xff]  ;;  %v6436_v56 = vld [vmem:[#allocation7 + $0x2d8] sm:$0xff] }
 0x874   :  { %v6440_v43 = vld [vmem:[#allocation7 + $0x2f8] sm:$0xff] }
 0x87c   :  { %v9139_v12 = vpop.eup %9138 }
 0x87d   :  { %v6306_v39 = vmul.f32 %v9139_v12, %v6300_v28  ;;  %v11184_v28 = vcombine.high %v6395_v9, %v6399_v15  ;;  %v11186_v12 = vcombine.high %v6396_v26, %v6400_v58  ;;  %v11222_v9 = vcombine.high %v6420_v7, %v6424_v37  ;;  %v6427_v15 = vld [vmem:[#allocation7 + $0x290] sm:$0xff]  ;;  %v6428_v58 = vld [vmem:[#allocation7 + $0x298] sm:$0xff] }
 0x87e   :  { %v6431_v26 = vld [vmem:[#allocation7 + $0x2b0] sm:$0xff]  ;;  %v11244_v7 = vcombine.high %v6435_v4, %v6439_v0  ;;  %v11246_v37 = vcombine.high %v6436_v56, %v6440_v43 }
 0x87f   :  { %v6344_v24 = vpack.c.bf16 %v6306_v39, %v6306_v39  ;;  %v6407_v39 = vld [vmem:[#allocation7 + $0x1f0] sm:$0xff]  ;;  %v11232_v3 = vcombine.high %v6427_v15, %v6431_v26 }
 0x880   :  { %v11202_v53 = vcombine.low %v6403_v50, %v6407_v39  ;;  %12308 = vst [vmem:[#allocation53_spill] sm:$0xff] %v11244_v7  ;;  %12309 = vst [vmem:[#allocation60_spill] sm:$0xff] %v11246_v37 }
 0x881   :  { %7145 = vmatprep.mubr.bf16.mxu0 %v6344_v24  ;;  %7186 = vmatprep.mubr.bf16.mxu1 %v6344_v24 }
 0x882   :  { %7146 = vmatmul.mubr.bf16.vlgmr.msra.gmra.mrb[64].mxu0 %v11120_v51  ;;  %7187 = vmatmul.mubr.bf16.vlgmr.msra.gmra.mrb[64].mxu1 %v11120_v51 }
 0x883   :  { %7196 = vmatpush1.bf16.msra.mxu0 %v11092_v14  ;;  %7237 = vmatpush1.bf16.msra.mxu1 %v11094_v18 }
 0x884   :  { %7227 = vmatprep.mubr.bf16.mxu0 %v6344_v24  ;;  %7268 = vmatprep.mubr.bf16.mxu1 %v6344_v24  ;;  %v11196_v24 = vcombine.high %v6403_v50, %v6407_v39  ;;  %v6432_v50 = vld [vmem:[#allocation7 + $0x2b8] sm:$0xff]  ;;  %v11226_v39 = vcombine.low %v6419_v42, %v6423_v45  ;;  %v11238_v42 = vcombine.low %v6427_v15, %v6431_v26 }
 0x885   :  { %7197 = vmatprep.subr.bf16.mxu0 %v11122_v49  ;;  %7238 = vmatprep.subr.bf16.mxu1 %v11124_v44  ;;  %v11234_v63 = vcombine.high %v6428_v58, %v6432_v50  ;;  %v11240_v45 = vcombine.low %v6428_v58, %v6432_v50  ;;  %v11250_v15 = vcombine.low %v6435_v4, %v6439_v0 }
 0x886   :  { %v11252_v26 = vcombine.low %v6436_v56, %v6440_v43  ;;  %v11256_v58 = vcombine.high %v6443_v8, %v6447_v23  ;;  %v11258_v50 = vcombine.high %v6444_v22, %v6448_v20  ;;  %v11262_v4 = vcombine.low %v6443_v8, %v6447_v23 }
 0x887   :  { %7198 = vmatpush1.bf16.msra.mxu0 %v11130_v13  ;;  %7239 = vmatpush1.bf16.msra.mxu1 %v11132_v10  ;;  %12307 = vst [vmem:[#allocation50_spill] sm:$0xff] %v11240_v45  ;;  %12310 = vst [vmem:[#allocation62_spill] sm:$0xff] %v11250_v15  ;;  %v11264_v43 = vcombine.low %v6444_v22, %v6448_v20  ;;  %v11268_v0 = vcombine.high %v6451_v34, %v6455_v47 }
 0x888   :  { %7199 = vmatprep.subr.bf16.mxu0 %v11134_v29  ;;  %7240 = vmatprep.subr.bf16.mxu1 %v11136_v40  ;;  %12311 = vst [vmem:[#allocation61_spill] sm:$0xff] %v11252_v26  ;;  %12312 = vst [vmem:[#allocation64_spill] sm:$0xff] %v11256_v58  ;;  %v11270_v56 = vcombine.high %v6452_v11, %v6456_v21  ;;  %v11274_v23 = vcombine.low %v6451_v34, %v6455_v47 }
 0x889   :  { %12313 = vst [vmem:[#allocation63_spill] sm:$0xff] %v11258_v50  ;;  %v11276_v20 = vcombine.low %v6452_v11, %v6456_v21 }
 0x88a   :  { %12314 = vst [vmem:[#allocation66_spill] sm:$0xff] %v11270_v56  ;;  %12315 = vst [vmem:[#allocation65_spill] sm:$0xff] %v11274_v23 }
 0x88b   :  { %7200 = vmatpush1.bf16.msra.mxu0 %v11142_v1  ;;  %7241 = vmatpush1.bf16.msra.mxu1 %v11144_v2 }
 0x88c   :  { %7201 = vmatprep.subr.bf16.mxu0 %v11148_v62  ;;  %7242 = vmatprep.subr.bf16.mxu1 %v11150_v6 }
 0x88f   :  { %7202 = vmatpush1.bf16.msra.mxu0 %v11154_v38  ;;  %7243 = vmatpush1.bf16.msra.mxu1 %v11156_v59 }
 0x890   :  { %7203 = vmatprep.subr.bf16.mxu0 %v11160_v5  ;;  %7244 = vmatprep.subr.bf16.mxu1 %v11162_v30 }
 0x893   :  { %7204 = vmatpush1.bf16.msra.mxu0 %v11166_v33  ;;  %7245 = vmatpush1.bf16.msra.mxu1 %v11168_v17 }
 0x894   :  { %7205 = vmatprep.subr.bf16.mxu0 %v11172_v60  ;;  %7246 = vmatprep.subr.bf16.mxu1 %v11174_v32 }
 0x897   :  { %7206 = vmatpush1.bf16.msra.mxu0 %v11178_v61  ;;  %7247 = vmatpush1.bf16.msra.mxu1 %v11180_v46 }
 0x898   :  { %7207 = vmatprep.subr.bf16.mxu0 %v11184_v28  ;;  %7248 = vmatprep.subr.bf16.mxu1 %v11186_v12 }
 0x89b   :  { %7208 = vmatpush1.bf16.msra.mxu0 %v11190_v16  ;;  %7249 = vmatpush1.bf16.msra.mxu1 %v11192_v35 }
 0x89c   :  { %7209 = vmatprep.subr.bf16.mxu0 %v11196_v24  ;;  %7250 = vmatprep.subr.bf16.mxu1 %v11198_v52 }
 0x89f   :  { %7210 = vmatpush1.bf16.msra.mxu0 %v11202_v53  ;;  %7251 = vmatpush1.bf16.msra.mxu1 %v11204_v25 }
 0x8a0   :  { %7211 = vmatprep.subr.bf16.mxu0 %v11208_v31  ;;  %7252 = vmatprep.subr.bf16.mxu1 %v11210_v55 }
 0x8a3   :  { %7212 = vmatpush1.bf16.msra.mxu0 %v11214_v19  ;;  %7253 = vmatpush1.bf16.msra.mxu1 %v11216_v57 }
 0x8a4   :  { %7213 = vmatprep.subr.bf16.mxu0 %v11220_v36  ;;  %7254 = vmatprep.subr.bf16.mxu1 %v11222_v9 }
 0x8a7   :  { %7214 = vmatpush1.bf16.msra.mxu0 %v11226_v39  ;;  %7255 = vmatpush1.bf16.msra.mxu1 %v11228_v48 }
 0x8a8   :  { %7215 = vmatprep.subr.bf16.mxu0 %v11232_v3  ;;  %7256 = vmatprep.subr.bf16.mxu1 %v11234_v63 }
 0x8ab   :  { %7216 = vmatpush1.bf16.msra.mxu0 %v11238_v42  ;;  %7257 = vmatpush1.bf16.msra.mxu1 %v11240_v45  ;;  %v6464_v45 = vld [vmem:[#allocation7 + $0x3b8] sm:$0xff] }
 0x8ac   :  { %7217 = vmatprep.subr.bf16.mxu0 %v11244_v7  ;;  %7258 = vmatprep.subr.bf16.mxu1 %v11246_v37  ;;  %v6463_v37 = vld [vmem:[#allocation7 + $0x3b0] sm:$0xff]  ;;  %v6460_v7 = vld [vmem:[#allocation7 + $0x398] sm:$0xff] }
 0x8ad   :  { %v11280_v22 = vcombine.high %v6459_v54, %v6463_v37  ;;  %v11282_v8 = vcombine.high %v6460_v7, %v6464_v45  ;;  %v11286_v47 = vcombine.low %v6459_v54, %v6463_v37  ;;  %v11288_v21 = vcombine.low %v6460_v7, %v6464_v45  ;;  %v12320_v54 = vld [vmem:[#allocation61_spill] sm:$0xff]  ;;  %v12334_v45 = vld [vmem:[#allocation54_spill] sm:$0xff] }
 0x8af   :  { %7218 = vmatpush1.bf16.msra.mxu0 %v11250_v15  ;;  %7259 = vmatpush1.bf16.msra.mxu1 %v11252_v26  ;;  %v6468_v26 = vld [vmem:[#allocation7 + $0x3d8] sm:$0xff] }
 0x8b0   :  { %7219 = vmatprep.subr.bf16.mxu0 %v11256_v58  ;;  %7260 = vmatprep.subr.bf16.mxu1 %v11258_v50  ;;  %v6467_v50 = vld [vmem:[#allocation7 + $0x3d0] sm:$0xff]  ;;  %v6472_v15 = vld [vmem:[#allocation7 + $0x3f8] sm:$0xff] }
 0x8b1   :  { %v6471_v58 = vld [vmem:[#allocation7 + $0x3f0] sm:$0xff]  ;;  %v11294_v34 = vcombine.high %v6468_v26, %v6472_v15 }
 0x8b2   :  { %v11292_v11 = vcombine.high %v6467_v50, %v6471_v58 }
 0x8b3   :  { %7220 = vmatpush1.bf16.msra.mxu0 %v11262_v4  ;;  %7261 = vmatpush1.bf16.msra.mxu1 %v11264_v43 }
 0x8b4   :  { %7221 = vmatprep.subr.bf16.mxu0 %v11268_v0  ;;  %7262 = vmatprep.subr.bf16.mxu1 %v11270_v56  ;;  %v11298_v56 = vcombine.low %v6467_v50, %v6471_v58 }
 0x8b7   :  { %7222 = vmatpush1.bf16.msra.mxu0 %v11274_v23  ;;  %7263 = vmatpush1.bf16.msra.mxu1 %v11276_v20  ;;  %v11300_v23 = vcombine.low %v6468_v26, %v6472_v15 }
 0x8b8   :  { %7223 = vmatprep.subr.bf16.mxu0 %v11280_v22  ;;  %7264 = vmatprep.subr.bf16.mxu1 %v11282_v8 }
 0x8bb   :  { %7224 = vmatpush1.bf16.msra.mxu0 %v11286_v47  ;;  %7265 = vmatpush1.bf16.msra.mxu1 %v11288_v21 }
 0x8bc   :  { %7225 = vmatprep.subr.bf16.mxu0 %v11292_v11  ;;  %7266 = vmatprep.subr.bf16.mxu1 %v11294_v34 }
 0x8bf   :  { %7226 = vmatpush1.bf16.msra.mxu0 %v11298_v56  ;;  %7267 = vmatpush1.bf16.msra.mxu1 %v11300_v23 }
 0x8c0   :  { %7722 = vmatprep.subr.bf16.mxu0 %v11090_v27  ;;  %7763 = vmatprep.subr.bf16.mxu1 %v11096_v41  ;;  %v12316_v27 = vld [vmem:[#allocation50_spill] sm:$0xff] }
 0x8c1   :  { %v12319_v41 = vld [vmem:[#allocation62_spill] sm:$0xff] }
 0x8c2   :  { %7228 = vmatmul.mubr.bf16.vlgmr.msra.gmra.mrb[68].mxu0 %v11120_v51  ;;  %7269 = vmatmul.mubr.bf16.vlgmr.msra.gmra.mrb[68].mxu1 %v11120_v51  ;;  %v12321_v51 = vld [vmem:[#allocation64_spill] sm:$0xff] }
 0x8c3   :  { %7723 = vmatpush1.bf16.msra.mxu0 %v11092_v14  ;;  %7764 = vmatpush1.bf16.msra.mxu1 %v11094_v18  ;;  %v12317_v14 = vld [vmem:[#allocation53_spill] sm:$0xff]  ;;  %v12318_v18 = vld [vmem:[#allocation60_spill] sm:$0xff] }
 0x8c4   :  { %7724 = vmatprep.subr.bf16.mxu0 %v11122_v49  ;;  %7765 = vmatprep.subr.bf16.mxu1 %v11124_v44  ;;  %v12322_v49 = vld [vmem:[#allocation63_spill] sm:$0xff]  ;;  %v12323_v44 = vld [vmem:[#allocation66_spill] sm:$0xff] }
 0x8c7   :  { %7725 = vmatpush1.bf16.msra.mxu0 %v11130_v13  ;;  %7766 = vmatpush1.bf16.msra.mxu1 %v11132_v10  ;;  %v12324_v13 = vld [vmem:[#allocation65_spill] sm:$0xff]  ;;  %v12325_v10 = vmov 0.0|0.0  }
 0x8c8   :  { %7726 = vmatprep.subr.bf16.mxu0 %v11134_v29  ;;  %7767 = vmatprep.subr.bf16.mxu1 %v11136_v40  ;;  %v12326_v29 = vld [vmem:[#allocation10_spill] sm:$0xff] }
 0x8c9   :  { %v12327_v40 = vld [vmem:[#allocation70_spill] sm:$0xff] }
 0x8cb   :  { %7727 = vmatpush1.bf16.msra.mxu0 %v11142_v1  ;;  %7768 = vmatpush1.bf16.msra.mxu1 %v11144_v2  ;;  %v227_v1 = vadd.f32 %v12327_v40, %v12326_v29  ;;  %v12328_v2 = vld [vmem:[#allocation13_spill] sm:$0xff] }
 0x8cc   :  { %7728 = vmatprep.subr.bf16.mxu0 %v11148_v62  ;;  %7769 = vmatprep.subr.bf16.mxu1 %v11150_v6  ;;  %v12329_v62 = vld [vmem:[#allocation74_spill] sm:$0xff] }
 0x8cd   :  { %v300_v6 = vadd.f32 %v12329_v62, %v12328_v2 }
 0x8cf   :  { %7729 = vmatpush1.bf16.msra.mxu0 %v11154_v38  ;;  %7770 = vmatpush1.bf16.msra.mxu1 %v11156_v59  ;;  %v12330_v38 = vld [vmem:[#allocation11_spill] sm:$0xff]  ;;  %v12331_v59 = vld [vmem:[#allocation72_spill] sm:$0xff] }
 0x8d0   :  { %7730 = vmatprep.subr.bf16.mxu0 %v11160_v5  ;;  %7771 = vmatprep.subr.bf16.mxu1 %v11162_v30  ;;  %v229_v5 = vadd.f32 %v12331_v59, %v12330_v38  ;;  %v12332_v30 = vld [vmem:[#allocation12_spill] sm:$0xff] }
 0x8d1   :  { %v12339_v59 = vld [vmem:[#allocation56_spill] sm:$0xff] }
 0x8d3   :  { %7731 = vmatpush1.bf16.msra.mxu0 %v11166_v33  ;;  %7772 = vmatpush1.bf16.msra.mxu1 %v11168_v17  ;;  %v12333_v33 = vld [vmem:[#allocation75_spill] sm:$0xff] }
 0x8d4   :  { %7732 = vmatprep.subr.bf16.mxu0 %v11172_v60  ;;  %7773 = vmatprep.subr.bf16.mxu1 %v11174_v32  ;;  %v302_v17 = vadd.f32 %v12333_v33, %v12332_v30 }
 0x8d7   :  { %7733 = vmatpush1.bf16.msra.mxu0 %v11178_v61  ;;  %7774 = vmatpush1.bf16.msra.mxu1 %v11180_v46 }
 0x8d8   :  { %7734 = vmatprep.subr.bf16.mxu0 %v11184_v28  ;;  %7775 = vmatprep.subr.bf16.mxu1 %v11186_v12 }
 0x8db   :  { %7735 = vmatpush1.bf16.msra.mxu0 %v11190_v16  ;;  %7776 = vmatpush1.bf16.msra.mxu1 %v11192_v35 }
 0x8dc   :  { %7736 = vmatprep.subr.bf16.mxu0 %v11196_v24  ;;  %7777 = vmatprep.subr.bf16.mxu1 %v11198_v52 }
 0x8df   :  { %7737 = vmatpush1.bf16.msra.mxu0 %v11202_v53  ;;  %7778 = vmatpush1.bf16.msra.mxu1 %v11204_v25 }
 0x8e0   :  { %7738 = vmatprep.subr.bf16.mxu0 %v11208_v31  ;;  %7779 = vmatprep.subr.bf16.mxu1 %v11210_v55 }
 0x8e3   :  { %7739 = vmatpush1.bf16.msra.mxu0 %v11214_v19  ;;  %7780 = vmatpush1.bf16.msra.mxu1 %v11216_v57 }
 0x8e4   :  { %7740 = vmatprep.subr.bf16.mxu0 %v11220_v36  ;;  %7781 = vmatprep.subr.bf16.mxu1 %v11222_v9 }
 0x8e7   :  { %7741 = vmatpush1.bf16.msra.mxu0 %v11226_v39  ;;  %7782 = vmatpush1.bf16.msra.mxu1 %v11228_v48 }
 0x8e8   :  { %7742 = vmatprep.subr.bf16.mxu0 %v11232_v3  ;;  %7783 = vmatprep.subr.bf16.mxu1 %v11234_v63 }
 0x8eb   :  { %7743 = vmatpush1.bf16.msra.mxu0 %v11238_v42  ;;  %7784 = vmatpush1.bf16.msra.mxu1 %v12316_v27 }
 0x8ec   :  { %7744 = vmatprep.subr.bf16.mxu0 %v12317_v14  ;;  %7785 = vmatprep.subr.bf16.mxu1 %v12318_v18 }
 0x8ef   :  { %7745 = vmatpush1.bf16.msra.mxu0 %v12319_v41  ;;  %7786 = vmatpush1.bf16.msra.mxu1 %v12320_v54  ;;  %v12337_v41 = vld [vmem:[#allocation119_spill] sm:$0xff] }
 0x8f0   :  { %7746 = vmatprep.subr.bf16.mxu0 %v12321_v51  ;;  %7787 = vmatprep.subr.bf16.mxu1 %v12322_v49  ;;  %v12338_v51 = vld [vmem:[#allocation120_spill] sm:$0xff] }
 0x8f3   :  { %7747 = vmatpush1.bf16.msra.mxu0 %v11262_v4  ;;  %7788 = vmatpush1.bf16.msra.mxu1 %v11264_v43 }
 0x8f4   :  { %7748 = vmatprep.subr.bf16.mxu0 %v11268_v0  ;;  %7789 = vmatprep.subr.bf16.mxu1 %v12323_v44 }
 0x8f7   :  { %7749 = vmatpush1.bf16.msra.mxu0 %v12324_v13  ;;  %7790 = vmatpush1.bf16.msra.mxu1 %v11276_v20 }
 0x8f8   :  { %7750 = vmatprep.subr.bf16.mxu0 %v11280_v22  ;;  %7791 = vmatprep.subr.bf16.mxu1 %v11282_v8  ;;  %v12336_v8 = vld [vmem:[#allocation118_spill] sm:$0xff] }
 0x8fb   :  { %7751 = vmatpush1.bf16.msra.mxu0 %v11286_v47  ;;  %7792 = vmatpush1.bf16.msra.mxu1 %v11288_v21 }
 0x8fc   :  { %7752 = vmatprep.subr.bf16.mxu0 %v11292_v11  ;;  %7793 = vmatprep.subr.bf16.mxu1 %v11294_v34 }
 0x8ff   :  { %7753 = vmatpush1.bf16.msra.mxu0 %v11298_v56  ;;  %7794 = vmatpush1.bf16.msra.mxu1 %v11300_v23  ;;  %v12335_v56 = vld [vmem:[#allocation117_spill] sm:$0xff] }
 0x900   :  { %8963 = vmatprep.subr.bf16.mxu0 %v12325_v10 }
 0x955   :  { %v7147_v60 = vpop.f32.mrb[64].mxu0  ;;  %v7188_v32 = vpop.f32.mrb[64].mxu1 }
 0x956   :  { %v7307_v61 = vadd.f32 %v7147_v60, %v227_v1  ;;  %v7309_v46 = vadd.f32 %v7188_v32, %v300_v6  ;;  %v7149_v28 = vpop.f32.mrb[65].mxu0  ;;  %v7190_v12 = vpop.f32.mrb[65].mxu1 }
 0x957   :  { %v7308_v16 = vadd.f32 %v7149_v28, %v229_v5  ;;  %v7310_v35 = vadd.f32 %v7190_v12, %v302_v17  ;;  %v7151_v24 = vpop.f32.mrb[66].mxu0  ;;  %v7192_v52 = vpop.f32.mrb[66].mxu1  ;;  %v7823_v12 = vld [vmem:[%s11458_s5] sm:$0xff] }
 0x958   :  { %v7312_v53 = vmul.f32 0.5, %v7307_v61  ;;  %v7152_v25 = vpop.f32.mrb[67].mxu0  ;;  %v7193_v31 = vpop.f32.mrb[67].mxu1  ;;  %v7314_v19 = vmul.f32 0.5, %v7309_v46  ;;  %v7825_v24 = vld [vmem:[%s11458_s5 + $0x10] sm:$0xff]  ;;  %v7826_v52 = vld [vmem:[%s11458_s5 + $0x18] sm:$0xff] }
 0x959   :  { %v7313_v55 = vmul.f32 0.5, %v7308_v16  ;;  %v7824_v16 = vld [vmem:[%s11458_s5 + $0x8] sm:$0xff]  ;;  %v7827_v25 = vld [vmem:[%s11458_s5 + $0x20] sm:$0xff] }
 0x95a   :  { %9140 = vtanh.f32 %v7312_v53  ;;  %v8967_v53 = vpack.c.bf16 %v7826_v52, %v7825_v24  ;;  %v7828_v31 = vld [vmem:[%s11458_s5 + $0x28] sm:$0xff] }
 0x95b   :  { %9142 = vtanh.f32 %v7313_v55  ;;  %v8970_v55 = vpack.c.bf16 %v7828_v31, %v7827_v25 }
 0x95c   :  { %9144 = vtanh.f32 %v7310_v35  ;;  %v8964_v35 = vpack.c.bf16 %v7824_v16, %v7823_v12 }
 0x95d   :  { %9146 = vtanh.f32 %v7314_v19  ;;  %v7829_v19 = vld [vmem:[%s11458_s5 + $0x30] sm:$0xff] }
 0x964   :  { %v9141_v57 = vpop.eup %9140 }
 0x965   :  { %v7318_v36 = vmul.f32 0.5, %v9141_v57  ;;  %v9143_v9 = vpop.eup %9142  ;;  %v7830_v57 = vld [vmem:[%s11458_s5 + $0x38] sm:$0xff] }
 0x966   :  { %v7319_v48 = vmul.f32 0.5, %v9143_v9  ;;  %v9145_v3 = vpop.eup %9144  ;;  %v7831_v9 = vld [vmem:[%s11458_s5 + $0x40] sm:$0xff] }
 0x967   :  { %v7321_v39 = vadd.f32 0.5, %v7318_v36  ;;  %v9147_v15 = vpop.eup %9146  ;;  %v8973_v36 = vpack.c.bf16 %v7830_v57, %v7829_v19 }
 0x968   :  { %v7322_v63 = vadd.f32 0.5, %v7319_v48  ;;  %v7320_v26 = vmul.f32 0.5, %v9147_v15 }
 0x969   :  { %v7326_v42 = vmul.f32 %v9145_v3, %v7321_v39  ;;  %v7832_v39 = vld [vmem:[%s11458_s5 + $0x48] sm:$0xff]  ;;  %v7833_v3 = vld [vmem:[%s11458_s5 + $0x50] sm:$0xff] }
 0x96a   :  { %v7325_v7 = vmul.f32 %v7322_v63, %v12334_v45  ;;  %v7323_v58 = vadd.f32 0.5, %v7320_v26  ;;  %v8976_v48 = vpack.c.bf16 %v7832_v39, %v7831_v9  ;;  %v7834_v63 = vld [vmem:[%s11458_s5 + $0x58] sm:$0xff]  ;;  %v7835_v45 = vld [vmem:[%s11458_s5 + $0x60] sm:$0xff]  ;;  %v7837_v26 = vld [vmem:[%s11458_s5 + $0x70] sm:$0xff] }
 0x96c   :  { %v7327_v37 = vadd.f32 %v7326_v42, %v7325_v7  ;;  %v8979_v42 = vpack.c.bf16 %v7834_v63, %v7833_v3  ;;  %v7836_v7 = vld [vmem:[%s11458_s5 + $0x68] sm:$0xff] }
 0x96d   :  { %v8982_v15 = vpack.c.bf16 %v7836_v7, %v7835_v45 }
 0x96e   :  { %9148 = vtanh.f32 %v7327_v37  ;;  %v9200_v37 = vmov 0.0  }
 0x978   :  { %v9149_v50 = vpop.eup %9148 }
 0x979   :  { %v7329_v4 = vmul.f32 %v9149_v50, %v7323_v58  ;;  %v7838_v58 = vld [vmem:[%s11458_s5 + $0x78] sm:$0xff] }
 0x97a   :  { %v8985_v50 = vpack.c.bf16 %v7838_v58, %v7837_v26 }
 0x97b   :  { %v7336_v28 = vpack.c.bf16 %v7329_v4, %v7329_v4 }
 0x995   :  { %v7229_v43 = vpop.f32.mrb[68].mxu0  ;;  %v7270_v0 = vpop.f32.mrb[68].mxu1 }
 0x996   :  { %v7277_v23 = vadd.f32 %v7229_v43, %v12335_v56  ;;  %v7231_v20 = vpop.f32.mrb[69].mxu0  ;;  %v7272_v22 = vpop.f32.mrb[69].mxu1  ;;  %v7279_v49 = vadd.f32 %v7270_v0, %v12338_v51 }
 0x997   :  { %v7278_v47 = vadd.f32 %v7231_v20, %v12336_v8  ;;  %v7233_v21 = vpop.f32.mrb[70].mxu0  ;;  %v7274_v11 = vpop.f32.mrb[70].mxu1  ;;  %v7280_v54 = vadd.f32 %v7272_v22, %v12337_v41 }
 0x998   :  { %v7282_v34 = vmul.f32 0.5, %v7277_v23  ;;  %v7234_v27 = vpop.f32.mrb[71].mxu0  ;;  %v7275_v14 = vpop.f32.mrb[71].mxu1  ;;  %v7284_v44 = vmul.f32 0.5, %v7279_v49 }
 0x999   :  { %v7283_v18 = vmul.f32 0.5, %v7278_v47 }
 0x99a   :  { %9150 = vtanh.f32 %v7282_v34 }
 0x99b   :  { %9152 = vtanh.f32 %v7283_v18 }
 0x99c   :  { %9154 = vtanh.f32 %v7280_v54 }
 0x99d   :  { %9156 = vtanh.f32 %v7284_v44 }
 0x9a4   :  { %v9151_v13 = vpop.eup %9150 }
 0x9a5   :  { %v7288_v29 = vmul.f32 0.5, %v9151_v13  ;;  %v9153_v40 = vpop.eup %9152 }
 0x9a6   :  { %v7289_v2 = vmul.f32 0.5, %v9153_v40  ;;  %v9155_v62 = vpop.eup %9154 }
 0x9a7   :  { %v7291_v1 = vadd.f32 0.5, %v7288_v29  ;;  %v9157_v33 = vpop.eup %9156 }
 0x9a8   :  { %v7292_v6 = vadd.f32 0.5, %v7289_v2  ;;  %v7290_v17 = vmul.f32 0.5, %v9157_v33 }
 0x9a9   :  { %v7296_v38 = vmul.f32 %v9155_v62, %v7291_v1 }
 0x9aa   :  { %v7295_v5 = vmul.f32 %v7292_v6, %v12339_v59  ;;  %v7293_v60 = vadd.f32 0.5, %v7290_v17 }
 0x9ac   :  { %v11387_v30 = vadd.f32 %v7296_v38, %v7295_v5 }
 0x9ae   :  { %9158 = vtanh.f32 %v11387_v30 }
 0x9b8   :  { %v9159_v32 = vpop.eup %9158 }
 0x9b9   :  { %v7299_v61 = vmul.f32 %v9159_v32, %v7293_v60 }
 0x9bb   :  { %v7337_v46 = vpack.c.bf16 %v7299_v61, %v7299_v61 }
 0x9bd   :  { %7754 = vmatprep.mubr.bf16.mxu0 %v7337_v46  ;;  %7795 = vmatprep.mubr.bf16.mxu1 %v7337_v46 }
 0x9be   :  { %7755 = vmatmul.mubr.bf16.vlgmr.msra.gmra.mrb[72].mxu0 %v7336_v28  ;;  %7796 = vmatmul.mubr.bf16.vlgmr.msra.gmra.mrb[72].mxu1 %v7336_v28 }
 0x9bf   :  { %8965 = vmatpush3.bf16.msra.mxu0 %v8964_v35  ;;  %8960 = vmatprep.mubr.msk.f32.mxu0 %vm9199_vm1, %v9200_v37 }
 0x9c0   :  { %8966 = vmatprep.subr.bf16.mxu0 %v12325_v10 }
 0x9c3   :  { %8968 = vmatpush3.bf16.msra.mxu0 %v8967_v53 }
 0x9c4   :  { %8969 = vmatprep.subr.bf16.mxu0 %v12325_v10 }
 0x9c7   :  { %8971 = vmatpush3.bf16.msra.mxu0 %v8970_v55 }
 0x9c8   :  { %8972 = vmatprep.subr.bf16.mxu0 %v12325_v10 }
 0x9cb   :  { %8974 = vmatpush3.bf16.msra.mxu0 %v8973_v36 }
 0x9cc   :  { %8975 = vmatprep.subr.bf16.mxu0 %v12325_v10 }
 0x9cf   :  { %8977 = vmatpush3.bf16.msra.mxu0 %v8976_v48 }
 0x9d0   :  { %8978 = vmatprep.subr.bf16.mxu0 %v12325_v10 }
 0x9d3   :  { %8980 = vmatpush3.bf16.msra.mxu0 %v8979_v42 }
 0x9d4   :  { %8981 = vmatprep.subr.bf16.mxu0 %v12325_v10 }
 0x9d7   :  { %8983 = vmatpush3.bf16.msra.mxu0 %v8982_v15 }
 0x9d8   :  { %8984 = vmatprep.subr.bf16.mxu0 %v12325_v10 }
 0x9db   :  { %8986 = vmatpush3.bf16.msra.mxu0 %v8985_v50 }
 0xa91   :  { %v7756_v4 = vpop.f32.mrb[72].mxu0  ;;  %v7797_v43 = vpop.f32.mrb[72].mxu1 }
 0xa92   :  { %v7757_v0 = vadd.f32 %v7756_v4, %v12335_v56  ;;  %v7758_v23 = vpop.f32.mrb[73].mxu0  ;;  %v7799_v20 = vpop.f32.mrb[73].mxu1  ;;  %v7798_v10 = vadd.f32 %v7797_v43, %v12338_v51  ;;  %v8910_v51 = vld [vmem:[#allocation6] ss:$0 sm:$0xff] }
 0xa93   :  { %v7759_v22 = vadd.f32 %v7758_v23, %v12336_v8  ;;  %v7760_v47 = vpop.f32.mrb[74].mxu0  ;;  %v7801_v21 = vpop.f32.mrb[74].mxu1  ;;  %v7800_v18 = vadd.f32 %v7799_v20, %v12337_v41 }
 0xa94   :  { %v7805_v11 = vmul.f32 0.5, %v7757_v0  ;;  %v7761_v34 = vpop.f32.mrb[75].mxu0  ;;  %v7802_v27 = vpop.f32.mrb[75].mxu1  ;;  %v7807_v54 = vmul.f32 0.5, %v7798_v10 }
 0xa95   :  { %v7806_v14 = vmul.f32 0.5, %v7759_v22 }
 0xa96   :  { %9160 = vtanh.f32 %v7805_v11 }
 0xa97   :  { %9162 = vtanh.f32 %v7806_v14 }
 0xa98   :  { %9164 = vtanh.f32 %v7800_v18 }
 0xa99   :  { %9166 = vtanh.f32 %v7807_v54 }
 0xaa0   :  { %v9161_v49 = vpop.eup %9160 }
 0xaa1   :  { %v7811_v56 = vmul.f32 0.5, %v9161_v49  ;;  %v9163_v44 = vpop.eup %9162 }
 0xaa2   :  { %v7812_v8 = vmul.f32 0.5, %v9163_v44  ;;  %v9165_v29 = vpop.eup %9164 }
 0xaa3   :  { %v7814_v13 = vadd.f32 0.5, %v7811_v56  ;;  %v9167_v6 = vpop.eup %9166 }
 0xaa4   :  { %v7815_v40 = vadd.f32 0.5, %v7812_v8  ;;  %v7813_v41 = vmul.f32 0.5, %v9167_v6 }
 0xaa5   :  { %v7819_v1 = vmul.f32 %v9165_v29, %v7814_v13 }
 0xaa6   :  { %v7818_v2 = vmul.f32 %v7815_v40, %v11387_v30  ;;  %v7816_v38 = vadd.f32 0.5, %v7813_v41 }
 0xaa8   :  { %v7820_v62 = vadd.f32 %v7819_v1, %v7818_v2 }
 0xaaa   :  { %9168 = vtanh.f32 %v7820_v62 }
 0xab4   :  { %v9169_v59 = vpop.eup %9168 }
 0xab5   :  { %v7822_v5 = vmul.f32 %v9169_v59, %v7816_v38 }
 0xab7   :  { %8961 = vmatmul.mubr.f32.vlgmr.msra.gmra.mrb[76].mxu0 %v7822_v5 }
 0xb8a   :  { %v7912_v33 = vpop.f32.mrb[76].mxu0 }
 0xb8b   :  { %v7913_v17 = vadd.f32 %v8910_v51, %v7912_v33  ;;  %v8962_v60 = vpop.f32.mrb[77].mxu0 }
 0xb8d   :  { %7917 = vst.msk [vmem:[%s11460_s7] sm:$0xff] %vm7916_vm2, %v7913_v17 }
 0xb8e   :  { %7922 = vsyncpa [#allocation8], 1 }

</bundles_post_ra>
